<compile_context>
chip_gen: v7x
topology: tpu7x:2x2x1
jax: 0.10.0
libtpu: 0.0.40
codegen_flags: <defaults>
</compile_context>

<pallas_src>
import functools

import jax
import jax.numpy as jnp
from jax.experimental import pallas as pl
from jax.experimental.pallas import tpu as pltpu

LANE = 128  # TPU lane width; feature dims are zero-padded to a multiple of this.


def _round_up(x, m):
    return ((x + m - 1) // m) * m


def _pick_tiles(n, f_max_p):
    """MXU/lane-friendly (TM, TK) tiles for the [N, N] adjacency."""
    if n >= 2048 and f_max_p <= 512:
        return 512, 512
    if n >= 512:
        return 256, 512
    if n >= 256:
        return 256, 256
    return 128, 128


def sage_layer_kernel(a_ref, xk_ref, xi_ref, ws_ref, wn_ref, b_ref, o_ref,
                      acc_ref, *deg_scratch, deg_col, ones_out_col):
    """One tiled GraphSAGE layer.

    Grid = (dst-row tiles, src-node reduction tiles); reduction axis last.
    acc_ref accumulates (A @ X) for the current dst-row tile in f32.  If
    `deg_col` is set, X carries a constant-1 marker in that (padded) column so
    acc[:, deg_col] is the row degree (computed on the MXU); otherwise a
    [tm, 1] scratch accumulates degrees with an explicit reduction.  The
    mean-normalize + linear + bias + ReLU epilogue runs on the last k step.
    """
    k = pl.program_id(1)
    deg_ref = deg_scratch[0] if deg_scratch else None

    @pl.when(k == 0)
    def _():
        acc_ref[...] = jnp.zeros_like(acc_ref)
        if deg_ref is not None:
            deg_ref[...] = jnp.zeros_like(deg_ref)

    a = a_ref[...].astype(jnp.float32)           # bf16 0/1 adjacency -> f32 (exact)
    acc_ref[...] += jnp.dot(a, xk_ref[...], preferred_element_type=jnp.float32)
    if deg_ref is not None:                      # fallback: explicit degree reduction
        deg_ref[...] += jnp.sum(a, axis=1, keepdims=True)

    @pl.when(k == pl.num_programs(1) - 1)
    def _():
        acc = acc_ref[...]
        if deg_ref is None:
            deg = acc[:, deg_col:deg_col + 1]    # degree fell out of the matmul
        else:
            deg = deg_ref[...]
        inv_deg = 1.0 / jnp.maximum(deg, 1.0)    # isolated / padded nodes
        agg = acc * inv_deg                      # mean over neighbors
        h = jnp.dot(xi_ref[...], ws_ref[...], preferred_element_type=jnp.float32)
        h = h + jnp.dot(agg, wn_ref[...], preferred_element_type=jnp.float32)
        h = jnp.maximum(h + b_ref[...], 0.0)
        if ones_out_col is not None:
            # Plant the next layer's degree-marker column (padded -> harmless).
            col = jax.lax.broadcasted_iota(jnp.int32, h.shape, dimension=1)
            h = jnp.where(col == ones_out_col, 1.0, h)
        o_ref[...] = h.astype(o_ref.dtype)


def sage_layer_padded(adj_p, x_p, wst_p, wnt_p, b_p, *, tm, tk,
                      deg_col, ones_out_col):
    """One layer in padded space.

    adj_p: [Np, Np] bf16 (0/1), x_p: [Np, Fip] f32 (with a constant-1 marker
    at column `deg_col` if set), wst_p/wnt_p: [Fip, Fop] f32 (weights
    pre-transposed in the wrapper), b_p: [1, Fop] f32.
    """
    n_p = adj_p.shape[0]
    f_in = x_p.shape[1]
    f_out = wst_p.shape[1]
    grid = (n_p // tm, n_p // tk)

    scratch = [pltpu.VMEM((tm, f_in), jnp.float32)]      # A @ X accumulator
    if deg_col is None:
        scratch.append(pltpu.VMEM((tm, 1), jnp.float32))  # degree accumulator

    kernel = functools.partial(sage_layer_kernel, deg_col=deg_col,
                               ones_out_col=ones_out_col)

    flops = 2 * n_p * n_p * f_in + 2 * (2 * n_p * f_in * f_out)
    bytes_accessed = (adj_p.size * adj_p.dtype.itemsize
                      + (n_p // tm + 1) * x_p.size * 4
                      + (wst_p.size + wnt_p.size + b_p.size) * 4
                      + n_p * f_out * 4)

    return pl.pallas_call(
        kernel,
        out_shape=jax.ShapeDtypeStruct((n_p, f_out), jnp.float32),
        grid=grid,
        in_specs=[
            pl.BlockSpec((tm, tk), lambda i, k: (i, k)),        # A[dst tile, src tile]
            pl.BlockSpec((tk, f_in), lambda i, k: (k, 0)),      # X rows for aggregation
            pl.BlockSpec((tm, f_in), lambda i, k: (i, 0)),      # X rows for self term
            pl.BlockSpec((f_in, f_out), lambda i, k: (0, 0)),   # W_self^T  (resident)
            pl.BlockSpec((f_in, f_out), lambda i, k: (0, 0)),   # W_neigh^T (resident)
            pl.BlockSpec((1, f_out), lambda i, k: (0, 0)),      # bias
        ],
        out_specs=pl.BlockSpec((tm, f_out), lambda i, k: (i, 0)),
        scratch_shapes=scratch,
        compiler_params=pltpu.CompilerParams(
            dimension_semantics=("parallel", "arbitrary"),
            vmem_limit_bytes=32 * 1024 * 1024,
        ),
        cost_estimate=pl.CostEstimate(
            flops=flops, transcendentals=0, bytes_accessed=bytes_accessed),
    )(adj_p, x_p, x_p, wst_p, wnt_p, b_p)


def graphsage_forward(adj, features, params):
    """GraphSAGE.forward: layer1 -> relu (idempotent) -> layer2."""
    (ws1, wn1, b1), (ws2, wn2, b2) = params
    n = adj.shape[0]
    f_in, f_hid, f_out = features.shape[1], ws1.shape[0], ws2.shape[0]
    f_in_p = _round_up(f_in, LANE)
    f_hid_p = _round_up(f_hid, LANE)
    f_out_p = _round_up(f_out, LANE)

    tm, tk = _pick_tiles(n, max(f_in_p, f_hid_p))
    n_p = _round_up(n, max(tm, tk))

    # Spare padded column used as the degree marker (None => no spare column,
    # the kernel falls back to an explicit in-kernel degree reduction).
    deg_col1 = f_in if f_in < f_in_p else None
    deg_col2 = f_hid if f_hid < f_hid_p else None

    # Zero-pad to lane-dense / MXU-friendly shapes (exactness preserved) and
    # stream the 0/1 adjacency as bf16 (exact, halves HBM bytes on all chips).
    adj_p = jnp.zeros((n_p, n_p), jnp.bfloat16).at[:n, :n].set(
        adj.astype(jnp.bfloat16))
    x_p = jnp.zeros((n_p, f_in_p), jnp.float32).at[:n, :f_in].set(
        features.astype(jnp.float32))
    if deg_col1 is not None:
        x_p = x_p.at[:n, deg_col1].set(1.0)     # degree marker for layer 1

    def pad_wt(w, fi_p, fo_p):      # [Fout, Fin] -> pre-transposed padded [Fi_p, Fo_p]
        fo, fi = w.shape
        return jnp.zeros((fi_p, fo_p), jnp.float32).at[:fi, :fo].set(w.T)

    def pad_b(b, fo_p):
        return jnp.zeros((1, fo_p), jnp.float32).at[0, :b.shape[0]].set(b)

    h = sage_layer_padded(adj_p, x_p,
                          pad_wt(ws1, f_in_p, f_hid_p),
                          pad_wt(wn1, f_in_p, f_hid_p),
                          pad_b(b1, f_hid_p),
                          tm=tm, tk=tk, deg_col=deg_col1, ones_out_col=deg_col2)
    out = sage_layer_padded(adj_p, h,
                            pad_wt(ws2, f_hid_p, f_out_p),
                            pad_wt(wn2, f_hid_p, f_out_p),
                            pad_b(b2, f_out_p),
                            tm=tm, tk=tk, deg_col=deg_col2, ones_out_col=None)
    return out[:n, :f_out]


def init_params(key, input_dim, hidden_dim, output_dim):
    """nn.Linear-style init for W = [W_self | W_neigh] on concat(self, neigh)."""
    k = jax.random.split(key, 6)
    s1 = 1.0 / jnp.sqrt(2.0 * input_dim)
    s2 = 1.0 / jnp.sqrt(2.0 * hidden_dim)
    ws1 = jax.random.uniform(k[0], (hidden_dim, input_dim), jnp.float32, -s1, s1)
    wn1 = jax.random.uniform(k[1], (hidden_dim, input_dim), jnp.float32, -s1, s1)
    b1 = jax.random.uniform(k[2], (hidden_dim,), jnp.float32, -s1, s1)
    ws2 = jax.random.uniform(k[3], (output_dim, hidden_dim), jnp.float32, -s2, s2)
    wn2 = jax.random.uniform(k[4], (output_dim, hidden_dim), jnp.float32, -s2, s2)
    b2 = jax.random.uniform(k[5], (output_dim,), jnp.float32, -s2, s2)
    return (ws1, wn1, b1), (ws2, wn2, b2)


def reference_forward(adj, x, params):
    """Pure-JAX reference for correctness check."""
    (ws1, wn1, b1), (ws2, wn2, b2) = params
    hp = jax.lax.Precision.HIGHEST
    deg = jnp.maximum(adj.sum(axis=1, keepdims=True), 1.0)

    def layer(x, ws, wn, b):
        agg = jnp.dot(adj, x, precision=hp) / deg
        h = (jnp.dot(x, ws.T, precision=hp)
             + jnp.dot(agg, wn.T, precision=hp) + b)
        return jnp.maximum(h, 0.0)

    return layer(layer(x, ws1, wn1, b1), ws2, wn2, b2)


if __name__ == "__main__":
    # Small deterministic problem: 300 nodes (exercises padding to 512 and a
    # (2, 2) tiled grid), input_dim=16, hidden_dim=32, output_dim=8.
    N, input_dim, hidden_dim, output_dim = 300, 16, 32, 8

    key = jax.random.PRNGKey(0)
    k_feat, k_adj, k_param = jax.random.split(key, 3)

    features = jax.random.normal(k_feat, (N, input_dim), jnp.float32)
    # Deterministic random directed graph, ~5% edge density.  A[dst, src] = 1.
    adj = (jax.random.uniform(k_adj, (N, N)) < 0.05).astype(jnp.float32)

    params = init_params(k_param, input_dim, hidden_dim, output_dim)

    fwd = jax.jit(graphsage_forward)
    out = jax.block_until_ready(fwd(adj, features, params))

    ref = reference_forward(adj, features, params)
    assert out.shape == (N, output_dim)
    assert jnp.allclose(out, ref, atol=1e-3, rtol=1e-3), (
        f"mismatch vs reference: max abs err {jnp.max(jnp.abs(out - ref))}")

    print("KERNEL_OK")
</pallas_src>

<mosaic_0001>
module attributes {stable_mosaic.version = 11 : i64} {
  func.func @sage_layer_kernel(%arg0: i32, %arg1: i32, %arg2: memref<256x256xbf16, #tpu.memory_space<vmem>>, %arg3: memref<256x128xf32, #tpu.memory_space<vmem>>, %arg4: memref<256x128xf32, #tpu.memory_space<vmem>>, %arg5: memref<128x128xf32, #tpu.memory_space<vmem>>, %arg6: memref<128x128xf32, #tpu.memory_space<vmem>>, %arg7: memref<1x128xf32, #tpu.memory_space<vmem>>, %arg8: memref<256x128xf32, #tpu.memory_space<vmem>>, %arg9: memref<256x128xf32, #tpu.memory_space<vmem>>) attributes {dimension_semantics = [#tpu.dimension_semantics<parallel>, #tpu.dimension_semantics<arbitrary>], iteration_bounds = array<i64: 2, 2>, scalar_prefetch = 0 : i64, scratch_operands = 1 : i64, tpu.core_type = #tpu.core_type<tc>, window_params = [{transform_indices = @transform_0, window_bounds = array<i64: 256, 256>}, {transform_indices = @transform_1, window_bounds = array<i64: 256, 128>}, {transform_indices = @transform_2, window_bounds = array<i64: 256, 128>}, {pipeline_mode = #tpu.pipeline_mode<synchronous>, transform_indices = @transform_3, window_bounds = array<i64: 128, 128>}, {pipeline_mode = #tpu.pipeline_mode<synchronous>, transform_indices = @transform_4, window_bounds = array<i64: 128, 128>}, {pipeline_mode = #tpu.pipeline_mode<synchronous>, transform_indices = @transform_5, window_bounds = array<i64: 1, 128>}, {transform_indices = @transform_6, window_bounds = array<i64: 256, 128>}]} {
    %c0_i32 = arith.constant 0 : i32
    %0 = arith.cmpi eq, %arg1, %c0_i32 : i32
    %1 = arith.extui %0 : i1 to i32
    %c0_i32_0 = arith.constant 0 : i32
    %2 = arith.cmpi ne, %1, %c0_i32_0 : i32
    scf.if %2 {
      %cst_9 = arith.constant 0.000000e+00 : f32
      %13 = vector.broadcast %cst_9 : f32 to vector<256x128xf32>
      %c0_10 = arith.constant 0 : index
      %c0_11 = arith.constant 0 : index
      %14 = vector.load %arg9[%c0_10, %c0_11] : memref<256x128xf32, #tpu.memory_space<vmem>>, vector<256x128xf32>
      tpu.vector_store %arg9[%c0_10, %c0_11], %13 {strides = array<i32>} : memref<256x128xf32, #tpu.memory_space<vmem>>, vector<256x128xf32>,
    } else {
    }
    %c0 = arith.constant 0 : index
    %c0_1 = arith.constant 0 : index
    %3 = vector.load %arg2[%c0, %c0_1] : memref<256x256xbf16, #tpu.memory_space<vmem>>, vector<256x256xbf16>
    %4 = arith.extf %3 : vector<256x256xbf16> to vector<256x256xf32>
    %c0_2 = arith.constant 0 : index
    %c0_3 = arith.constant 0 : index
    %5 = vector.load %arg9[%c0_2, %c0_3] : memref<256x128xf32, #tpu.memory_space<vmem>>, vector<256x128xf32>
    %c0_4 = arith.constant 0 : index
    %c0_5 = arith.constant 0 : index
    %6 = vector.load %arg3[%c0_4, %c0_5] : memref<256x128xf32, #tpu.memory_space<vmem>>, vector<256x128xf32>
    %cst = arith.constant dense<0.000000e+00> : vector<256x128xf32>
    %7 = tpu.matmul %4, %6, %cst {dimension_numbers = #tpu.dot_dimension_numbers<[1], [0], [0], [1], [0, 0, 1, 1], [], []>} : vector<256x256xf32>, vector<256x128xf32>, vector<256x128xf32> -> vector<256x128xf32>
    %8 = arith.addf %5, %7 : vector<256x128xf32>
    %c0_6 = arith.constant 0 : index
    %c0_7 = arith.constant 0 : index
    %9 = vector.load %arg9[%c0_6, %c0_7] : memref<256x128xf32, #tpu.memory_space<vmem>>, vector<256x128xf32>
    tpu.vector_store %arg9[%c0_6, %c0_7], %8 {strides = array<i32>} : memref<256x128xf32, #tpu.memory_space<vmem>>, vector<256x128xf32>,
    %c1_i32 = arith.constant 1 : i32
    %10 = arith.cmpi eq, %arg1, %c1_i32 : i32
    %11 = arith.extui %10 : i1 to i32
    %c0_i32_8 = arith.constant 0 : i32
    %12 = arith.cmpi ne, %11, %c0_i32_8 : i32
    scf.if %12 {
      %c0_9 = arith.constant 0 : index
      %c0_10 = arith.constant 0 : index
      %13 = vector.load %arg9[%c0_9, %c0_10] : memref<256x128xf32, #tpu.memory_space<vmem>>, vector<256x128xf32>
      %14 = vector.extract_strided_slice %13 {offsets = [0, 32], sizes = [256, 1], strides = [1, 1]} : vector<256x128xf32> to vector<256x1xf32>
      %cst_11 = arith.constant 1.000000e+00 : f32
      %15 = vector.broadcast %cst_11 : f32 to vector<256x1xf32>
      %16 = arith.maximumf %14, %15 : vector<256x1xf32>
      %cst_12 = arith.constant 1.000000e+00 : f32
      %17 = vector.broadcast %cst_12 : f32 to vector<256x1xf32>
      %18 = arith.divf %17, %16 : vector<256x1xf32>
      %19 = vector.broadcast %18 : vector<256x1xf32> to vector<256x128xf32>
      %20 = arith.mulf %13, %19 : vector<256x128xf32>
      %c0_13 = arith.constant 0 : index
      %c0_14 = arith.constant 0 : index
      %21 = vector.load %arg4[%c0_13, %c0_14] : memref<256x128xf32, #tpu.memory_space<vmem>>, vector<256x128xf32>
      %c0_15 = arith.constant 0 : index
      %c0_16 = arith.constant 0 : index
      %22 = vector.load %arg5[%c0_15, %c0_16] : memref<128x128xf32, #tpu.memory_space<vmem>>, vector<128x128xf32>
      %cst_17 = arith.constant dense<0.000000e+00> : vector<256x128xf32>
      %23 = tpu.matmul %21, %22, %cst_17 {dimension_numbers = #tpu.dot_dimension_numbers<[1], [0], [0], [1], [0, 0, 1, 1], [], []>} : vector<256x128xf32>, vector<128x128xf32>, vector<256x128xf32> -> vector<256x128xf32>
      %c0_18 = arith.constant 0 : index
      %c0_19 = arith.constant 0 : index
      %24 = vector.load %arg6[%c0_18, %c0_19] : memref<128x128xf32, #tpu.memory_space<vmem>>, vector<128x128xf32>
      %cst_20 = arith.constant dense<0.000000e+00> : vector<256x128xf32>
      %25 = tpu.matmul %20, %24, %cst_20 {dimension_numbers = #tpu.dot_dimension_numbers<[1], [0], [0], [1], [0, 0, 1, 1], [], []>} : vector<256x128xf32>, vector<128x128xf32>, vector<256x128xf32> -> vector<256x128xf32>
      %26 = arith.addf %23, %25 : vector<256x128xf32>
      %c0_21 = arith.constant 0 : index
      %c0_22 = arith.constant 0 : index
      %27 = vector.load %arg7[%c0_21, %c0_22] : memref<1x128xf32, #tpu.memory_space<vmem>>, vector<1x128xf32>
      %28 = vector.broadcast %27 : vector<1x128xf32> to vector<256x128xf32>
      %29 = arith.addf %26, %28 : vector<256x128xf32>
      %cst_23 = arith.constant 0.000000e+00 : f32
      %30 = vector.broadcast %cst_23 : f32 to vector<256x128xf32>
      %31 = arith.maximumf %29, %30 : vector<256x128xf32>
      %c0_24 = arith.constant 0 : index
      %c0_25 = arith.constant 0 : index
      %32 = vector.load %arg8[%c0_24, %c0_25] : memref<256x128xf32, #tpu.memory_space<vmem>>, vector<256x128xf32>
      tpu.vector_store %arg8[%c0_24, %c0_25], %31 {strides = array<i32>} : memref<256x128xf32, #tpu.memory_space<vmem>>, vector<256x128xf32>,
    } else {
    }
    return
  }
  func.func @transform_0(%arg0: i32, %arg1: i32) -> (i32, i32) {
    %c0_i32 = arith.constant 0 : i32
    return %arg0, %arg1 : i32, i32
  }
  func.func @transform_1(%arg0: i32, %arg1: i32) -> (i32, i32) {
    %c0_i32 = arith.constant 0 : i32
    %c0_i32_0 = arith.constant 0 : i32
    return %arg1, %c0_i32 : i32, i32
  }
  func.func @transform_2(%arg0: i32, %arg1: i32) -> (i32, i32) {
    %c0_i32 = arith.constant 0 : i32
    %c0_i32_0 = arith.constant 0 : i32
    return %arg0, %c0_i32 : i32, i32
  }
  func.func @transform_3(%arg0: i32, %arg1: i32) -> (i32, i32) {
    %c0_i32 = arith.constant 0 : i32
    %c0_i32_0 = arith.constant 0 : i32
    %c0_i32_1 = arith.constant 0 : i32
    return %c0_i32, %c0_i32_0 : i32, i32
  }
  func.func @transform_4(%arg0: i32, %arg1: i32) -> (i32, i32) {
    %c0_i32 = arith.constant 0 : i32
    %c0_i32_0 = arith.constant 0 : i32
    %c0_i32_1 = arith.constant 0 : i32
    return %c0_i32, %c0_i32_0 : i32, i32
  }
  func.func @transform_5(%arg0: i32, %arg1: i32) -> (i32, i32) {
    %c0_i32 = arith.constant 0 : i32
    %c0_i32_0 = arith.constant 0 : i32
    %c0_i32_1 = arith.constant 0 : i32
    return %c0_i32, %c0_i32_0 : i32, i32
  }
  func.func @transform_6(%arg0: i32, %arg1: i32) -> (i32, i32) {
    %c0_i32 = arith.constant 0 : i32
    %c0_i32_0 = arith.constant 0 : i32
    return %arg0, %c0_i32 : i32, i32
  }
}

module attributes {stable_mosaic.version = 11 : i64} {
  func.func @sage_layer_kernel(%arg0: i32, %arg1: i32, %arg2: memref<256x256xbf16, #tpu.memory_space<vmem>>, %arg3: memref<256x128xf32, #tpu.memory_space<vmem>>, %arg4: memref<256x128xf32, #tpu.memory_space<vmem>>, %arg5: memref<128x128xf32, #tpu.memory_space<vmem>>, %arg6: memref<128x128xf32, #tpu.memory_space<vmem>>, %arg7: memref<1x128xf32, #tpu.memory_space<vmem>>, %arg8: memref<256x128xf32, #tpu.memory_space<vmem>>, %arg9: memref<256x128xf32, #tpu.memory_space<vmem>>) attributes {dimension_semantics = [#tpu.dimension_semantics<parallel>, #tpu.dimension_semantics<arbitrary>], iteration_bounds = array<i64: 2, 2>, scalar_prefetch = 0 : i64, scratch_operands = 1 : i64, tpu.core_type = #tpu.core_type<tc>, window_params = [{transform_indices = @transform_0, window_bounds = array<i64: 256, 256>}, {transform_indices = @transform_1, window_bounds = array<i64: 256, 128>}, {transform_indices = @transform_2, window_bounds = array<i64: 256, 128>}, {pipeline_mode = #tpu.pipeline_mode<synchronous>, transform_indices = @transform_3, window_bounds = array<i64: 128, 128>}, {pipeline_mode = #tpu.pipeline_mode<synchronous>, transform_indices = @transform_4, window_bounds = array<i64: 128, 128>}, {pipeline_mode = #tpu.pipeline_mode<synchronous>, transform_indices = @transform_5, window_bounds = array<i64: 1, 128>}, {transform_indices = @transform_6, window_bounds = array<i64: 256, 128>}]} {
    %c0_i32 = arith.constant 0 : i32
    %0 = arith.cmpi eq, %arg1, %c0_i32 : i32
    %1 = arith.extui %0 : i1 to i32
    %c0_i32_0 = arith.constant 0 : i32
    %2 = arith.cmpi ne, %1, %c0_i32_0 : i32
    scf.if %2 {
      %cst_9 = arith.constant 0.000000e+00 : f32
      %13 = vector.broadcast %cst_9 : f32 to vector<256x128xf32>
      %c0_10 = arith.constant 0 : index
      %c0_11 = arith.constant 0 : index
      %14 = vector.load %arg9[%c0_10, %c0_11] : memref<256x128xf32, #tpu.memory_space<vmem>>, vector<256x128xf32>
      tpu.vector_store %arg9[%c0_10, %c0_11], %13 {strides = array<i32>} : memref<256x128xf32, #tpu.memory_space<vmem>>, vector<256x128xf32>,
    } else {
    }
    %c0 = arith.constant 0 : index
    %c0_1 = arith.constant 0 : index
    %3 = vector.load %arg2[%c0, %c0_1] : memref<256x256xbf16, #tpu.memory_space<vmem>>, vector<256x256xbf16>
    %4 = arith.extf %3 : vector<256x256xbf16> to vector<256x256xf32>
    %c0_2 = arith.constant 0 : index
    %c0_3 = arith.constant 0 : index
    %5 = vector.load %arg9[%c0_2, %c0_3] : memref<256x128xf32, #tpu.memory_space<vmem>>, vector<256x128xf32>
    %c0_4 = arith.constant 0 : index
    %c0_5 = arith.constant 0 : index
    %6 = vector.load %arg3[%c0_4, %c0_5] : memref<256x128xf32, #tpu.memory_space<vmem>>, vector<256x128xf32>
    %cst = arith.constant dense<0.000000e+00> : vector<256x128xf32>
    %7 = tpu.matmul %4, %6, %cst {dimension_numbers = #tpu.dot_dimension_numbers<[1], [0], [0], [1], [0, 0, 1, 1], [], []>} : vector<256x256xf32>, vector<256x128xf32>, vector<256x128xf32> -> vector<256x128xf32>
    %8 = arith.addf %5, %7 : vector<256x128xf32>
    %c0_6 = arith.constant 0 : index
    %c0_7 = arith.constant 0 : index
    %9 = vector.load %arg9[%c0_6, %c0_7] : memref<256x128xf32, #tpu.memory_space<vmem>>, vector<256x128xf32>
    tpu.vector_store %arg9[%c0_6, %c0_7], %8 {strides = array<i32>} : memref<256x128xf32, #tpu.memory_space<vmem>>, vector<256x128xf32>,
    %c1_i32 = arith.constant 1 : i32
    %10 = arith.cmpi eq, %arg1, %c1_i32 : i32
    %11 = arith.extui %10 : i1 to i32
    %c0_i32_8 = arith.constant 0 : i32
    %12 = arith.cmpi ne, %11, %c0_i32_8 : i32
    scf.if %12 {
      %c0_9 = arith.constant 0 : index
      %c0_10 = arith.constant 0 : index
      %13 = vector.load %arg9[%c0_9, %c0_10] : memref<256x128xf32, #tpu.memory_space<vmem>>, vector<256x128xf32>
      %14 = vector.extract_strided_slice %13 {offsets = [0, 16], sizes = [256, 1], strides = [1, 1]} : vector<256x128xf32> to vector<256x1xf32>
      %cst_11 = arith.constant 1.000000e+00 : f32
      %15 = vector.broadcast %cst_11 : f32 to vector<256x1xf32>
      %16 = arith.maximumf %14, %15 : vector<256x1xf32>
      %cst_12 = arith.constant 1.000000e+00 : f32
      %17 = vector.broadcast %cst_12 : f32 to vector<256x1xf32>
      %18 = arith.divf %17, %16 : vector<256x1xf32>
      %19 = vector.broadcast %18 : vector<256x1xf32> to vector<256x128xf32>
      %20 = arith.mulf %13, %19 : vector<256x128xf32>
      %c0_13 = arith.constant 0 : index
      %c0_14 = arith.constant 0 : index
      %21 = vector.load %arg4[%c0_13, %c0_14] : memref<256x128xf32, #tpu.memory_space<vmem>>, vector<256x128xf32>
      %c0_15 = arith.constant 0 : index
      %c0_16 = arith.constant 0 : index
      %22 = vector.load %arg5[%c0_15, %c0_16] : memref<128x128xf32, #tpu.memory_space<vmem>>, vector<128x128xf32>
      %cst_17 = arith.constant dense<0.000000e+00> : vector<256x128xf32>
      %23 = tpu.matmul %21, %22, %cst_17 {dimension_numbers = #tpu.dot_dimension_numbers<[1], [0], [0], [1], [0, 0, 1, 1], [], []>} : vector<256x128xf32>, vector<128x128xf32>, vector<256x128xf32> -> vector<256x128xf32>
      %c0_18 = arith.constant 0 : index
      %c0_19 = arith.constant 0 : index
      %24 = vector.load %arg6[%c0_18, %c0_19] : memref<128x128xf32, #tpu.memory_space<vmem>>, vector<128x128xf32>
      %cst_20 = arith.constant dense<0.000000e+00> : vector<256x128xf32>
      %25 = tpu.matmul %20, %24, %cst_20 {dimension_numbers = #tpu.dot_dimension_numbers<[1], [0], [0], [1], [0, 0, 1, 1], [], []>} : vector<256x128xf32>, vector<128x128xf32>, vector<256x128xf32> -> vector<256x128xf32>
      %26 = arith.addf %23, %25 : vector<256x128xf32>
      %c0_21 = arith.constant 0 : index
      %c0_22 = arith.constant 0 : index
      %27 = vector.load %arg7[%c0_21, %c0_22] : memref<1x128xf32, #tpu.memory_space<vmem>>, vector<1x128xf32>
      %28 = vector.broadcast %27 : vector<1x128xf32> to vector<256x128xf32>
      %29 = arith.addf %26, %28 : vector<256x128xf32>
      %cst_23 = arith.constant 0.000000e+00 : f32
      %30 = vector.broadcast %cst_23 : f32 to vector<256x128xf32>
      %31 = arith.maximumf %29, %30 : vector<256x128xf32>
      %32 = tpu.iota {dimensions = array<i32: 1>} : vector<256x128xi32>
      %c32_i32 = arith.constant 32 : i32
      %33 = vector.broadcast %c32_i32 : i32 to vector<256x128xi32>
      %34 = arith.cmpi eq, %32, %33 : vector<256x128xi32>
      %cst_24 = arith.constant 1.000000e+00 : f32
      %35 = vector.broadcast %cst_24 : f32 to vector<256x128xf32>
      %36 = arith.select %34, %35, %31 : vector<256x128xi1>, vector<256x128xf32>
      %c0_25 = arith.constant 0 : index
      %c0_26 = arith.constant 0 : index
      %37 = vector.load %arg8[%c0_25, %c0_26] : memref<256x128xf32, #tpu.memory_space<vmem>>, vector<256x128xf32>
      tpu.vector_store %arg8[%c0_25, %c0_26], %36 {strides = array<i32>} : memref<256x128xf32, #tpu.memory_space<vmem>>, vector<256x128xf32>,
    } else {
    }
    return
  }
  func.func @transform_0(%arg0: i32, %arg1: i32) -> (i32, i32) {
    %c0_i32 = arith.constant 0 : i32
    return %arg0, %arg1 : i32, i32
  }
  func.func @transform_1(%arg0: i32, %arg1: i32) -> (i32, i32) {
    %c0_i32 = arith.constant 0 : i32
    %c0_i32_0 = arith.constant 0 : i32
    return %arg1, %c0_i32 : i32, i32
  }
  func.func @transform_2(%arg0: i32, %arg1: i32) -> (i32, i32) {
    %c0_i32 = arith.constant 0 : i32
    %c0_i32_0 = arith.constant 0 : i32
    return %arg0, %c0_i32 : i32, i32
  }
  func.func @transform_3(%arg0: i32, %arg1: i32) -> (i32, i32) {
    %c0_i32 = arith.constant 0 : i32
    %c0_i32_0 = arith.constant 0 : i32
    %c0_i32_1 = arith.constant 0 : i32
    return %c0_i32, %c0_i32_0 : i32, i32
  }
  func.func @transform_4(%arg0: i32, %arg1: i32) -> (i32, i32) {
    %c0_i32 = arith.constant 0 : i32
    %c0_i32_0 = arith.constant 0 : i32
    %c0_i32_1 = arith.constant 0 : i32
    return %c0_i32, %c0_i32_0 : i32, i32
  }
  func.func @transform_5(%arg0: i32, %arg1: i32) -> (i32, i32) {
    %c0_i32 = arith.constant 0 : i32
    %c0_i32_0 = arith.constant 0 : i32
    %c0_i32_1 = arith.constant 0 : i32
    return %c0_i32, %c0_i32_0 : i32, i32
  }
  func.func @transform_6(%arg0: i32, %arg1: i32) -> (i32, i32) {
    %c0_i32 = arith.constant 0 : i32
    %c0_i32_0 = arith.constant 0 : i32
    return %arg0, %c0_i32 : i32, i32
  }
}

</mosaic_0001>

<bundles_post_ra>
// kernel: graphsage_forward.3
= control target key start
LH: loop header
LB: loop body
LE: loop exit
PB: predicated region body
PF: predicated region fallthrough
CT: control target
= control target key end

     0   :  { %s2676_s21 = smov 0   ;;  %s2678_s22 = smov 0   ;;  %s3350_s0 = inlined_call_operand.vmem [shape: bf16[512,512], index: 0, kind: input, shape index: {}]   ;;  %s3351_s1 = inlined_call_operand.vmem [shape: f32[512,128], index: 1, kind: input, shape index: {}, may-alias: {1,2}]   ;;  %s3352_s2 = inlined_call_operand.vmem [shape: f32[512,128], index: 2, kind: input, shape index: {}, may-alias: {1,2}]   ;;  %s3353_s3 = inlined_call_operand.vmem [shape: f32[128,128], index: 3, kind: input, shape index: {}]   ;;  %s3354_s4 = inlined_call_operand.vmem [shape: f32[128,128], index: 4, kind: input, shape index: {}]   ;;  %s3355_s5 = inlined_call_operand.vmem [shape: f32[1,128], index: 5, kind: input, shape index: {}]   ;;  %s3356_s6 = inlined_call_operand.vmem [shape: f32[512,128], index: 6, kind: output, shape index: {}]  }
   0x1   :  { %s2680_s23 = smov 0   ;;  %s2682_s24 = smov 0  }
   0x2   :  { %s2684_s25 = smov 0   ;;  %s2686_s26 = smov 0  }
   0x3   :  { %s2688_s27 = smov 0  }
   0x4 LB: > { %s25_s28 = sadd.s32 1, %s2628_s25  ;;  %s28_s29 = sadd.s32 1, %s2632_s26  ;;  %s2636_s27 = sphi %s2688_s27, %s16_s27   ;;  %s2632_s26 = sphi %s2686_s26, %s3362_s26   ;;  %s2628_s25 = sphi %s2684_s25, %s3361_s25   ;;  %s2624_s24 = sphi %s2682_s24, %s3360_s24   ;;  %s2620_s23 = sphi %s2680_s23, %s3359_s23   ;;  %s2616_s22 = sphi %s2678_s22, %s3358_s22   ;;  %s2612_s21 = sphi %s2676_s21, %s3357_s21  }
   0x5   : > { %p26_p0 = scmp.ge.s32.totalorder %s25_s28, 2  ;;  %p44_p1 = scmp.ne.s32.totalorder %s2616_s22, %s2612_s21 }
   0x6   : > { %p45_p2 = scmp.eq.s32.totalorder %s2636_s27, 0  ;;  %s37_s9 = sadd.s32 1, %s2616_s22 }
   0x7   : > { %s3364_s28 = smov (%p26_p0, %s25_s28), 0  ;;  %s3366_s29 = smov (!%p26_p0, %s28_s29), %s2632_s26 }
   0x8   : > { %p46_p3 = por %p45_p2, %p44_p1  ;;  %p30_p4 = scmp.ge.s32.totalorder %s3366_s29, 2 }
   0x9   : > { %s33_s30 = ssub.s32 %s2628_s25, %s3364_s28  ;;  %p2005_p6 = scmp.ge.s32.totalorder %s2636_s27, 4 }
   0xa   : > { %s3368_s29 = smov (%p30_p4, %s3366_s29), 0 }
   0xb   : > { %s32_s7 = ssub.s32 %s2632_s26, %s3368_s29  ;;  %220 = sbr.rel (%p2005_p6) target bundleno = 41 (0x29), region = 28 }
   0xc   : > { %s34_s8 = sor.u32 %s33_s30, %s32_s7 }
   0xd   : > { %p35_p5 = scmp.eq.s32.totalorder %s34_s8, 0 }
   0xf   : > { %s2727_s10 = scalar_select %p35_p5, %s2616_s22, %s37_s9  }
  0x12   : > { %223 = sbr.rel (!%p46_p3) target bundleno = 41 (0x29), region = 32  ;;  %s225_s11 = sand.u32 (%p46_p3), 1, %s2616_s22  }
  0x13   : > { %s2008_s12 = sshll.u32 (%p46_p3), %s2628_s25, 1  ;;  %s2006_s13 = sshll.u32 (%p46_p3), %s225_s11, 8 }
  0x14   : > { %s2024_s14 = sshll.u32 (%p46_p3), %s2632_s26, 7  ;;  %s2741_s20 = scalar_lea.vmem (%p46_p3), [#allocation3], %s2006_s13 }
  0x15   : > { %s231_s15 = sadd.s32 (%p46_p3), %s2024_s14, %s2008_s12 }
  0x16   : > { %s2010_s16 = sshll.u32 (%p46_p3), %s231_s15, 2 }
  0x17   : > { %s2736_s19 = scalar_lea.vmem (%p46_p3), %s3350_s0, %s2010_s16 }
  0x18   : > { %v323_v0 = vld [vmem:[%s2736_s19] sm:$0xff] (%p46_p3)  ;;  %v325_v1 = vld [vmem:[%s2736_s19 + $0x10] sm:$0xff] (%p46_p3) }
  0x19   : > { %v327_v2 = vld [vmem:[%s2736_s19 + $0x20] sm:$0xff]  ;;  %324 = vst [vmem:[%s2741_s20] sm:$0xff] %v323_v0  ;;  %326 = vst [vmem:[%s2741_s20 + $0x8] sm:$0xff] %v325_v1  ;;  %v329_v3 = vld [vmem:[%s2736_s19 + $0x30] sm:$0xff] }
  0x1a   : > { %328 = vst [vmem:[%s2741_s20 + $0x10] sm:$0xff] %v327_v2  ;;  %v331_v4 = vld [vmem:[%s2736_s19 + $0x40] sm:$0xff]  ;;  %v333_v5 = vld [vmem:[%s2736_s19 + $0x50] sm:$0xff]  ;;  %330 = vst [vmem:[%s2741_s20 + $0x18] sm:$0xff] %v329_v3 }
  0x1b   : > { %332 = vst [vmem:[%s2741_s20 + $0x20] sm:$0xff] %v331_v4  ;;  %334 = vst [vmem:[%s2741_s20 + $0x28] sm:$0xff] %v333_v5  ;;  %v335_v6 = vld [vmem:[%s2736_s19 + $0x60] sm:$0xff]  ;;  %v337_v7 = vld [vmem:[%s2736_s19 + $0x70] sm:$0xff] }
  0x1c   : > { %v339_v8 = vld [vmem:[%s2736_s19 + $0x80] sm:$0xff]  ;;  %336 = vst [vmem:[%s2741_s20 + $0x30] sm:$0xff] %v335_v6  ;;  %338 = vst [vmem:[%s2741_s20 + $0x38] sm:$0xff] %v337_v7  ;;  %v341_v9 = vld [vmem:[%s2736_s19 + $0x90] sm:$0xff] }
  0x1d   : > { %340 = vst [vmem:[%s2741_s20 + $0x40] sm:$0xff] %v339_v8  ;;  %v343_v10 = vld [vmem:[%s2736_s19 + $0xa0] sm:$0xff]  ;;  %v345_v11 = vld [vmem:[%s2736_s19 + $0xb0] sm:$0xff]  ;;  %342 = vst [vmem:[%s2741_s20 + $0x48] sm:$0xff] %v341_v9 }
  0x1e   : > { %344 = vst [vmem:[%s2741_s20 + $0x50] sm:$0xff] %v343_v10  ;;  %346 = vst [vmem:[%s2741_s20 + $0x58] sm:$0xff] %v345_v11  ;;  %v347_v12 = vld [vmem:[%s2736_s19 + $0xc0] sm:$0xff]  ;;  %v349_v13 = vld [vmem:[%s2736_s19 + $0xd0] sm:$0xff] }
  0x1f   : > { %v351_v14 = vld [vmem:[%s2736_s19 + $0xe0] sm:$0xff]  ;;  %348 = vst [vmem:[%s2741_s20 + $0x60] sm:$0xff] %v347_v12  ;;  %350 = vst [vmem:[%s2741_s20 + $0x68] sm:$0xff] %v349_v13  ;;  %v353_v15 = vld [vmem:[%s2736_s19 + $0xf0] sm:$0xff] }
  0x20   : > { %352 = vst [vmem:[%s2741_s20 + $0x70] sm:$0xff] %v351_v14  ;;  %v355_v16 = vld [vmem:[%s2736_s19 + $0x100] sm:$0xff]  ;;  %v357_v17 = vld [vmem:[%s2736_s19 + $0x110] sm:$0xff]  ;;  %354 = vst [vmem:[%s2741_s20 + $0x78] sm:$0xff] %v353_v15 }
  0x21   : > { %356 = vst [vmem:[%s2741_s20 + $0x80] sm:$0xff] %v355_v16  ;;  %358 = vst [vmem:[%s2741_s20 + $0x88] sm:$0xff] %v357_v17  ;;  %v359_v18 = vld [vmem:[%s2736_s19 + $0x120] sm:$0xff]  ;;  %v361_v19 = vld [vmem:[%s2736_s19 + $0x130] sm:$0xff] }
  0x22   : > { %v363_v20 = vld [vmem:[%s2736_s19 + $0x140] sm:$0xff]  ;;  %360 = vst [vmem:[%s2741_s20 + $0x90] sm:$0xff] %v359_v18  ;;  %362 = vst [vmem:[%s2741_s20 + $0x98] sm:$0xff] %v361_v19  ;;  %v365_v21 = vld [vmem:[%s2736_s19 + $0x150] sm:$0xff] }
  0x23   : > { %364 = vst [vmem:[%s2741_s20 + $0xa0] sm:$0xff] %v363_v20  ;;  %v367_v22 = vld [vmem:[%s2736_s19 + $0x160] sm:$0xff]  ;;  %v369_v23 = vld [vmem:[%s2736_s19 + $0x170] sm:$0xff]  ;;  %366 = vst [vmem:[%s2741_s20 + $0xa8] sm:$0xff] %v365_v21 }
  0x24   : > { %368 = vst [vmem:[%s2741_s20 + $0xb0] sm:$0xff] %v367_v22  ;;  %370 = vst [vmem:[%s2741_s20 + $0xb8] sm:$0xff] %v369_v23  ;;  %v371_v24 = vld [vmem:[%s2736_s19 + $0x180] sm:$0xff]  ;;  %v373_v25 = vld [vmem:[%s2736_s19 + $0x190] sm:$0xff] }
  0x25   : > { %v375_v26 = vld [vmem:[%s2736_s19 + $0x1a0] sm:$0xff]  ;;  %372 = vst [vmem:[%s2741_s20 + $0xc0] sm:$0xff] %v371_v24  ;;  %374 = vst [vmem:[%s2741_s20 + $0xc8] sm:$0xff] %v373_v25  ;;  %v377_v27 = vld [vmem:[%s2736_s19 + $0x1b0] sm:$0xff] }
  0x26   : > { %376 = vst [vmem:[%s2741_s20 + $0xd0] sm:$0xff] %v375_v26  ;;  %v379_v28 = vld [vmem:[%s2736_s19 + $0x1c0] sm:$0xff]  ;;  %v381_v29 = vld [vmem:[%s2736_s19 + $0x1d0] sm:$0xff]  ;;  %378 = vst [vmem:[%s2741_s20 + $0xd8] sm:$0xff] %v377_v27 }
  0x27   : > { %380 = vst [vmem:[%s2741_s20 + $0xe0] sm:$0xff] %v379_v28  ;;  %382 = vst [vmem:[%s2741_s20 + $0xe8] sm:$0xff] %v381_v29  ;;  %v383_v30 = vld [vmem:[%s2736_s19 + $0x1e0] sm:$0xff]  ;;  %v385_v31 = vld [vmem:[%s2736_s19 + $0x1f0] sm:$0xff] }
  0x28   : > { %384 = vst [vmem:[%s2741_s20 + $0xf0] sm:$0xff] %v383_v30  ;;  %386 = vst [vmem:[%s2741_s20 + $0xf8] sm:$0xff] %v385_v31 }
  0x29 PF: > { %p2011_p7 = scmp.ge.s32.totalorder %s2636_s27, 1  ;;  %p409_p8 = scmp.lt.s32.totalorder %s2636_s27, 5 }
  0x2b   : > { %p410_p9 = pnand %p2011_p7, %p409_p8 }
  0x2c   : > { %s416_s30 = sand.u32 (!%p410_p9), 1, %s2612_s21   ;;  %s2013_s7 = sshll.u32 (!%p410_p9), %s2620_s23, 5 }
  0x2d   : > { %413 = sbr.rel (%p410_p9) target bundleno = 815 (0x32f), region = 78  ;;  %s2012_s8 = sshll.u32 (!%p410_p9), %s416_s30, 8 }
  0x2e   : > { %p458_p10 = scmp.lt.s32.totalorder (!%p410_p9), %s2013_s7, 63  ;;  %s2015_s9 = sshll.u32 (!%p410_p9), %s2624_s24, 5 }
  0x2f   : > { %p464_p11 = scmp.lt.s32.totalorder (!%p410_p9), %s2015_s9, 63  ;;  %s2824_s24 = scalar_lea.vmem (!%p410_p9), [#allocation3], %s2012_s8 }
  0x30   : > { %p2019_p12 = scmp.ne.s32.totalorder (!%p410_p9), %s2620_s23, 0 }
  0x34   : > { %s3370_s7 = smov (!%p458_p10, %s2013_s7), 63  ;;  %s3372_s9 = smov (!%p464_p11, %s2015_s9), 63 }
  0x35   : > { %s2014_s11 = sshll.u32 %s3370_s7, 3  ;;  %s2016_s15 = sshll.u32 %s3372_s9, 3  ;;  %v2638_v32 = vmov (!%p2019_p12), 0.0  }
  0x36   : > { %s2812_s14 = scalar_lea.vmem %s3351_s1, %s2014_s11  ;;  %s2817_s18 = scalar_lea.vmem %s3352_s2, %s2016_s15  ;;  %479 = vst [vmem:[#allocation2] sm:$0xff] (!%p2019_p12), %v2638_v32  ;;  %480 = vst [vmem:[#allocation2 + $0x8] sm:$0xff] (!%p2019_p12), %v2638_v32 }
  0x37   : > { %s2822_s20 = scalar_lea.vmem %s3356_s6, %s2016_s15  ;;  %478 = sbr.rel (%p2019_p12) target bundleno = 70 (0x46), region = 86  ;;  %481 = vst [vmem:[#allocation2 + $0x10] sm:$0xff] (!%p2019_p12), %v2638_v32  ;;  %482 = vst [vmem:[#allocation2 + $0x18] sm:$0xff] (!%p2019_p12), %v2638_v32 }
  0x38   : > { %483 = vst [vmem:[#allocation2 + $0x20] sm:$0xff] (!%p2019_p12), %v2638_v32  ;;  %484 = vst [vmem:[#allocation2 + $0x28] sm:$0xff] (!%p2019_p12), %v2638_v32 }
  0x39   : > { %485 = vst [vmem:[#allocation2 + $0x30] sm:$0xff] (!%p2019_p12), %v2638_v32  ;;  %486 = vst [vmem:[#allocation2 + $0x38] sm:$0xff] (!%p2019_p12), %v2638_v32 }
  0x3a   : > { %487 = vst [vmem:[#allocation2 + $0x40] sm:$0xff] (!%p2019_p12), %v2638_v32  ;;  %488 = vst [vmem:[#allocation2 + $0x48] sm:$0xff] (!%p2019_p12), %v2638_v32 }
  0x3b   : > { %489 = vst [vmem:[#allocation2 + $0x50] sm:$0xff] (!%p2019_p12), %v2638_v32  ;;  %490 = vst [vmem:[#allocation2 + $0x58] sm:$0xff] (!%p2019_p12), %v2638_v32 }
  0x3c   : > { %491 = vst [vmem:[#allocation2 + $0x60] sm:$0xff] (!%p2019_p12), %v2638_v32  ;;  %492 = vst [vmem:[#allocation2 + $0x68] sm:$0xff] (!%p2019_p12), %v2638_v32 }
  0x3d   : > { %493 = vst [vmem:[#allocation2 + $0x70] sm:$0xff] (!%p2019_p12), %v2638_v32  ;;  %494 = vst [vmem:[#allocation2 + $0x78] sm:$0xff] (!%p2019_p12), %v2638_v32 }
  0x3e   : > { %495 = vst [vmem:[#allocation2 + $0x80] sm:$0xff] %v2638_v32  ;;  %496 = vst [vmem:[#allocation2 + $0x88] sm:$0xff] %v2638_v32 }
  0x3f   : > { %497 = vst [vmem:[#allocation2 + $0x90] sm:$0xff] %v2638_v32  ;;  %498 = vst [vmem:[#allocation2 + $0x98] sm:$0xff] %v2638_v32 }
  0x40   : > { %499 = vst [vmem:[#allocation2 + $0xa0] sm:$0xff] %v2638_v32  ;;  %500 = vst [vmem:[#allocation2 + $0xa8] sm:$0xff] %v2638_v32 }
  0x41   : > { %501 = vst [vmem:[#allocation2 + $0xb0] sm:$0xff] %v2638_v32  ;;  %502 = vst [vmem:[#allocation2 + $0xb8] sm:$0xff] %v2638_v32 }
  0x42   : > { %503 = vst [vmem:[#allocation2 + $0xc0] sm:$0xff] %v2638_v32  ;;  %504 = vst [vmem:[#allocation2 + $0xc8] sm:$0xff] %v2638_v32 }
  0x43   : > { %505 = vst [vmem:[#allocation2 + $0xd0] sm:$0xff] %v2638_v32  ;;  %506 = vst [vmem:[#allocation2 + $0xd8] sm:$0xff] %v2638_v32 }
  0x44   : > { %507 = vst [vmem:[#allocation2 + $0xe0] sm:$0xff] %v2638_v32  ;;  %508 = vst [vmem:[#allocation2 + $0xe8] sm:$0xff] %v2638_v32 }
  0x45   : > { %509 = vst [vmem:[#allocation2 + $0xf0] sm:$0xff] %v2638_v32  ;;  %510 = vst [vmem:[#allocation2 + $0xf8] sm:$0xff] %v2638_v32 }
  0x46 PF: > { %v639_v33 = vld [vmem:[%s2812_s14] sm:$0xff]  ;;  %v640_v34 = vld [vmem:[%s2812_s14 + $0x8] sm:$0xff]  ;;  %v641_v35 = vld [vmem:[%s2812_s14 + $0x10] sm:$0xff]  ;;  %v2639_v36 = vmov 0.0|0.0   ;;  %p2020_p13 = scmp.ne.s32.totalorder %s2620_s23, 1 }
  0x47   : > { %2281 = vmatprep.subr.bf16.mxu0 %v2639_v36  ;;  %2393 = vmatprep.subr.bf16.mxu1 %v2639_v36  ;;  %v2282_v37 = vpack.c.bf16 %v640_v34, %v639_v33  ;;  %v642_v38 = vld [vmem:[%s2812_s14 + $0x18] sm:$0xff]  ;;  %v643_v40 = vld [vmem:[%s2812_s14 + $0x20] sm:$0xff]  ;;  %v644_v41 = vld [vmem:[%s2812_s14 + $0x28] sm:$0xff] }
  0x48   : > { %v2285_v39 = vpack.c.bf16 %v642_v38, %v641_v35  ;;  %v2288_v42 = vpack.c.bf16 %v644_v41, %v643_v40  ;;  %v645_v43 = vld [vmem:[%s2812_s14 + $0x30] sm:$0xff]  ;;  %v646_v44 = vld [vmem:[%s2812_s14 + $0x38] sm:$0xff]  ;;  %v2842_v45 = vld [vmem:[%s2824_s24] sm:$0xff] }
  0x49   : > { %2283 = vmatpush1.bf16.msra.mxu0 %v2282_v37  ;;  %2409 = vmatpush1.bf16.msra.mxu1 %v2282_v37  ;;  %v2291_v46 = vpack.c.bf16 %v646_v44, %v645_v43  ;;  %v544_v47 = vunpack.c.h.bf16 %v2842_v45  ;;  %v2846_v48 = vld [vmem:[%s2824_s24 + $0x80] sm:$0xff]  ;;  %v648_v50 = vld [vmem:[%s2812_s14 + $0x48] sm:$0xff]  ;;  %v649_v53 = vld [vmem:[%s2812_s14 + $0x50] sm:$0xff]  ;;  %v543_v24 = vunpack.c.l.bf16 %v2842_v45 }
  0x4a   : > { %2284 = vmatprep.subr.bf16.mxu0 %v2639_v36  ;;  %2394 = vmatprep.subr.bf16.mxu1 %v2639_v36  ;;  %v647_v49 = vld [vmem:[%s2812_s14 + $0x40] sm:$0xff]  ;;  %v576_v51 = vunpack.c.h.bf16 %v2846_v48  ;;  %v650_v54 = vld [vmem:[%s2812_s14 + $0x58] sm:$0xff]  ;;  %v652_v57 = vld [vmem:[%s2812_s14 + $0x68] sm:$0xff]  ;;  %v575_v25 = vunpack.c.l.bf16 %v2846_v48 }
  0x4b   : > { %735 = vmatprep.mubr.f32.mxu0 %v544_v47  ;;  %v2294_v52 = vpack.c.bf16 %v648_v50, %v647_v49  ;;  %v2297_v55 = vpack.c.bf16 %v650_v54, %v649_v53  ;;  %v651_v56 = vld [vmem:[%s2812_s14 + $0x60] sm:$0xff]  ;;  %v653_v59 = vld [vmem:[%s2812_s14 + $0x70] sm:$0xff]  ;;  %v654_v60 = vld [vmem:[%s2812_s14 + $0x78] sm:$0xff] }
  0x4c   : > { %815 = vmatprep.mubr.f32.mxu1 %v576_v51  ;;  %v2300_v58 = vpack.c.bf16 %v652_v57, %v651_v56  ;;  %v2303_v61 = vpack.c.bf16 %v654_v60, %v653_v59  ;;  %v655_v62 = vld [vmem:[%s2812_s14 + $0x80] sm:$0xff]  ;;  %v656_v63 = vld [vmem:[%s2812_s14 + $0x88] sm:$0xff]  ;;  %v657_v1 = vld [vmem:[%s2812_s14 + $0x90] sm:$0xff] }
  0x4d   : > { %2286 = vmatpush1.bf16.msra.mxu0 %v2285_v39  ;;  %2410 = vmatpush1.bf16.msra.mxu1 %v2285_v39  ;;  %v2306_v0 = vpack.c.bf16 %v656_v63, %v655_v62  ;;  %v658_v2 = vld [vmem:[%s2812_s14 + $0x98] sm:$0xff]  ;;  %v659_v4 = vld [vmem:[%s2812_s14 + $0xa0] sm:$0xff]  ;;  %v660_v5 = vld [vmem:[%s2812_s14 + $0xa8] sm:$0xff] }
  0x4e   : > { %2287 = vmatprep.subr.bf16.mxu0 %v2639_v36  ;;  %2395 = vmatprep.subr.bf16.mxu1 %v2639_v36  ;;  %v2309_v3 = vpack.c.bf16 %v658_v2, %v657_v1  ;;  %v2312_v6 = vpack.c.bf16 %v660_v5, %v659_v4  ;;  %v661_v7 = vld [vmem:[%s2812_s14 + $0xb0] sm:$0xff]  ;;  %v662_v8 = vld [vmem:[%s2812_s14 + $0xb8] sm:$0xff]  ;;  %v663_v10 = vld [vmem:[%s2812_s14 + $0xc0] sm:$0xff] }
  0x4f   : > { %v2315_v9 = vpack.c.bf16 %v662_v8, %v661_v7  ;;  %v664_v11 = vld [vmem:[%s2812_s14 + $0xc8] sm:$0xff]  ;;  %v665_v13 = vld [vmem:[%s2812_s14 + $0xd0] sm:$0xff]  ;;  %v666_v14 = vld [vmem:[%s2812_s14 + $0xd8] sm:$0xff] }
  0x50   : > { %v2318_v12 = vpack.c.bf16 %v664_v11, %v663_v10  ;;  %v2321_v15 = vpack.c.bf16 %v666_v14, %v665_v13  ;;  %v667_v16 = vld [vmem:[%s2812_s14 + $0xe0] sm:$0xff]  ;;  %v668_v17 = vld [vmem:[%s2812_s14 + $0xe8] sm:$0xff]  ;;  %v669_v19 = vld [vmem:[%s2812_s14 + $0xf0] sm:$0xff] }
  0x51   : > { %2289 = vmatpush1.bf16.msra.mxu0 %v2288_v42  ;;  %2411 = vmatpush1.bf16.msra.mxu1 %v2288_v42  ;;  %v2324_v18 = vpack.c.bf16 %v668_v17, %v667_v16  ;;  %v670_v20 = vld [vmem:[%s2812_s14 + $0xf8] sm:$0xff]  ;;  %v512_v22 = vld [vmem:[%s2824_s24 + $0x8] sm:$0xff]  ;;  %v513_v28 = vld [vmem:[%s2824_s24 + $0x10] sm:$0xff] }
  0x52   : > { %2290 = vmatprep.subr.bf16.mxu0 %v2639_v36  ;;  %2396 = vmatprep.subr.bf16.mxu1 %v2639_v36  ;;  %v2327_v21 = vpack.c.bf16 %v670_v20, %v669_v19  ;;  %v528_v23 = vld [vmem:[%s2824_s24 + $0x88] sm:$0xff]  ;;  %v546_v26 = vunpack.c.h.bf16 %v512_v22  ;;  %v529_v29 = vld [vmem:[%s2824_s24 + $0x90] sm:$0xff]  ;;  %v545_v30 = vunpack.c.l.bf16 %v512_v22  ;;  %v548_v32 = vunpack.c.h.bf16 %v513_v28  ;;  %v514_v34 = vld [vmem:[%s2824_s24 + $0x18] sm:$0xff] }
  0x53   : > { %v578_v27 = vunpack.c.h.bf16 %v528_v23  ;;  %v577_v31 = vunpack.c.l.bf16 %v528_v23  ;;  %v580_v33 = vunpack.c.h.bf16 %v529_v29  ;;  %v530_v35 = vld [vmem:[%s2824_s24 + $0x98] sm:$0xff]  ;;  %v579_v37 = vunpack.c.l.bf16 %v529_v29  ;;  %v515_v40 = vld [vmem:[%s2824_s24 + $0x20] sm:$0xff]  ;;  %v532_v47 = vld [vmem:[%s2824_s24 + $0xa8] sm:$0xff] }
  0x54   : > { %v550_v38 = vunpack.c.h.bf16 %v514_v34  ;;  %v582_v39 = vunpack.c.h.bf16 %v530_v35  ;;  %v531_v41 = vld [vmem:[%s2824_s24 + $0xa0] sm:$0xff]  ;;  %v549_v42 = vunpack.c.l.bf16 %v514_v34  ;;  %v581_v43 = vunpack.c.l.bf16 %v530_v35  ;;  %v533_v53 = vld [vmem:[%s2824_s24 + $0xb0] sm:$0xff]  ;;  %v534_v59 = vld [vmem:[%s2824_s24 + $0xb8] sm:$0xff] }
  0x55   : > { %2292 = vmatpush1.bf16.msra.mxu0 %v2291_v46  ;;  %2412 = vmatpush1.bf16.msra.mxu1 %v2291_v46  ;;  %v552_v44 = vunpack.c.h.bf16 %v515_v40  ;;  %v584_v45 = vunpack.c.h.bf16 %v531_v41  ;;  %v516_v46 = vld [vmem:[%s2824_s24 + $0x28] sm:$0xff]  ;;  %v551_v48 = vunpack.c.l.bf16 %v515_v40  ;;  %v583_v49 = vunpack.c.l.bf16 %v531_v41  ;;  %v535_v1 = vld [vmem:[%s2824_s24 + $0xc0] sm:$0xff]  ;;  %v537_v13 = vld [vmem:[%s2824_s24 + $0xd0] sm:$0xff] }
  0x56   : > { %2293 = vmatprep.subr.bf16.mxu0 %v2639_v36  ;;  %2397 = vmatprep.subr.bf16.mxu1 %v2639_v36  ;;  %v554_v50 = vunpack.c.h.bf16 %v516_v46  ;;  %v586_v51 = vunpack.c.h.bf16 %v532_v47  ;;  %v553_v54 = vunpack.c.l.bf16 %v516_v46  ;;  %v588_v57 = vunpack.c.h.bf16 %v533_v53  ;;  %v536_v7 = vld [vmem:[%s2824_s24 + $0xc8] sm:$0xff]  ;;  %v538_v19 = vld [vmem:[%s2824_s24 + $0xd8] sm:$0xff] }
  0x57   : > { %v590_v63 = vunpack.c.h.bf16 %v534_v59  ;;  %v592_v5 = vunpack.c.h.bf16 %v535_v1  ;;  %v594_v11 = vunpack.c.h.bf16 %v536_v7  ;;  %v596_v17 = vunpack.c.h.bf16 %v537_v13 }
  0x58   : > { %v598_v23 = vunpack.c.h.bf16 %v538_v19 }
  0x59   : > { %2295 = vmatpush1.bf16.msra.mxu0 %v2294_v52  ;;  %2413 = vmatpush1.bf16.msra.mxu1 %v2294_v52  ;;  %v517_v52 = vld [vmem:[%s2824_s24 + $0x30] sm:$0xff] }
  0x5a   : > { %2296 = vmatprep.subr.bf16.mxu0 %v2639_v36  ;;  %2398 = vmatprep.subr.bf16.mxu1 %v2639_v36  ;;  %v556_v56 = vunpack.c.h.bf16 %v517_v52  ;;  %v555_v60 = vunpack.c.l.bf16 %v517_v52 }
  0x5d   : > { %2298 = vmatpush1.bf16.msra.mxu0 %v2297_v55  ;;  %2414 = vmatpush1.bf16.msra.mxu1 %v2297_v55  ;;  %v585_v55 = vunpack.c.l.bf16 %v532_v47 }
  0x5e   : > { %2299 = vmatprep.subr.bf16.mxu0 %v2639_v36  ;;  %2399 = vmatprep.subr.bf16.mxu1 %v2639_v36 }
  0x61   : > { %2301 = vmatpush1.bf16.msra.mxu0 %v2300_v58  ;;  %2415 = vmatpush1.bf16.msra.mxu1 %v2300_v58  ;;  %v518_v58 = vld [vmem:[%s2824_s24 + $0x38] sm:$0xff] }
  0x62   : > { %2302 = vmatprep.subr.bf16.mxu0 %v2639_v36  ;;  %2400 = vmatprep.subr.bf16.mxu1 %v2639_v36  ;;  %v558_v62 = vunpack.c.h.bf16 %v518_v58  ;;  %v557_v2 = vunpack.c.l.bf16 %v518_v58  ;;  %v608_v58 = vld [vmem:[#allocation2 + $0x8] sm:$0xff] }
  0x65   : > { %2304 = vmatpush1.bf16.msra.mxu0 %v2303_v61  ;;  %2416 = vmatpush1.bf16.msra.mxu1 %v2303_v61  ;;  %v587_v61 = vunpack.c.l.bf16 %v533_v53 }
  0x66   : > { %2305 = vmatprep.subr.bf16.mxu0 %v2639_v36  ;;  %2401 = vmatprep.subr.bf16.mxu1 %v2639_v36 }
  0x69   : > { %2307 = vmatpush1.bf16.msra.mxu0 %v2306_v0  ;;  %2417 = vmatpush1.bf16.msra.mxu1 %v2306_v0  ;;  %v519_v0 = vld [vmem:[%s2824_s24 + $0x40] sm:$0xff] }
  0x6a   : > { %2308 = vmatprep.subr.bf16.mxu0 %v2639_v36  ;;  %2402 = vmatprep.subr.bf16.mxu1 %v2639_v36  ;;  %v560_v4 = vunpack.c.h.bf16 %v519_v0  ;;  %v559_v8 = vunpack.c.l.bf16 %v519_v0 }
  0x6d   : > { %2310 = vmatpush1.bf16.msra.mxu0 %v2309_v3  ;;  %2418 = vmatpush1.bf16.msra.mxu1 %v2309_v3  ;;  %v589_v3 = vunpack.c.l.bf16 %v534_v59  ;;  %v624_v59 = vld [vmem:[#allocation2 + $0x88] sm:$0xff] }
  0x6e   : > { %2311 = vmatprep.subr.bf16.mxu0 %v2639_v36  ;;  %2403 = vmatprep.subr.bf16.mxu1 %v2639_v36 }
  0x71   : > { %2313 = vmatpush1.bf16.msra.mxu0 %v2312_v6  ;;  %2419 = vmatpush1.bf16.msra.mxu1 %v2312_v6  ;;  %v520_v6 = vld [vmem:[%s2824_s24 + $0x48] sm:$0xff] }
  0x72   : > { %2314 = vmatprep.subr.bf16.mxu0 %v2639_v36  ;;  %2404 = vmatprep.subr.bf16.mxu1 %v2639_v36  ;;  %v562_v10 = vunpack.c.h.bf16 %v520_v6  ;;  %v561_v14 = vunpack.c.l.bf16 %v520_v6 }
  0x75   : > { %2316 = vmatpush1.bf16.msra.mxu0 %v2315_v9  ;;  %2420 = vmatpush1.bf16.msra.mxu1 %v2315_v9  ;;  %v591_v9 = vunpack.c.l.bf16 %v535_v1 }
  0x76   : > { %2317 = vmatprep.subr.bf16.mxu0 %v2639_v36  ;;  %2405 = vmatprep.subr.bf16.mxu1 %v2639_v36 }
  0x79   : > { %2319 = vmatpush1.bf16.msra.mxu0 %v2318_v12  ;;  %2421 = vmatpush1.bf16.msra.mxu1 %v2318_v12  ;;  %v521_v12 = vld [vmem:[%s2824_s24 + $0x50] sm:$0xff] }
  0x7a   : > { %2320 = vmatprep.subr.bf16.mxu0 %v2639_v36  ;;  %2406 = vmatprep.subr.bf16.mxu1 %v2639_v36  ;;  %v564_v16 = vunpack.c.h.bf16 %v521_v12  ;;  %v563_v20 = vunpack.c.l.bf16 %v521_v12 }
  0x7d   : > { %2322 = vmatpush1.bf16.msra.mxu0 %v2321_v15  ;;  %2422 = vmatpush1.bf16.msra.mxu1 %v2321_v15  ;;  %v593_v15 = vunpack.c.l.bf16 %v536_v7 }
  0x7e   : > { %2323 = vmatprep.subr.bf16.mxu0 %v2639_v36  ;;  %2407 = vmatprep.subr.bf16.mxu1 %v2639_v36 }
  0x81   : > { %2325 = vmatpush1.bf16.msra.mxu0 %v2324_v18  ;;  %2423 = vmatpush1.bf16.msra.mxu1 %v2324_v18  ;;  %v522_v18 = vld [vmem:[%s2824_s24 + $0x58] sm:$0xff] }
  0x82   : > { %2326 = vmatprep.subr.bf16.mxu0 %v2639_v36  ;;  %2408 = vmatprep.subr.bf16.mxu1 %v2639_v36  ;;  %v547_v36 = vunpack.c.l.bf16 %v513_v28  ;;  %v566_v22 = vunpack.c.h.bf16 %v522_v18 }
  0x85   : > { %2328 = vmatpush1.bf16.msra.mxu0 %v2327_v21  ;;  %2424 = vmatpush1.bf16.msra.mxu1 %v2327_v21  ;;  %v595_v21 = vunpack.c.l.bf16 %v537_v13 }
  0x88   : > { %736 = vmatmul.mubr.f32.vlgmr.msra.gmra.mrb[0].mxu0 %v543_v24  ;;  %816 = vmatmul.mubr.f32.vlgmr.msra.gmra.mrb[0].mxu1 %v575_v25  ;;  %v523_v24 = vld [vmem:[%s2824_s24 + $0x60] sm:$0xff] }
  0x89   : > { %740 = vmatprep.mubr.f32.mxu0 %v546_v26  ;;  %820 = vmatprep.mubr.f32.mxu1 %v578_v27  ;;  %v539_v25 = vld [vmem:[%s2824_s24 + $0xe0] sm:$0xff]  ;;  %v565_v26 = vunpack.c.l.bf16 %v522_v18  ;;  %v597_v27 = vunpack.c.l.bf16 %v538_v19  ;;  %v568_v28 = vunpack.c.h.bf16 %v523_v24 }
  0x8a   : > { %v600_v29 = vunpack.c.h.bf16 %v539_v25  ;;  %v611_v18 = vld [vmem:[#allocation2 + $0x20] sm:$0xff] }
  0x8b   : > { %v627_v19 = vld [vmem:[#allocation2 + $0xa0] sm:$0xff] }
  0x8c   : > { %741 = vmatmul.mubr.f32.gmra.mrb[2].mxu0 %v545_v30  ;;  %821 = vmatmul.mubr.f32.gmra.mrb[2].mxu1 %v577_v31  ;;  %v524_v30 = vld [vmem:[%s2824_s24 + $0x68] sm:$0xff] }
  0x8d   : > { %745 = vmatprep.mubr.f32.mxu0 %v548_v32  ;;  %825 = vmatprep.mubr.f32.mxu1 %v580_v33  ;;  %v540_v31 = vld [vmem:[%s2824_s24 + $0xe8] sm:$0xff]  ;;  %v567_v32 = vunpack.c.l.bf16 %v523_v24  ;;  %v599_v33 = vunpack.c.l.bf16 %v539_v25  ;;  %v570_v34 = vunpack.c.h.bf16 %v524_v30 }
  0x8e   : > { %v602_v35 = vunpack.c.h.bf16 %v540_v31 }
  0x90   : > { %746 = vmatmul.mubr.f32.gmra.mrb[4].mxu0 %v547_v36  ;;  %826 = vmatmul.mubr.f32.gmra.mrb[4].mxu1 %v579_v37  ;;  %v525_v36 = vld [vmem:[%s2824_s24 + $0x70] sm:$0xff] }
  0x91   : > { %750 = vmatprep.mubr.f32.mxu0 %v550_v38  ;;  %830 = vmatprep.mubr.f32.mxu1 %v582_v39  ;;  %v541_v37 = vld [vmem:[%s2824_s24 + $0xf0] sm:$0xff]  ;;  %v569_v38 = vunpack.c.l.bf16 %v524_v30  ;;  %v601_v39 = vunpack.c.l.bf16 %v540_v31  ;;  %v572_v40 = vunpack.c.h.bf16 %v525_v36 }
  0x92   : > { %v604_v41 = vunpack.c.h.bf16 %v541_v37 }
  0x94   : > { %751 = vmatmul.mubr.f32.gmra.mrb[6].mxu0 %v549_v42  ;;  %831 = vmatmul.mubr.f32.gmra.mrb[6].mxu1 %v581_v43  ;;  %v526_v42 = vld [vmem:[%s2824_s24 + $0x78] sm:$0xff] }
  0x95   : > { %755 = vmatprep.mubr.f32.mxu0 %v552_v44  ;;  %835 = vmatprep.mubr.f32.mxu1 %v584_v45  ;;  %v542_v43 = vld [vmem:[%s2824_s24 + $0xf8] sm:$0xff]  ;;  %v571_v44 = vunpack.c.l.bf16 %v525_v36  ;;  %v603_v45 = vunpack.c.l.bf16 %v541_v37  ;;  %v574_v46 = vunpack.c.h.bf16 %v526_v42 }
  0x96   : > { %v606_v47 = vunpack.c.h.bf16 %v542_v43 }
  0x98   : > { %756 = vmatmul.mubr.f32.gmra.mrb[8].mxu0 %v551_v48  ;;  %836 = vmatmul.mubr.f32.gmra.mrb[8].mxu1 %v583_v49  ;;  %v573_v48 = vunpack.c.l.bf16 %v526_v42  ;;  %v605_v49 = vunpack.c.l.bf16 %v542_v43  ;;  %v614_v42 = vld [vmem:[#allocation2 + $0x38] sm:$0xff] }
  0x99   : > { %760 = vmatprep.mubr.f32.mxu0 %v554_v50  ;;  %840 = vmatprep.mubr.f32.mxu1 %v586_v51  ;;  %v607_v50 = vld [vmem:[#allocation2] sm:$0xff]  ;;  %v630_v43 = vld [vmem:[#allocation2 + $0xb8] sm:$0xff] }
  0x9a   : > { %v623_v51 = vld [vmem:[#allocation2 + $0x80] sm:$0xff] }
  0x9c   : > { %761 = vmatmul.mubr.f32.gmra.mrb[10].mxu0 %v553_v54  ;;  %841 = vmatmul.mubr.f32.gmra.mrb[10].mxu1 %v585_v55 }
  0x9d   : > { %765 = vmatprep.mubr.f32.mxu0 %v556_v56  ;;  %845 = vmatprep.mubr.f32.mxu1 %v588_v57 }
  0xa0   : > { %766 = vmatmul.mubr.f32.gmra.mrb[12].mxu0 %v555_v60  ;;  %846 = vmatmul.mubr.f32.gmra.mrb[12].mxu1 %v587_v61 }
  0xa1   : > { %770 = vmatprep.mubr.f32.mxu0 %v558_v62  ;;  %850 = vmatprep.mubr.f32.mxu1 %v590_v63 }
  0xa4   : > { %771 = vmatmul.mubr.f32.gmra.mrb[14].mxu0 %v557_v2  ;;  %851 = vmatmul.mubr.f32.gmra.mrb[14].mxu1 %v589_v3  ;;  %v609_v2 = vld [vmem:[#allocation2 + $0x10] sm:$0xff] }
  0xa5   : > { %775 = vmatprep.mubr.f32.mxu0 %v560_v4  ;;  %855 = vmatprep.mubr.f32.mxu1 %v592_v5  ;;  %v625_v3 = vld [vmem:[#allocation2 + $0x90] sm:$0xff] }
  0xa8   : > { %776 = vmatmul.mubr.f32.gmra.mrb[16].mxu0 %v559_v8  ;;  %856 = vmatmul.mubr.f32.gmra.mrb[16].mxu1 %v591_v9 }
  0xa9   : > { %780 = vmatprep.mubr.f32.mxu0 %v562_v10  ;;  %860 = vmatprep.mubr.f32.mxu1 %v594_v11  ;;  %v610_v10 = vld [vmem:[#allocation2 + $0x18] sm:$0xff] }
  0xaa   : > { %v626_v11 = vld [vmem:[#allocation2 + $0x98] sm:$0xff] }
  0xac   : > { %781 = vmatmul.mubr.f32.gmra.mrb[18].mxu0 %v561_v14  ;;  %861 = vmatmul.mubr.f32.gmra.mrb[18].mxu1 %v593_v15 }
  0xad   : > { %785 = vmatprep.mubr.f32.mxu0 %v564_v16  ;;  %865 = vmatprep.mubr.f32.mxu1 %v596_v17 }
  0xb0   : > { %786 = vmatmul.mubr.f32.gmra.mrb[20].mxu0 %v563_v20  ;;  %866 = vmatmul.mubr.f32.gmra.mrb[20].mxu1 %v595_v21 }
  0xb1   : > { %790 = vmatprep.mubr.f32.mxu0 %v566_v22  ;;  %870 = vmatprep.mubr.f32.mxu1 %v598_v23 }
  0xb4   : > { %791 = vmatmul.mubr.f32.gmra.mrb[22].mxu0 %v565_v26  ;;  %871 = vmatmul.mubr.f32.gmra.mrb[22].mxu1 %v597_v27  ;;  %v612_v26 = vld [vmem:[#allocation2 + $0x28] sm:$0xff] }
  0xb5   : > { %795 = vmatprep.mubr.f32.mxu0 %v568_v28  ;;  %875 = vmatprep.mubr.f32.mxu1 %v600_v29  ;;  %v628_v27 = vld [vmem:[#allocation2 + $0xa8] sm:$0xff] }
  0xb8   : > { %796 = vmatmul.mubr.f32.gmra.mrb[24].mxu0 %v567_v32  ;;  %876 = vmatmul.mubr.f32.gmra.mrb[24].mxu1 %v599_v33 }
  0xb9   : > { %800 = vmatprep.mubr.f32.mxu0 %v570_v34  ;;  %880 = vmatprep.mubr.f32.mxu1 %v602_v35  ;;  %v613_v34 = vld [vmem:[#allocation2 + $0x30] sm:$0xff] }
  0xba   : > { %v629_v35 = vld [vmem:[#allocation2 + $0xb0] sm:$0xff] }
  0xbc   : > { %801 = vmatmul.mubr.f32.gmra.mrb[26].mxu0 %v569_v38  ;;  %881 = vmatmul.mubr.f32.gmra.mrb[26].mxu1 %v601_v39 }
  0xbd   : > { %805 = vmatprep.mubr.f32.mxu0 %v572_v40  ;;  %885 = vmatprep.mubr.f32.mxu1 %v604_v41 }
  0xc0   : > { %806 = vmatmul.mubr.f32.gmra.mrb[28].mxu0 %v571_v44  ;;  %886 = vmatmul.mubr.f32.gmra.mrb[28].mxu1 %v603_v45 }
  0xc1   : > { %810 = vmatprep.mubr.f32.mxu0 %v574_v46  ;;  %890 = vmatprep.mubr.f32.mxu1 %v606_v47 }
  0xc4   : > { %811 = vmatmul.mubr.f32.gmra.mrb[30].mxu0 %v573_v48  ;;  %891 = vmatmul.mubr.f32.gmra.mrb[30].mxu1 %v605_v49 }
 0x15b   : > { %v737_v52 = vpop.f32.mrb[0].mxu0  ;;  %v817_v53 = vpop.f32.mrb[0].mxu1 }
 0x15c   : > { %v896_v54 = vadd.f32 %v737_v52, %v607_v50  ;;  %v912_v55 = vadd.f32 %v817_v53, %v623_v51  ;;  %v739_v56 = vpop.f32.mrb[1].mxu0  ;;  %v819_v57 = vpop.f32.mrb[1].mxu1  ;;  %v615_v50 = vld [vmem:[#allocation2 + $0x40] sm:$0xff] }
 0x15d   : > { %v631_v51 = vld [vmem:[#allocation2 + $0xc0] sm:$0xff] }
 0x15e   : > { %928 = vst [vmem:[#allocation2] sm:$0xff] %v896_v54  ;;  %944 = vst [vmem:[#allocation2 + $0x80] sm:$0xff] %v912_v55 }
 0x15f   : > { %v742_v60 = vpop.f32.mrb[2].mxu0  ;;  %v822_v61 = vpop.f32.mrb[2].mxu1 }
 0x160   : > { %v897_v62 = vadd.f32 %v742_v60, %v608_v58  ;;  %v913_v63 = vadd.f32 %v822_v61, %v624_v59  ;;  %v744_v0 = vpop.f32.mrb[3].mxu0  ;;  %v824_v1 = vpop.f32.mrb[3].mxu1  ;;  %v616_v58 = vld [vmem:[#allocation2 + $0x48] sm:$0xff] }
 0x161   : > { %v632_v59 = vld [vmem:[#allocation2 + $0xc8] sm:$0xff] }
 0x162   : > { %929 = vst [vmem:[#allocation2 + $0x8] sm:$0xff] %v897_v62  ;;  %945 = vst [vmem:[#allocation2 + $0x88] sm:$0xff] %v913_v63 }
 0x163   : > { %v747_v4 = vpop.f32.mrb[4].mxu0  ;;  %v827_v5 = vpop.f32.mrb[4].mxu1 }
 0x164   : > { %v898_v6 = vadd.f32 %v747_v4, %v609_v2  ;;  %v914_v7 = vadd.f32 %v827_v5, %v625_v3  ;;  %v749_v8 = vpop.f32.mrb[5].mxu0  ;;  %v829_v9 = vpop.f32.mrb[5].mxu1  ;;  %v617_v2 = vld [vmem:[#allocation2 + $0x50] sm:$0xff] }
 0x165   : > { %v633_v3 = vld [vmem:[#allocation2 + $0xd0] sm:$0xff] }
 0x166   : > { %930 = vst [vmem:[#allocation2 + $0x10] sm:$0xff] %v898_v6  ;;  %946 = vst [vmem:[#allocation2 + $0x90] sm:$0xff] %v914_v7 }
 0x167   : > { %v752_v12 = vpop.f32.mrb[6].mxu0  ;;  %v832_v13 = vpop.f32.mrb[6].mxu1 }
 0x168   : > { %v899_v14 = vadd.f32 %v752_v12, %v610_v10  ;;  %v915_v15 = vadd.f32 %v832_v13, %v626_v11  ;;  %v754_v16 = vpop.f32.mrb[7].mxu0  ;;  %v834_v17 = vpop.f32.mrb[7].mxu1  ;;  %v618_v10 = vld [vmem:[#allocation2 + $0x58] sm:$0xff] }
 0x169   : > { %v634_v11 = vld [vmem:[#allocation2 + $0xd8] sm:$0xff] }
 0x16a   : > { %931 = vst [vmem:[#allocation2 + $0x18] sm:$0xff] %v899_v14  ;;  %947 = vst [vmem:[#allocation2 + $0x98] sm:$0xff] %v915_v15 }
 0x16b   : > { %v757_v20 = vpop.f32.mrb[8].mxu0  ;;  %v837_v21 = vpop.f32.mrb[8].mxu1 }
 0x16c   : > { %v900_v22 = vadd.f32 %v757_v20, %v611_v18  ;;  %v916_v23 = vadd.f32 %v837_v21, %v627_v19  ;;  %v759_v24 = vpop.f32.mrb[9].mxu0  ;;  %v839_v25 = vpop.f32.mrb[9].mxu1  ;;  %v619_v18 = vld [vmem:[#allocation2 + $0x60] sm:$0xff] }
 0x16d   : > { %v635_v19 = vld [vmem:[#allocation2 + $0xe0] sm:$0xff] }
 0x16e   : > { %932 = vst [vmem:[#allocation2 + $0x20] sm:$0xff] %v900_v22  ;;  %948 = vst [vmem:[#allocation2 + $0xa0] sm:$0xff] %v916_v23 }
 0x16f   : > { %v762_v28 = vpop.f32.mrb[10].mxu0  ;;  %v842_v29 = vpop.f32.mrb[10].mxu1 }
 0x170   : > { %v901_v30 = vadd.f32 %v762_v28, %v612_v26  ;;  %v917_v31 = vadd.f32 %v842_v29, %v628_v27  ;;  %v764_v32 = vpop.f32.mrb[11].mxu0  ;;  %v844_v33 = vpop.f32.mrb[11].mxu1  ;;  %v620_v26 = vld [vmem:[#allocation2 + $0x68] sm:$0xff] }
 0x171   : > { %v636_v27 = vld [vmem:[#allocation2 + $0xe8] sm:$0xff] }
 0x172   : > { %933 = vst [vmem:[#allocation2 + $0x28] sm:$0xff] %v901_v30  ;;  %949 = vst [vmem:[#allocation2 + $0xa8] sm:$0xff] %v917_v31 }
 0x173   : > { %v767_v36 = vpop.f32.mrb[12].mxu0  ;;  %v847_v37 = vpop.f32.mrb[12].mxu1 }
 0x174   : > { %v902_v38 = vadd.f32 %v767_v36, %v613_v34  ;;  %v918_v39 = vadd.f32 %v847_v37, %v629_v35  ;;  %v769_v40 = vpop.f32.mrb[13].mxu0  ;;  %v849_v41 = vpop.f32.mrb[13].mxu1  ;;  %v621_v34 = vld [vmem:[#allocation2 + $0x70] sm:$0xff] }
 0x175   : > { %v637_v35 = vld [vmem:[#allocation2 + $0xf0] sm:$0xff] }
 0x176   : > { %934 = vst [vmem:[#allocation2 + $0x30] sm:$0xff] %v902_v38  ;;  %950 = vst [vmem:[#allocation2 + $0xb0] sm:$0xff] %v918_v39 }
 0x177   : > { %v772_v44 = vpop.f32.mrb[14].mxu0  ;;  %v852_v45 = vpop.f32.mrb[14].mxu1 }
 0x178   : > { %v903_v46 = vadd.f32 %v772_v44, %v614_v42  ;;  %v919_v47 = vadd.f32 %v852_v45, %v630_v43  ;;  %v774_v48 = vpop.f32.mrb[15].mxu0  ;;  %v854_v49 = vpop.f32.mrb[15].mxu1  ;;  %v622_v42 = vld [vmem:[#allocation2 + $0x78] sm:$0xff] }
 0x179   : > { %v638_v43 = vld [vmem:[#allocation2 + $0xf8] sm:$0xff] }
 0x17a   : > { %935 = vst [vmem:[#allocation2 + $0x38] sm:$0xff] %v903_v46  ;;  %951 = vst [vmem:[#allocation2 + $0xb8] sm:$0xff] %v919_v47 }
 0x17b   : > { %v777_v52 = vpop.f32.mrb[16].mxu0  ;;  %v857_v53 = vpop.f32.mrb[16].mxu1 }
 0x17c   : > { %v904_v54 = vadd.f32 %v777_v52, %v615_v50  ;;  %v920_v55 = vadd.f32 %v857_v53, %v631_v51  ;;  %v779_v56 = vpop.f32.mrb[17].mxu0  ;;  %v859_v57 = vpop.f32.mrb[17].mxu1  ;;  %v2932_v50 = vld [vmem:[#allocation2 + $0x10] sm:$0xff] (!%p2020_p13)  ;;  %v2934_v51 = vld [vmem:[#allocation2] sm:$0xff] (!%p2020_p13)  ;;  %v2936_v52 = vld [vmem:[#allocation2 + $0x18] sm:$0xff] (!%p2020_p13)  ;;  %v2640_v53 = vmov (!%p2020_p13), 32  }
 0x17d   : > { %2517 = vset.pattern.permute.xlu1 (!%p2020_p13), %v2640_v53  ;;  %2516 = vset.pattern.permute.xlu0 (!%p2020_p13), %v2640_v53  ;;  %v999_v56 = vmax.f32 (!%p2020_p13), %v2936_v52, 1.0  ;;  %v2941_v57 = vld [vmem:[#allocation2 + $0x8] sm:$0xff] (!%p2020_p13) }
 0x17e   : > { %936 = vst [vmem:[#allocation2 + $0x40] sm:$0xff] %v904_v54  ;;  %952 = vst [vmem:[#allocation2 + $0xc0] sm:$0xff] %v920_v55  ;;  %v998_v54 = vmax.f32 (!%p2020_p13), %v2932_v50, 1.0  ;;  %v996_v55 = vmax.f32 (!%p2020_p13), %v2934_v51, 1.0  ;;  %v1341_v53 = vld [vmem:[%s3354_s4 + $0x48] sm:$0xff] (!%p2020_p13) }
 0x17f   : > { %v782_v60 = vpop.f32.mrb[18].mxu0  ;;  %v862_v61 = vpop.f32.mrb[18].mxu1 }
 0x180   : > { %v905_v62 = vadd.f32 %v782_v60, %v616_v58  ;;  %v921_v63 = vadd.f32 %v862_v61, %v632_v59  ;;  %v784_v0 = vpop.f32.mrb[19].mxu0  ;;  %v864_v1 = vpop.f32.mrb[19].mxu1  ;;  %v997_v58 = vmax.f32 (!%p2020_p13), %v2941_v57, 1.0  ;;  %v2944_v59 = vld [vmem:[#allocation2 + $0x28] sm:$0xff] (!%p2020_p13)  ;;  %2518 = vrcp.f32 (!%p2020_p13), %v998_v54  ;;  %v2946_v60 = vld [vmem:[#allocation2 + $0x20] sm:$0xff] (!%p2020_p13) }
 0x181   : > { %2520 = vrcp.f32 (!%p2020_p13), %v996_v55  ;;  %v1001_v61 = vmax.f32 (!%p2020_p13), %v2944_v59, 1.0  ;;  %v2952_v0 = vld [vmem:[#allocation2 + $0x30] sm:$0xff] (!%p2020_p13) }
 0x182   : > { %937 = vst [vmem:[#allocation2 + $0x48] sm:$0xff] %v905_v62  ;;  %953 = vst [vmem:[#allocation2 + $0xc8] sm:$0xff] %v921_v63  ;;  %2522 = vrcp.f32 (!%p2020_p13), %v999_v56  ;;  %v1000_v62 = vmax.f32 (!%p2020_p13), %v2946_v60, 1.0  ;;  %v2950_v63 = vld [vmem:[#allocation2 + $0x38] sm:$0xff] (!%p2020_p13) }
 0x183   : > { %v787_v4 = vpop.f32.mrb[20].mxu0  ;;  %v867_v5 = vpop.f32.mrb[20].mxu1  ;;  %2524 = vrcp.f32 (!%p2020_p13), %v997_v58  ;;  %v1003_v1 = vmax.f32 (!%p2020_p13), %v2950_v63, 1.0 }
 0x184   : > { %v906_v6 = vadd.f32 %v787_v4, %v617_v2  ;;  %v922_v7 = vadd.f32 %v867_v5, %v633_v3  ;;  %v789_v8 = vpop.f32.mrb[21].mxu0  ;;  %v869_v9 = vpop.f32.mrb[21].mxu1  ;;  %2526 = vrcp.f32 (!%p2020_p13), %v1001_v61  ;;  %v1002_v2 = vmax.f32 (!%p2020_p13), %v2952_v0, 1.0  ;;  %v1316_v5 = vld [vmem:[%s3353_s3] sm:$0xff] (!%p2020_p13)  ;;  %v3040_v61 = vld [vmem:[#allocation2 + $0x88] sm:$0xff] (!%p2020_p13) }
 0x185   : > { %2528 = vrcp.f32 (!%p2020_p13), %v1000_v62  ;;  %v2958_v4 = vld [vmem:[#allocation2 + $0x40] sm:$0xff] (!%p2020_p13)  ;;  %v1333_v8 = vld [vmem:[%s3354_s4 + $0x8] sm:$0xff] (!%p2020_p13) }
 0x186   : > { %938 = vst [vmem:[#allocation2 + $0x50] sm:$0xff] %v906_v6  ;;  %954 = vst [vmem:[#allocation2 + $0xd0] sm:$0xff] %v922_v7  ;;  %v1317_v6 = vld [vmem:[%s3353_s3 + $0x8] sm:$0xff] (!%p2020_p13)  ;;  %v1332_v7 = vld [vmem:[%s3354_s4] sm:$0xff] (!%p2020_p13)  ;;  %2530 = vrcp.f32 (!%p2020_p13), %v1003_v1 }
 0x187   : > { %v792_v12 = vpop.f32.mrb[22].mxu0  ;;  %v872_v13 = vpop.f32.mrb[22].mxu1  ;;  %v2361_v9 = vpack.c.bf16 (!%p2020_p13), %v1317_v6, %v1316_v5  ;;  %2532 = vrcp.f32 (!%p2020_p13), %v1002_v2  ;;  %v1326_v2 = vld [vmem:[%s3353_s3 + $0x50] sm:$0xff] (!%p2020_p13)  ;;  %v1327_v6 = vld [vmem:[%s3353_s3 + $0x58] sm:$0xff] (!%p2020_p13) }
 0x188   : > { %v907_v14 = vadd.f32 %v792_v12, %v618_v10  ;;  %v923_v15 = vadd.f32 %v872_v13, %v634_v11  ;;  %v794_v16 = vpop.f32.mrb[23].mxu0  ;;  %v874_v17 = vpop.f32.mrb[23].mxu1  ;;  %v2329_v10 = vpack.c.bf16 (!%p2020_p13), %v1333_v8, %v1332_v7  ;;  %v1318_v11 = vld [vmem:[%s3353_s3 + $0x10] sm:$0xff] (!%p2020_p13)  ;;  %v1319_v12 = vld [vmem:[%s3353_s3 + $0x18] sm:$0xff] (!%p2020_p13) }
 0x189   : > { %v2956_v3 = vld [vmem:[#allocation2 + $0x48] sm:$0xff] (!%p2020_p13)  ;;  %v1334_v13 = vld [vmem:[%s3354_s4 + $0x10] sm:$0xff] (!%p2020_p13)  ;;  %v2365_v17 = vpack.c.bf16 (!%p2020_p13), %v1319_v12, %v1318_v11  ;;  %2362 = vmatprep.subr.bf16.mxu0 (!%p2020_p13), %v2361_v9  ;;  %v1343_v8 = vld [vmem:[%s3354_s4 + $0x58] sm:$0xff] (!%p2020_p13)  ;;  %v1013_v12 = vmax.f32 (!%p2020_p13), %v3040_v61, 1.0 }
 0x18a   : > { %939 = vst [vmem:[#allocation2 + $0x58] sm:$0xff] %v907_v14  ;;  %955 = vst [vmem:[#allocation2 + $0xd8] sm:$0xff] %v923_v15  ;;  %v2519_v14 = vpop.eup (!%p2020_p13), %2518  ;;  %v1005_v15 = vmax.f32 (!%p2020_p13), %v2956_v3, 1.0  ;;  %2330 = vmatprep.subr.bf16.mxu1 (!%p2020_p13), %v2329_v10  ;;  %2364 = vmatpush3.bf16.msra.mxu0 (!%p2020_p13), %v2361_v9  ;;  %v1342_v7 = vld [vmem:[%s3354_s4 + $0x50] sm:$0xff] (!%p2020_p13) }
 0x18b   : > { %v797_v20 = vpop.f32.mrb[24].mxu0  ;;  %v877_v21 = vpop.f32.mrb[24].mxu1  ;;  %1104 = vperm.xlu1 (!%p2020_p13), %2517, %v2519_v14   ;;  %2332 = vmatpush3.bf16.msra.mxu1 (!%p2020_p13), %v2329_v10  ;;  %v3055_v10 = vld [vmem:[#allocation2 + $0x80] sm:$0xff] (!%p2020_p13)  ;;  %v2381_v14 = vpack.c.bf16 (!%p2020_p13), %v1327_v6, %v1326_v2 }
 0x18c   : > { %v908_v22 = vadd.f32 %v797_v20, %v619_v18  ;;  %v924_v23 = vadd.f32 %v877_v21, %v635_v19  ;;  %v799_v24 = vpop.f32.mrb[25].mxu0  ;;  %v879_v25 = vpop.f32.mrb[25].mxu1  ;;  %v1335_v18 = vld [vmem:[%s3354_s4 + $0x18] sm:$0xff] (!%p2020_p13)  ;;  %v1320_v19 = vld [vmem:[%s3353_s3 + $0x20] sm:$0xff] (!%p2020_p13)  ;;  %v1004_v21 = vmax.f32 (!%p2020_p13), %v2958_v4, 1.0  ;;  %2534 = vrcp.f32 (!%p2020_p13), %v1005_v15  ;;  %2366 = vmatprep.subr.bf16.mxu0 (!%p2020_p13), %v2365_v17 }
 0x18d   : > { %v2521_v20 = vpop.eup (!%p2020_p13), %2520  ;;  %v1336_v24 = vld [vmem:[%s3354_s4 + $0x20] sm:$0xff] (!%p2020_p13)  ;;  %v1337_v25 = vld [vmem:[%s3354_s4 + $0x28] sm:$0xff] (!%p2020_p13)  ;;  %v2349_v15 = vpack.c.bf16 (!%p2020_p13), %v1343_v8, %v1342_v7 }
 0x18e   : > { %940 = vst [vmem:[#allocation2 + $0x60] sm:$0xff] %v908_v22  ;;  %956 = vst [vmem:[#allocation2 + $0xe0] sm:$0xff] %v924_v23  ;;  %v2333_v22 = vpack.c.bf16 (!%p2020_p13), %v1335_v18, %v1334_v13  ;;  %v1321_v23 = vld [vmem:[%s3353_s3 + $0x28] sm:$0xff] (!%p2020_p13)  ;;  %1094 = vperm.xlu0 (!%p2020_p13), %2516, %v2521_v20   ;;  %2536 = vrcp.f32 (!%p2020_p13), %v1004_v21  ;;  %2368 = vmatpush3.bf16.msra.mxu0 (!%p2020_p13), %v2365_v17  ;;  %v3058_v13 = vld [vmem:[#allocation2 + $0x98] sm:$0xff] (!%p2020_p13)  ;;  %v1012_v18 = vmax.f32 (!%p2020_p13), %v3055_v10, 1.0 }
 0x18f   : > { %v802_v28 = vpop.f32.mrb[26].mxu0  ;;  %v882_v29 = vpop.f32.mrb[26].mxu1  ;;  %v1328_v17 = vld [vmem:[%s3353_s3 + $0x60] sm:$0xff] (!%p2020_p13)  ;;  %v1345_v21 = vld [vmem:[%s3354_s4 + $0x68] sm:$0xff] (!%p2020_p13) }
 0x190   : > { %v909_v30 = vadd.f32 %v802_v28, %v620_v26  ;;  %v925_v31 = vadd.f32 %v882_v29, %v636_v27  ;;  %v804_v32 = vpop.f32.mrb[27].mxu0  ;;  %v884_v33 = vpop.f32.mrb[27].mxu1  ;;  %v3000_v27 = vld [vmem:[#allocation2 + $0x50] sm:$0xff] (!%p2020_p13)  ;;  %2334 = vmatprep.subr.bf16.mxu1 (!%p2020_p13), %v2333_v22  ;;  %v1344_v20 = vld [vmem:[%s3354_s4 + $0x60] sm:$0xff] (!%p2020_p13) }
 0x191   : > { %v2982_v16 = vld [vmem:[#allocation2 + $0x58] sm:$0xff] (!%p2020_p13)  ;;  %v2523_v26 = vpop.eup (!%p2020_p13), %2522  ;;  %v2337_v32 = vpack.c.bf16 (!%p2020_p13), %v1337_v25, %v1336_v24  ;;  %v1322_v33 = vld [vmem:[%s3353_s3 + $0x30] sm:$0xff] (!%p2020_p13)  ;;  %2336 = vmatpush3.bf16.msra.mxu1 (!%p2020_p13), %v2333_v22  ;;  %v1015_v25 = vmax.f32 (!%p2020_p13), %v3058_v13, 1.0 }
 0x192   : > { %941 = vst [vmem:[#allocation2 + $0x68] sm:$0xff] %v909_v30  ;;  %957 = vst [vmem:[#allocation2 + $0xe8] sm:$0xff] %v925_v31  ;;  %v2525_v28 = vpop.eup (!%p2020_p13), %2524  ;;  %v1007_v29 = vmax.f32 (!%p2020_p13), %v2982_v16, 1.0  ;;  %v2369_v31 = vpack.c.bf16 (!%p2020_p13), %v1321_v23, %v1320_v19  ;;  %1109 = vperm.xlu1 (!%p2020_p13), %2517, %v2523_v26   ;;  %v1329_v19 = vld [vmem:[%s3353_s3 + $0x68] sm:$0xff] (!%p2020_p13)  ;;  %v3073_v23 = vld [vmem:[#allocation2 + $0x90] sm:$0xff] (!%p2020_p13) }
 0x193   : > { %v807_v36 = vpop.f32.mrb[28].mxu0  ;;  %v887_v37 = vpop.f32.mrb[28].mxu1  ;;  %1099 = vperm.xlu0 (!%p2020_p13), %2516, %v2525_v28   ;;  %2338 = vmatprep.subr.bf16.mxu1 (!%p2020_p13), %v2337_v32  ;;  %v3076_v26 = vld [vmem:[#allocation2 + $0xa8] sm:$0xff] (!%p2020_p13)  ;;  %v2385_v28 = vpack.c.bf16 (!%p2020_p13), %v1329_v19, %v1328_v17  ;;  %v3109_v7 = vld [vmem:[#allocation2 + $0xd8] sm:$0xff] (!%p2020_p13) }
 0x194   : > { %v910_v38 = vadd.f32 %v807_v36, %v621_v34  ;;  %v926_v39 = vadd.f32 %v887_v37, %v637_v35  ;;  %v809_v40 = vpop.f32.mrb[29].mxu0  ;;  %v889_v41 = vpop.f32.mrb[29].mxu1  ;;  %963 = sbr.rel (%p2020_p13) target bundleno = 815 (0x32f), region = 90  ;;  %v1006_v34 = vmax.f32 (!%p2020_p13), %v3000_v27, 1.0  ;;  %v1323_v35 = vld [vmem:[%s3353_s3 + $0x38] sm:$0xff] (!%p2020_p13)  ;;  %v1338_v36 = vld [vmem:[%s3354_s4 + $0x30] sm:$0xff] (!%p2020_p13)  ;;  %2538 = vrcp.f32 (!%p2020_p13), %v1007_v29  ;;  %2370 = vmatprep.subr.bf16.mxu0 (!%p2020_p13), %v2369_v31 }
 0x195   : > { %v1339_v37 = vld [vmem:[%s3354_s4 + $0x38] sm:$0xff] (!%p2020_p13)  ;;  %2372 = vmatpush3.bf16.msra.mxu0 (!%p2020_p13), %v2369_v31  ;;  %2340 = vmatpush3.bf16.msra.mxu1 (!%p2020_p13), %v2337_v32  ;;  %v2353_v29 = vpack.c.bf16 (!%p2020_p13), %v1345_v21, %v1344_v20  ;;  %v1330_v31 = vld [vmem:[%s3353_s3 + $0x70] sm:$0xff] (!%p2020_p13)  ;;  %v1014_v32 = vmax.f32 (!%p2020_p13), %v3073_v23, 1.0  ;;  %v3119_v20 = vld [vmem:[#allocation2 + $0xe0] sm:$0xff] (!%p2020_p13) }
 0x196   : > { %942 = vst [vmem:[#allocation2 + $0x70] sm:$0xff] %v910_v38  ;;  %958 = vst [vmem:[#allocation2 + $0xf0] sm:$0xff] %v926_v39  ;;  %v2527_v38 = vpop.eup (!%p2020_p13), %2526  ;;  %v3018_v39 = vld [vmem:[#allocation2 + $0x60] sm:$0xff] (!%p2020_p13)  ;;  %2540 = vrcp.f32 (!%p2020_p13), %v1006_v34  ;;  %v1346_v34 = vld [vmem:[%s3354_s4 + $0x70] sm:$0xff] (!%p2020_p13) }
 0x197   : > { %v812_v44 = vpop.f32.mrb[30].mxu0  ;;  %v892_v45 = vpop.f32.mrb[30].mxu1  ;;  %1119 = vperm.xlu1 (!%p2020_p13), %2517, %v2527_v38  }
 0x198   : > { %v911_v46 = vadd.f32 %v812_v44, %v622_v42  ;;  %v927_v47 = vadd.f32 %v892_v45, %v638_v43  ;;  %v814_v48 = vpop.f32.mrb[31].mxu0  ;;  %v894_v49 = vpop.f32.mrb[31].mxu1  ;;  %v2373_v43 = vpack.c.bf16 (!%p2020_p13), %v1323_v35, %v1322_v33  ;;  %v2341_v44 = vpack.c.bf16 (!%p2020_p13), %v1339_v37, %v1338_v36  ;;  %v1324_v45 = vld [vmem:[%s3353_s3 + $0x40] sm:$0xff] (!%p2020_p13)  ;;  %v1331_v33 = vld [vmem:[%s3353_s3 + $0x78] sm:$0xff] (!%p2020_p13) }
 0x199   : > { %v3003_v30 = vld [vmem:[#allocation2 + $0x68] sm:$0xff] (!%p2020_p13)  ;;  %v2529_v40 = vpop.eup (!%p2020_p13), %2528  ;;  %v1340_v49 = vld [vmem:[%s3354_s4 + $0x40] sm:$0xff] (!%p2020_p13)  ;;  %v1347_v35 = vld [vmem:[%s3354_s4 + $0x78] sm:$0xff] (!%p2020_p13) }
 0x19a   : > { %943 = vst [vmem:[#allocation2 + $0x78] sm:$0xff] %v911_v46  ;;  %959 = vst [vmem:[#allocation2 + $0xf8] sm:$0xff] %v927_v47  ;;  %v1009_v41 = vmax.f32 (!%p2020_p13), %v3003_v30, 1.0  ;;  %v1284_v46 = vld [vmem:[%s2817_s18] sm:$0xff] (!%p2020_p13)  ;;  %v1008_v47 = vmax.f32 (!%p2020_p13), %v3018_v39, 1.0  ;;  %v1325_v48 = vld [vmem:[%s3353_s3 + $0x48] sm:$0xff] (!%p2020_p13)  ;;  %v2531_v54 = vpop.eup (!%p2020_p13), %2530  ;;  %1114 = vperm.xlu0 (!%p2020_p13), %2516, %v2529_v40   ;;  %2374 = vmatprep.subr.bf16.mxu0 (!%p2020_p13), %v2373_v43  ;;  %v2345_v1 = vpack.c.bf16 (!%p2020_p13), %v1341_v53, %v1340_v49 }
 0x19b   : > { %2233 = vmatprep.mubr.f32.mxu0 %v1284_v46  ;;  %v2533_v56 = vpop.eup %2532  ;;  %2342 = vmatprep.subr.bf16.mxu1 %v2341_v44  ;;  %v2377_v62 = vpack.c.bf16 %v1325_v48, %v1324_v45  ;;  %v3091_v37 = vld [vmem:[#allocation2 + $0xa0] sm:$0xff]  ;;  %v1017_v40 = vmax.f32 %v3076_v26, 1.0  ;;  %v3095_v45 = vld [vmem:[#allocation2 + $0xb8] sm:$0xff] }
 0x19c   : > { %2542 = vrcp.f32 %v1009_v41  ;;  %1129 = vperm.xlu1 %2517, %v2531_v54   ;;  %v2535_v9 = vpop.eup %2534  ;;  %2376 = vmatpush3.bf16.msra.mxu0 %v2373_v43  ;;  %v2389_v41 = vpack.c.bf16 %v1331_v33, %v1330_v31  ;;  %v2357_v43 = vpack.c.bf16 %v1347_v35, %v1346_v34  ;;  %v1019_v49 = vmax.f32 %v3095_v45, 1.0  ;;  %v3101_v54 = vld [vmem:[#allocation2 + $0xc8] sm:$0xff]  ;;  %v1291_v34 = vld [vmem:[%s2817_s18 + $0x38] sm:$0xff] }
 0x19d   : > { %v3037_v55 = vld [vmem:[#allocation2 + $0x70] sm:$0xff]  ;;  %2544 = vrcp.f32 %v1008_v47  ;;  %v2537_v11 = vpop.eup %2536  ;;  %2344 = vmatpush3.bf16.msra.mxu1 %v2341_v44  ;;  %2378 = vmatprep.subr.bf16.mxu0 %v2377_v62  ;;  %v1016_v44 = vmax.f32 %v3091_v37, 1.0  ;;  %v1021_v2 = vmax.f32 %v3101_v54, 1.0 }
 0x19e   : > { %v1010_v5 = vmax.f32 %v3037_v55, 1.0  ;;  %1124 = vperm.xlu0 %2516, %v2533_v56   ;;  %2346 = vmatprep.subr.bf16.mxu1 %v2345_v1  ;;  %v2539_v22 = vpop.eup %2538  ;;  %v3097_v47 = vld [vmem:[#allocation2 + $0xb0] sm:$0xff] }
 0x19f   : > { %v1018_v53 = vmax.f32 %v3097_v47, 1.0 }
 0x1a0   : > { %1139 = vperm.xlu1 %2517, %v2535_v9   ;;  %v2541_v24 = vpop.eup %2540  ;;  %2380 = vmatpush3.bf16.msra.mxu0 %v2377_v62  ;;  %v3111_v9 = vld [vmem:[#allocation2 + $0xd0] sm:$0xff] }
 0x1a1   : > { %v3021_v42 = vld [vmem:[#allocation2 + $0x78] sm:$0xff]  ;;  %2348 = vmatpush3.bf16.msra.mxu1 %v2345_v1  ;;  %2382 = vmatprep.subr.bf16.mxu0 %v2381_v14  ;;  %v1285_v1 = vld [vmem:[%s2817_s18 + $0x8] sm:$0xff]  ;;  %v1022_v17 = vmax.f32 %v3111_v9, 1.0 }
 0x1a2   : > { %v1011_v58 = vmax.f32 %v3021_v42, 1.0  ;;  %1134 = vperm.xlu0 %2516, %v2537_v11   ;;  %2350 = vmatprep.subr.bf16.mxu1 %v2349_v15 }
 0x1a4   : > { %2546 = vrcp.f32 %v1011_v58  ;;  %1149 = vperm.xlu1 %2517, %v2539_v22   ;;  %2384 = vmatpush3.bf16.msra.mxu0 %v2381_v14  ;;  %v3103_v58 = vld [vmem:[#allocation2 + $0xc0] sm:$0xff]  ;;  %v1023_v14 = vmax.f32 %v3109_v7, 1.0  ;;  %v1289_v22 = vld [vmem:[%s2817_s18 + $0x28] sm:$0xff] }
 0x1a5   : > { %2548 = vrcp.f32 %v1010_v5  ;;  %2352 = vmatpush3.bf16.msra.mxu1 %v2349_v15  ;;  %2386 = vmatprep.subr.bf16.mxu0 %v2385_v28  ;;  %v1286_v5 = vld [vmem:[%s2817_s18 + $0x10] sm:$0xff]  ;;  %v1020_v6 = vmax.f32 %v3103_v58, 1.0  ;;  %v1288_v15 = vld [vmem:[%s2817_s18 + $0x20] sm:$0xff] }
 0x1a6   : > { %2550 = vrcp.f32 %v1013_v12  ;;  %v2543_v36 = vpop.eup %2542  ;;  %1144 = vperm.xlu0 %2516, %v2541_v24   ;;  %2354 = vmatprep.subr.bf16.mxu1 %v2353_v29  ;;  %v1287_v12 = vld [vmem:[%s2817_s18 + $0x18] sm:$0xff] }
 0x1a7   : > { %2552 = vrcp.f32 %v1012_v18  ;;  %v2545_v38 = vpop.eup %2544  ;;  %v3117_v18 = vld [vmem:[#allocation2 + $0xe8] sm:$0xff] }
 0x1a8   : > { %2554 = vrcp.f32 %v1015_v25  ;;  %1159 = vperm.xlu1 %2517, %v2543_v36   ;;  %2388 = vmatpush3.bf16.msra.mxu0 %v2385_v28  ;;  %v1025_v24 = vmax.f32 %v3117_v18, 1.0  ;;  %v1290_v25 = vld [vmem:[%s2817_s18 + $0x30] sm:$0xff]  ;;  %v1024_v28 = vmax.f32 %v3119_v20, 1.0  ;;  %v1292_v36 = vld [vmem:[%s2817_s18 + $0x40] sm:$0xff] }
 0x1a9   : > { %2556 = vrcp.f32 %v1014_v32  ;;  %2356 = vmatpush3.bf16.msra.mxu1 %v2353_v29  ;;  %2390 = vmatprep.subr.bf16.mxu0 %v2389_v41  ;;  %v3125_v29 = vld [vmem:[#allocation2 + $0xf8] sm:$0xff]  ;;  %v3127_v32 = vld [vmem:[#allocation2 + $0xf0] sm:$0xff] }
 0x1aa   : > { %1154 = vperm.xlu0 %2516, %v2545_v38   ;;  %2558 = vrcp.f32 %v1017_v40  ;;  %2358 = vmatprep.subr.bf16.mxu1 %v2357_v43  ;;  %v1027_v35 = vmax.f32 %v3125_v29, 1.0  ;;  %v1026_v38 = vmax.f32 %v3127_v32, 1.0 }
 0x1ab   : > { %2560 = vrcp.f32 %v1016_v44  ;;  %v1294_v44 = vld [vmem:[%s2817_s18 + $0x50] sm:$0xff] }
 0x1ac   : > { %2392 = vmatpush3.bf16.msra.mxu0 %v2389_v41  ;;  %2562 = vrcp.f32 %v1019_v49  ;;  %v1295_v49 = vld [vmem:[%s2817_s18 + $0x58] sm:$0xff] }
 0x1ad   : > { %2360 = vmatpush3.bf16.msra.mxu1 %v2357_v43  ;;  %2564 = vrcp.f32 %v1018_v53  ;;  %v1293_v43 = vld [vmem:[%s2817_s18 + $0x48] sm:$0xff]  ;;  %v1296_v53 = vld [vmem:[%s2817_s18 + $0x60] sm:$0xff] }
 0x1ae   : > { %v2547_v46 = vpop.eup %2546  ;;  %2566 = vrcp.f32 %v1021_v2  ;;  %v1298_v2 = vld [vmem:[%s2817_s18 + $0x70] sm:$0xff] }
 0x1af   : > { %v2549_v48 = vpop.eup %2548  ;;  %1169 = vperm.xlu1 %2517, %v2547_v46   ;;  %2234 = vmatmul.mubr.f32.vlgmr.msra.gmra.mrb[0].mxu0 %v1285_v1  ;;  %2568 = vrcp.f32 %v1020_v6  ;;  %v1297_v1 = vld [vmem:[%s2817_s18 + $0x68] sm:$0xff] }
 0x1b0   : > { %v2551_v56 = vpop.eup %2550  ;;  %1164 = vperm.xlu0 %2516, %v2549_v48   ;;  %2236 = vmatprep.mubr.f32.mxu0 %v1286_v5  ;;  %2570 = vrcp.f32 %v1023_v14  ;;  %v1302_v14 = vld [vmem:[%s2817_s18 + $0x90] sm:$0xff] }
 0x1b1   : > { %v2553_v62 = vpop.eup %2552  ;;  %2572 = vrcp.f32 %v1022_v17  ;;  %v1304_v17 = vld [vmem:[%s2817_s18 + $0xa0] sm:$0xff] }
 0x1b2   : > { %v2555_v8 = vpop.eup %2554  ;;  %2574 = vrcp.f32 %v1025_v24  ;;  %v1308_v24 = vld [vmem:[%s2817_s18 + $0xc0] sm:$0xff] }
 0x1b3   : > { %1179 = vperm.xlu1 %2517, %v2551_v56   ;;  %v2557_v11 = vpop.eup %2556  ;;  %2237 = vmatmul.mubr.f32.gmra.mrb[2].mxu0 %v1287_v12  ;;  %2576 = vrcp.f32 %v1024_v28  ;;  %v1301_v12 = vld [vmem:[%s2817_s18 + $0x88] sm:$0xff]  ;;  %v1310_v28 = vld [vmem:[%s2817_s18 + $0xd0] sm:$0xff] }
 0x1b4   : > { %1174 = vperm.xlu0 %2516, %v2553_v62   ;;  %v2559_v19 = vpop.eup %2558  ;;  %2239 = vmatprep.mubr.f32.mxu0 %v1288_v15  ;;  %2578 = vrcp.f32 %v1027_v35  ;;  %v1303_v15 = vld [vmem:[%s2817_s18 + $0x98] sm:$0xff]  ;;  %v1314_v35 = vld [vmem:[%s2817_s18 + $0xf0] sm:$0xff] }
 0x1b5   : > { %v2561_v21 = vpop.eup %2560  ;;  %2580 = vrcp.f32 %v1026_v38 }
 0x1b6   : > { %v2563_v31 = vpop.eup %2562 }
 0x1b7   : > { %1189 = vperm.xlu1 %2517, %v2555_v8   ;;  %2240 = vmatmul.mubr.f32.gmra.mrb[4].mxu0 %v1289_v22  ;;  %v2565_v33 = vpop.eup %2564  ;;  %v1299_v8 = vld [vmem:[%s2817_s18 + $0x78] sm:$0xff] }
 0x1b8   : > { %1184 = vperm.xlu0 %2516, %v2557_v11   ;;  %2242 = vmatprep.mubr.f32.mxu0 %v1290_v25  ;;  %v2567_v40 = vpop.eup %2566  ;;  %v1300_v11 = vld [vmem:[%s2817_s18 + $0x80] sm:$0xff]  ;;  %v1307_v22 = vld [vmem:[%s2817_s18 + $0xb8] sm:$0xff]  ;;  %v1309_v25 = vld [vmem:[%s2817_s18 + $0xc8] sm:$0xff] }
 0x1b9   : > { %v2569_v41 = vpop.eup %2568 }
 0x1ba   : > { %v2571_v46 = vpop.eup %2570 }
 0x1bb   : > { %1199 = vperm.xlu1 %2517, %v2559_v19   ;;  %2243 = vmatmul.mubr.f32.gmra.mrb[6].mxu0 %v1291_v34  ;;  %v2573_v48 = vpop.eup %2572  ;;  %v1305_v19 = vld [vmem:[%s2817_s18 + $0xa8] sm:$0xff] }
 0x1bc   : > { %1194 = vperm.xlu0 %2516, %v2561_v21   ;;  %2245 = vmatprep.mubr.f32.mxu0 %v1292_v36  ;;  %v2575_v56 = vpop.eup %2574  ;;  %v1306_v21 = vld [vmem:[%s2817_s18 + $0xb0] sm:$0xff]  ;;  %v1313_v34 = vld [vmem:[%s2817_s18 + $0xe8] sm:$0xff]  ;;  %v1315_v36 = vld [vmem:[%s2817_s18 + $0xf8] sm:$0xff] }
 0x1bd   : > { %v2577_v62 = vpop.eup %2576 }
 0x1be   : > { %v2579_v5 = vpop.eup %2578 }
 0x1bf   : > { %1209 = vperm.xlu1 %2517, %v2563_v31   ;;  %2246 = vmatmul.mubr.f32.gmra.mrb[8].mxu0 %v1293_v43  ;;  %v2581_v6 = vpop.eup %2580  ;;  %v1311_v31 = vld [vmem:[%s2817_s18 + $0xd8] sm:$0xff] }
 0x1c0   : > { %1204 = vperm.xlu0 %2516, %v2565_v33   ;;  %2248 = vmatprep.mubr.f32.mxu0 %v1294_v44  ;;  %v1312_v33 = vld [vmem:[%s2817_s18 + $0xe0] sm:$0xff] }
 0x1c3   : > { %1219 = vperm.xlu1 %2517, %v2567_v40   ;;  %2249 = vmatmul.mubr.f32.gmra.mrb[10].mxu0 %v1295_v49 }
 0x1c4   : > { %1214 = vperm.xlu0 %2516, %v2569_v41   ;;  %2251 = vmatprep.mubr.f32.mxu0 %v1296_v53 }
 0x1c7   : > { %1229 = vperm.xlu1 %2517, %v2571_v46   ;;  %2252 = vmatmul.mubr.f32.gmra.mrb[12].mxu0 %v1297_v1 }
 0x1c8   : > { %1224 = vperm.xlu0 %2516, %v2573_v48   ;;  %2254 = vmatprep.mubr.f32.mxu0 %v1298_v2 }
 0x1cb   : > { %1239 = vperm.xlu1 %2517, %v2575_v56   ;;  %2255 = vmatmul.mubr.f32.gmra.mrb[14].mxu0 %v1299_v8 }
 0x1cc   : > { %1234 = vperm.xlu0 %2516, %v2577_v62   ;;  %2257 = vmatprep.mubr.f32.mxu0 %v1300_v11 }
 0x1cf   : > { %1249 = vperm.xlu1 %2517, %v2579_v5   ;;  %2258 = vmatmul.mubr.f32.gmra.mrb[16].mxu0 %v1301_v12 }
 0x1d0   : > { %1244 = vperm.xlu0 %2516, %v2581_v6   ;;  %2260 = vmatprep.mubr.f32.mxu0 %v1302_v14 }
 0x1d3   : > { %2261 = vmatmul.mubr.f32.gmra.mrb[18].mxu0 %v1303_v15 }
 0x1d4   : > { %2263 = vmatprep.mubr.f32.mxu0 %v1304_v17 }
 0x1d7   : > { %2264 = vmatmul.mubr.f32.gmra.mrb[20].mxu0 %v1305_v19 }
 0x1d8   : > { %2266 = vmatprep.mubr.f32.mxu0 %v1306_v21 }
 0x1db   : > { %2267 = vmatmul.mubr.f32.gmra.mrb[22].mxu0 %v1307_v22 }
 0x1dc   : > { %2269 = vmatprep.mubr.f32.mxu0 %v1308_v24 }
 0x1df   : > { %2270 = vmatmul.mubr.f32.gmra.mrb[24].mxu0 %v1309_v25 }
 0x1e0   : > { %2272 = vmatprep.mubr.f32.mxu0 %v1310_v28 }
 0x1e3   : > { %2273 = vmatmul.mubr.f32.gmra.mrb[26].mxu0 %v1311_v31 }
 0x1e4   : > { %2275 = vmatprep.mubr.f32.mxu0 %v1312_v33 }
 0x1e7   : > { %2276 = vmatmul.mubr.f32.gmra.mrb[28].mxu0 %v1313_v34 }
 0x1e8   : > { %2278 = vmatprep.mubr.f32.mxu0 %v1314_v35 }
 0x1eb   : > { %2279 = vmatmul.mubr.f32.gmra.mrb[30].mxu0 %v1315_v36 }
 0x20a   : > { %v1105_v38 = vpop.permute.xlu1 %1104 }
 0x20b   : > { %v1254_v44 = vmul.f32 %v1105_v38, %v2932_v50 }
 0x20d   : > { %v1095_v40 = vpop.permute.xlu0 %1094 }
 0x20e   : > { %v1252_v41 = vmul.f32 %v1095_v40, %v2934_v51 }
 0x210   : > { %2153 = vmatprep.mubr.f32.mxu1 %v1252_v41 }
 0x211   : > { %v1110_v43 = vpop.permute.xlu1 %1109 }
 0x212   : > { %v1100_v46 = vpop.permute.xlu0 %1099  ;;  %v1255_v56 = vmul.f32 %v1110_v43, %v2936_v52 }
 0x213   : > { %v1253_v48 = vmul.f32 %v1100_v46, %v2941_v57 }
 0x215   : > { %2154 = vmatmul.mubr.f32.vlgmr.msra.gmra.mrb[0].mxu1 %v1253_v48 }
 0x216   : > { %v1120_v49 = vpop.permute.xlu1 %1119  ;;  %2156 = vmatprep.mubr.f32.mxu1 %v1254_v44 }
 0x217   : > { %v1257_v51 = vmul.f32 %v1120_v49, %v2944_v59 }
 0x219   : > { %v1115_v53 = vpop.permute.xlu0 %1114  ;;  %2157 = vmatmul.mubr.f32.gmra.mrb[2].mxu1 %v1255_v56 }
 0x21a   : > { %v1256_v62 = vmul.f32 %v1115_v53, %v2946_v60 }
 0x21b   : > { %v1130_v1 = vpop.permute.xlu1 %1129 }
 0x21c   : > { %2159 = vmatprep.mubr.f32.mxu1 %v1256_v62  ;;  %v1259_v6 = vmul.f32 %v1130_v1, %v2950_v63 }
 0x21d   : > { %v1125_v2 = vpop.permute.xlu0 %1124  ;;  %2160 = vmatmul.mubr.f32.gmra.mrb[4].mxu1 %v1257_v51 }
 0x21e   : > { %v1258_v5 = vmul.f32 %v1125_v2, %v2952_v0 }
 0x21f   : > { %v1140_v50 = vpop.permute.xlu1 %1139 }
 0x220   : > { %2162 = vmatprep.mubr.f32.mxu1 %v1258_v5  ;;  %v1261_v11 = vmul.f32 %v1140_v50, %v2956_v3 }
 0x221   : > { %v1135_v57 = vpop.permute.xlu0 %1134  ;;  %2163 = vmatmul.mubr.f32.gmra.mrb[6].mxu1 %v1259_v6 }
 0x222   : > { %v1260_v8 = vmul.f32 %v1135_v57, %v2958_v4 }
 0x223   : > { %v1150_v52 = vpop.permute.xlu1 %1149 }
 0x224   : > { %2165 = vmatprep.mubr.f32.mxu1 %v1260_v8  ;;  %v1263_v14 = vmul.f32 %v1150_v52, %v2982_v16 }
 0x225   : > { %v1145_v60 = vpop.permute.xlu0 %1144  ;;  %2166 = vmatmul.mubr.f32.gmra.mrb[8].mxu1 %v1261_v11 }
 0x226   : > { %v1262_v12 = vmul.f32 %v1145_v60, %v3000_v27 }
 0x227   : > { %v1160_v59 = vpop.permute.xlu1 %1159 }
 0x228   : > { %2168 = vmatprep.mubr.f32.mxu1 %v1262_v12  ;;  %v1265_v17 = vmul.f32 %v1160_v59, %v3003_v30 }
 0x229   : > { %v1155_v0 = vpop.permute.xlu0 %1154  ;;  %2169 = vmatmul.mubr.f32.gmra.mrb[10].mxu1 %v1263_v14 }
 0x22a   : > { %v1264_v15 = vmul.f32 %v1155_v0, %v3018_v39 }
 0x22c   : > { %2171 = vmatprep.mubr.f32.mxu1 %v1264_v15 }
 0x22d   : > { %2172 = vmatmul.mubr.f32.gmra.mrb[12].mxu1 %v1265_v17 }
 0x22e   : > { %v1170_v63 = vpop.permute.xlu1 %1169 }
 0x22f   : > { %v1165_v4 = vpop.permute.xlu0 %1164  ;;  %v1267_v21 = vmul.f32 %v1170_v63, %v3021_v42 }
 0x230   : > { %v1266_v19 = vmul.f32 %v1165_v4, %v3037_v55 }
 0x232   : > { %v1180_v3 = vpop.permute.xlu1 %1179  ;;  %2174 = vmatprep.mubr.f32.mxu1 %v1266_v19 }
 0x233   : > { %v1175_v27 = vpop.permute.xlu0 %1174  ;;  %2175 = vmatmul.mubr.f32.gmra.mrb[14].mxu1 %v1267_v21  ;;  %v1269_v24 = vmul.f32 %v1180_v3, %v3040_v61  ;;  %v3239_v21 = vld [vmem:[%s3355_s5] ss:$0 sm:$0xff] }
 0x234   : > { %v1268_v22 = vmul.f32 %v1175_v27, %v3055_v10 }
 0x236   : > { %v1190_v16 = vpop.permute.xlu1 %1189  ;;  %2177 = vmatprep.mubr.f32.mxu1 %v1268_v22 }
 0x237   : > { %v1185_v39 = vpop.permute.xlu0 %1184  ;;  %2178 = vmatmul.mubr.f32.gmra.mrb[16].mxu1 %v1269_v24  ;;  %v1271_v28 = vmul.f32 %v1190_v16, %v3058_v13 }
 0x238   : > { %v1270_v25 = vmul.f32 %v1185_v39, %v3073_v23 }
 0x23a   : > { %v1200_v30 = vpop.permute.xlu1 %1199  ;;  %2180 = vmatprep.mubr.f32.mxu1 %v1270_v25 }
 0x23b   : > { %v1195_v55 = vpop.permute.xlu0 %1194  ;;  %2181 = vmatmul.mubr.f32.gmra.mrb[18].mxu1 %v1271_v28  ;;  %v1273_v33 = vmul.f32 %v1200_v30, %v3076_v26 }
 0x23c   : > { %v1272_v31 = vmul.f32 %v1195_v55, %v3091_v37 }
 0x23e   : > { %v1210_v42 = vpop.permute.xlu1 %1209  ;;  %2183 = vmatprep.mubr.f32.mxu1 %v1272_v31 }
 0x23f   : > { %v1205_v10 = vpop.permute.xlu0 %1204  ;;  %2184 = vmatmul.mubr.f32.gmra.mrb[20].mxu1 %v1273_v33  ;;  %v1275_v35 = vmul.f32 %v1210_v42, %v3095_v45 }
 0x240   : > { %v1274_v34 = vmul.f32 %v1205_v10, %v3097_v47 }
 0x242   : > { %v1220_v61 = vpop.permute.xlu1 %1219  ;;  %2186 = vmatprep.mubr.f32.mxu1 %v1274_v34 }
 0x243   : > { %v1215_v23 = vpop.permute.xlu0 %1214  ;;  %2187 = vmatmul.mubr.f32.gmra.mrb[22].mxu1 %v1275_v35  ;;  %v1277_v38 = vmul.f32 %v1220_v61, %v3101_v54 }
 0x244   : > { %v1276_v36 = vmul.f32 %v1215_v23, %v3103_v58 }
 0x246   : > { %v1230_v13 = vpop.permute.xlu1 %1229  ;;  %2189 = vmatprep.mubr.f32.mxu1 %v1276_v36 }
 0x247   : > { %v1225_v37 = vpop.permute.xlu0 %1224  ;;  %2190 = vmatmul.mubr.f32.gmra.mrb[24].mxu1 %v1277_v38  ;;  %v1279_v41 = vmul.f32 %v1230_v13, %v3109_v7 }
 0x248   : > { %v1278_v40 = vmul.f32 %v1225_v37, %v3111_v9 }
 0x24a   : > { %v1240_v26 = vpop.permute.xlu1 %1239  ;;  %2192 = vmatprep.mubr.f32.mxu1 %v1278_v40 }
 0x24b   : > { %v1235_v47 = vpop.permute.xlu0 %1234  ;;  %2193 = vmatmul.mubr.f32.gmra.mrb[26].mxu1 %v1279_v41  ;;  %v1281_v58 = vmul.f32 %v1240_v26, %v3117_v18 }
 0x24c   : > { %v1280_v43 = vmul.f32 %v1235_v47, %v3119_v20 }
 0x24e   : > { %2195 = vmatprep.mubr.f32.mxu1 %v1280_v43  ;;  %v1250_v46 = vpop.permute.xlu1 %1249 }
 0x24f   : > { %v1245_v45 = vpop.permute.xlu0 %1244  ;;  %2196 = vmatmul.mubr.f32.gmra.mrb[28].mxu1 %v1281_v58  ;;  %v1283_v54 = vmul.f32 %v1250_v46, %v3125_v29 }
 0x250   : > { %v1282_v44 = vmul.f32 %v1245_v45, %v3127_v32 }
 0x252   : > { %2198 = vmatprep.mubr.f32.mxu1 %v1282_v44 }
 0x253   : > { %2199 = vmatmul.mubr.f32.gmra.mrb[30].mxu1 %v1283_v54 }
 0x282   : > { %v2235_v9 = vpop.f32.mrb[0].mxu0 }
 0x283   : > { %v1639_v48 = vpop.f32.mrb[1].mxu0 }
 0x286   : > { %v2238_v49 = vpop.f32.mrb[2].mxu0 }
 0x287   : > { %v1649_v53 = vpop.f32.mrb[3].mxu0 }
 0x28a   : > { %v2241_v7 = vpop.f32.mrb[4].mxu0 }
 0x28b   : > { %v1659_v56 = vpop.f32.mrb[5].mxu0 }
 0x28e   : > { %v2244_v20 = vpop.f32.mrb[6].mxu0 }
 0x28f   : > { %v1669_v62 = vpop.f32.mrb[7].mxu0 }
 0x292   : > { %v3188_v1 = vpop.f32.mrb[8].mxu0 }
 0x293   : > { %v3190_v2 = vpop.f32.mrb[9].mxu0 }
 0x296   : > { %v3192_v18 = vpop.f32.mrb[10].mxu0 }
 0x297   : > { %v3194_v32 = vpop.f32.mrb[11].mxu0 }
 0x29a   : > { %v3196_v51 = vpop.f32.mrb[12].mxu0 }
 0x29b   : > { %v3198_v29 = vpop.f32.mrb[13].mxu0 }
 0x29e   : > { %v3200_v5 = vpop.f32.mrb[14].mxu0 }
 0x29f   : > { %v3202_v50 = vpop.f32.mrb[15].mxu0 }
 0x2a2   : > { %v3204_v57 = vpop.f32.mrb[16].mxu0 }
 0x2a3   : > { %v3206_v6 = vpop.f32.mrb[17].mxu0 }
 0x2a6   : > { %v3208_v8 = vpop.f32.mrb[18].mxu0 }
 0x2a7   : > { %v3210_v52 = vpop.f32.mrb[19].mxu0 }
 0x2aa   : > { %v3212_v60 = vpop.f32.mrb[20].mxu0 }
 0x2ab   : > { %v3214_v11 = vpop.f32.mrb[21].mxu0 }
 0x2ae   : > { %v3216_v12 = vpop.f32.mrb[22].mxu0 }
 0x2af   : > { %v3218_v59 = vpop.f32.mrb[23].mxu0 }
 0x2b2   : > { %v3220_v0 = vpop.f32.mrb[24].mxu0 }
 0x2b3   : > { %v3222_v14 = vpop.f32.mrb[25].mxu0 }
 0x2b6   : > { %v3224_v15 = vpop.f32.mrb[26].mxu0 }
 0x2b7   : > { %v3226_v63 = vpop.f32.mrb[27].mxu0 }
 0x2ba   : > { %v3228_v4 = vpop.f32.mrb[28].mxu0 }
 0x2bb   : > { %v3230_v17 = vpop.f32.mrb[29].mxu0 }
 0x2be   : > { %v3232_v19 = vpop.f32.mrb[30].mxu0 }
 0x2bf   : > { %v3234_v3 = vpop.f32.mrb[31].mxu0 }
 0x2e8   : > { %v2155_v27 = vpop.f32.mrb[0].mxu1 }
 0x2e9   : > { %v1645_v22 = vadd.f32 %v2235_v9, %v2155_v27  ;;  %v1414_v16 = vpop.f32.mrb[1].mxu1 }
 0x2ea   : > { %v1640_v39 = vadd.f32 %v1639_v48, %v1414_v16 }
 0x2eb   : > { %v1806_v24 = vadd.f32 %v3239_v21, %v1645_v22 }
 0x2ec   : > { %v1805_v25 = vadd.f32 %v3239_v21, %v1640_v39  ;;  %v2158_v30 = vpop.f32.mrb[2].mxu1 }
 0x2ed   : > { %v1838_v55 = vmax.f32 %v1806_v24, 0.0  ;;  %v1655_v28 = vadd.f32 %v2238_v49, %v2158_v30  ;;  %v1424_v31 = vpop.f32.mrb[3].mxu1 }
 0x2ee   : > { %v1837_v42 = vmax.f32 %v1805_v25, 0.0  ;;  %v1650_v10 = vadd.f32 %v1649_v53, %v1424_v31 }
 0x2ef   : > { %1870 = vst [vmem:[%s2822_s20 + $0x8] sm:$0xff] %v1838_v55  ;;  %v1808_v33 = vadd.f32 %v3239_v21, %v1655_v28 }
 0x2f0   : > { %1869 = vst [vmem:[%s2822_s20] sm:$0xff] %v1837_v42  ;;  %v1807_v34 = vadd.f32 %v3239_v21, %v1650_v10  ;;  %v2161_v61 = vpop.f32.mrb[4].mxu1 }
 0x2f1   : > { %v1840_v23 = vmax.f32 %v1808_v33, 0.0  ;;  %v1665_v35 = vadd.f32 %v2241_v7, %v2161_v61  ;;  %v1434_v36 = vpop.f32.mrb[5].mxu1 }
 0x2f2   : > { %v1839_v13 = vmax.f32 %v1807_v34, 0.0  ;;  %v1660_v37 = vadd.f32 %v1659_v56, %v1434_v36 }
 0x2f3   : > { %1872 = vst [vmem:[%s2822_s20 + $0x18] sm:$0xff] %v1840_v23  ;;  %v1810_v38 = vadd.f32 %v3239_v21, %v1665_v35 }
 0x2f4   : > { %1871 = vst [vmem:[%s2822_s20 + $0x10] sm:$0xff] %v1839_v13  ;;  %v1809_v40 = vadd.f32 %v3239_v21, %v1660_v37  ;;  %v2164_v26 = vpop.f32.mrb[6].mxu1 }
 0x2f5   : > { %v1842_v47 = vmax.f32 %v1810_v38, 0.0  ;;  %v1675_v41 = vadd.f32 %v2244_v20, %v2164_v26  ;;  %v1444_v43 = vpop.f32.mrb[7].mxu1 }
 0x2f6   : > { %v1841_v45 = vmax.f32 %v1809_v40, 0.0  ;;  %v1670_v58 = vadd.f32 %v1669_v62, %v1444_v43 }
 0x2f7   : > { %1874 = vst [vmem:[%s2822_s20 + $0x28] sm:$0xff] %v1842_v47  ;;  %v1812_v44 = vadd.f32 %v3239_v21, %v1675_v41 }
 0x2f8   : > { %1873 = vst [vmem:[%s2822_s20 + $0x20] sm:$0xff] %v1841_v45  ;;  %v1811_v46 = vadd.f32 %v3239_v21, %v1670_v58  ;;  %v2167_v54 = vpop.f32.mrb[8].mxu1 }
 0x2f9   : > { %v1844_v9 = vmax.f32 %v1812_v44, 0.0  ;;  %v1685_v48 = vadd.f32 %v3188_v1, %v2167_v54  ;;  %v1454_v49 = vpop.f32.mrb[9].mxu1 }
 0x2fa   : > { %v1843_v53 = vmax.f32 %v1811_v46, 0.0  ;;  %v1680_v7 = vadd.f32 %v3190_v2, %v1454_v49 }
 0x2fb   : > { %1876 = vst [vmem:[%s2822_s20 + $0x38] sm:$0xff] %v1844_v9  ;;  %v1814_v56 = vadd.f32 %v3239_v21, %v1685_v48 }
 0x2fc   : > { %1875 = vst [vmem:[%s2822_s20 + $0x30] sm:$0xff] %v1843_v53  ;;  %v1813_v20 = vadd.f32 %v3239_v21, %v1680_v7  ;;  %v2170_v62 = vpop.f32.mrb[10].mxu1 }
 0x2fd   : > { %v1846_v27 = vmax.f32 %v1814_v56, 0.0  ;;  %v1695_v22 = vadd.f32 %v3192_v18, %v2170_v62  ;;  %v1464_v16 = vpop.f32.mrb[11].mxu1 }
 0x2fe   : > { %v1845_v39 = vmax.f32 %v1813_v20, 0.0  ;;  %v1690_v1 = vadd.f32 %v3194_v32, %v1464_v16 }
 0x2ff   : > { %1878 = vst [vmem:[%s2822_s20 + $0x48] sm:$0xff] %v1846_v27  ;;  %v1816_v24 = vadd.f32 %v3239_v21, %v1695_v22 }
 0x300   : > { %1877 = vst [vmem:[%s2822_s20 + $0x40] sm:$0xff] %v1845_v39  ;;  %v1815_v2 = vadd.f32 %v3239_v21, %v1690_v1  ;;  %v2173_v25 = vpop.f32.mrb[12].mxu1 }
 0x301   : > { %v1848_v30 = vmax.f32 %v1816_v24, 0.0  ;;  %v1705_v55 = vadd.f32 %v3196_v51, %v2173_v25  ;;  %v1474_v28 = vpop.f32.mrb[13].mxu1 }
 0x302   : > { %v1847_v31 = vmax.f32 %v1815_v2, 0.0  ;;  %v1700_v18 = vadd.f32 %v3198_v29, %v1474_v28 }
 0x303   : > { %1880 = vst [vmem:[%s2822_s20 + $0x58] sm:$0xff] %v1848_v30  ;;  %v1818_v42 = vadd.f32 %v3239_v21, %v1705_v55 }
 0x304   : > { %1879 = vst [vmem:[%s2822_s20 + $0x50] sm:$0xff] %v1847_v31  ;;  %v1817_v32 = vadd.f32 %v3239_v21, %v1700_v18 }
 0x305   : > { %v1850_v33 = vmax.f32 %v1818_v42, 0.0 }
 0x306   : > { %v2176_v10 = vpop.f32.mrb[14].mxu1  ;;  %v1849_v23 = vmax.f32 %v1817_v32, 0.0 }
 0x307   : > { %v1715_v34 = vadd.f32 %v3200_v5, %v2176_v10  ;;  %v1484_v61 = vpop.f32.mrb[15].mxu1  ;;  %1882 = vst [vmem:[%s2822_s20 + $0x68] sm:$0xff] %v1850_v33 }
 0x308   : > { %v1710_v51 = vadd.f32 %v3202_v50, %v1484_v61  ;;  %1881 = vst [vmem:[%s2822_s20 + $0x60] sm:$0xff] %v1849_v23 }
 0x309   : > { %v1820_v35 = vadd.f32 %v3239_v21, %v1715_v34 }
 0x30a   : > { %v1819_v29 = vadd.f32 %v3239_v21, %v1710_v51  ;;  %v2179_v36 = vpop.f32.mrb[16].mxu1 }
 0x30b   : > { %v1852_v13 = vmax.f32 %v1820_v35, 0.0  ;;  %v1725_v37 = vadd.f32 %v3204_v57, %v2179_v36  ;;  %v1494_v38 = vpop.f32.mrb[17].mxu1 }
 0x30c   : > { %v1851_v40 = vmax.f32 %v1819_v29, 0.0  ;;  %v1720_v5 = vadd.f32 %v3206_v6, %v1494_v38 }
 0x30d   : > { %1884 = vst [vmem:[%s2822_s20 + $0x78] sm:$0xff] %v1852_v13  ;;  %v1822_v26 = vadd.f32 %v3239_v21, %v1725_v37 }
 0x30e   : > { %1883 = vst [vmem:[%s2822_s20 + $0x70] sm:$0xff] %v1851_v40  ;;  %v1821_v50 = vadd.f32 %v3239_v21, %v1720_v5  ;;  %v2182_v47 = vpop.f32.mrb[18].mxu1 }
 0x30f   : > { %v1854_v41 = vmax.f32 %v1822_v26, 0.0  ;;  %v1735_v43 = vadd.f32 %v3208_v8, %v2182_v47  ;;  %v1504_v45 = vpop.f32.mrb[19].mxu1 }
 0x310   : > { %v1853_v58 = vmax.f32 %v1821_v50, 0.0  ;;  %v1730_v57 = vadd.f32 %v3210_v52, %v1504_v45 }
 0x311   : > { %1886 = vst [vmem:[%s2822_s20 + $0x88] sm:$0xff] %v1854_v41  ;;  %v1824_v44 = vadd.f32 %v3239_v21, %v1735_v43 }
 0x312   : > { %1885 = vst [vmem:[%s2822_s20 + $0x80] sm:$0xff] %v1853_v58  ;;  %v1823_v6 = vadd.f32 %v3239_v21, %v1730_v57  ;;  %v2185_v46 = vpop.f32.mrb[20].mxu1 }
 0x313   : > { %v1856_v54 = vmax.f32 %v1824_v44, 0.0  ;;  %v1745_v9 = vadd.f32 %v3212_v60, %v2185_v46  ;;  %v1514_v48 = vpop.f32.mrb[21].mxu1 }
 0x314   : > { %v1855_v49 = vmax.f32 %v1823_v6, 0.0  ;;  %v1740_v8 = vadd.f32 %v3214_v11, %v1514_v48 }
 0x315   : > { %1888 = vst [vmem:[%s2822_s20 + $0x98] sm:$0xff] %v1856_v54  ;;  %v1826_v53 = vadd.f32 %v3239_v21, %v1745_v9 }
 0x316   : > { %1887 = vst [vmem:[%s2822_s20 + $0x90] sm:$0xff] %v1855_v49  ;;  %v1825_v52 = vadd.f32 %v3239_v21, %v1740_v8  ;;  %v2188_v7 = vpop.f32.mrb[22].mxu1 }
 0x317   : > { %v1858_v56 = vmax.f32 %v1826_v53, 0.0  ;;  %v1755_v20 = vadd.f32 %v3216_v12, %v2188_v7  ;;  %v1524_v62 = vpop.f32.mrb[23].mxu1 }
 0x318   : > { %v1857_v27 = vmax.f32 %v1825_v52, 0.0  ;;  %v1750_v60 = vadd.f32 %v3218_v59, %v1524_v62 }
 0x319   : > { %1890 = vst [vmem:[%s2822_s20 + $0xa8] sm:$0xff] %v1858_v56  ;;  %v1828_v22 = vadd.f32 %v3239_v21, %v1755_v20 }
 0x31a   : > { %1889 = vst [vmem:[%s2822_s20 + $0xa0] sm:$0xff] %v1857_v27  ;;  %v1827_v11 = vadd.f32 %v3239_v21, %v1750_v60  ;;  %v2191_v16 = vpop.f32.mrb[24].mxu1 }
 0x31b   : > { %v1860_v39 = vmax.f32 %v1828_v22, 0.0  ;;  %v1765_v1 = vadd.f32 %v3220_v0, %v2191_v16  ;;  %v1534_v24 = vpop.f32.mrb[25].mxu1 }
 0x31c   : > { %v1859_v2 = vmax.f32 %v1827_v11, 0.0  ;;  %v1760_v12 = vadd.f32 %v3222_v14, %v1534_v24 }
 0x31d   : > { %1892 = vst [vmem:[%s2822_s20 + $0xb8] sm:$0xff] %v1860_v39  ;;  %v1830_v25 = vadd.f32 %v3239_v21, %v1765_v1 }
 0x31e   : > { %1891 = vst [vmem:[%s2822_s20 + $0xb0] sm:$0xff] %v1859_v2  ;;  %v1829_v59 = vadd.f32 %v3239_v21, %v1760_v12  ;;  %v2194_v30 = vpop.f32.mrb[26].mxu1 }
 0x31f   : > { %v1862_v55 = vmax.f32 %v1830_v25, 0.0  ;;  %v1775_v28 = vadd.f32 %v3224_v15, %v2194_v30  ;;  %v1544_v31 = vpop.f32.mrb[27].mxu1 }
 0x320   : > { %v1861_v18 = vmax.f32 %v1829_v59, 0.0  ;;  %v1770_v0 = vadd.f32 %v3226_v63, %v1544_v31 }
 0x321   : > { %1894 = vst [vmem:[%s2822_s20 + $0xc8] sm:$0xff] %v1862_v55  ;;  %v1832_v42 = vadd.f32 %v3239_v21, %v1775_v28 }
 0x322   : > { %1893 = vst [vmem:[%s2822_s20 + $0xc0] sm:$0xff] %v1861_v18  ;;  %v1831_v14 = vadd.f32 %v3239_v21, %v1770_v0  ;;  %v2197_v32 = vpop.f32.mrb[28].mxu1 }
 0x323   : > { %v1864_v10 = vmax.f32 %v1832_v42, 0.0  ;;  %v1785_v33 = vadd.f32 %v3228_v4, %v2197_v32  ;;  %v1554_v34 = vpop.f32.mrb[29].mxu1 }
 0x324   : > { %v1863_v61 = vmax.f32 %v1831_v14, 0.0  ;;  %v1780_v15 = vadd.f32 %v3230_v17, %v1554_v34 }
 0x325   : > { %1896 = vst [vmem:[%s2822_s20 + $0xd8] sm:$0xff] %v1864_v10  ;;  %v1834_v63 = vadd.f32 %v3239_v21, %v1785_v33 }
 0x326   : > { %1895 = vst [vmem:[%s2822_s20 + $0xd0] sm:$0xff] %v1863_v61  ;;  %v1833_v23 = vadd.f32 %v3239_v21, %v1780_v15  ;;  %v2200_v51 = vpop.f32.mrb[30].mxu1 }
 0x327   : > { %v1866_v35 = vmax.f32 %v1834_v63, 0.0  ;;  %v1795_v29 = vadd.f32 %v3232_v19, %v2200_v51  ;;  %v1564_v36 = vpop.f32.mrb[31].mxu1 }
 0x328   : > { %v1865_v13 = vmax.f32 %v1833_v23, 0.0  ;;  %v1790_v4 = vadd.f32 %v3234_v3, %v1564_v36 }
 0x329   : > { %1898 = vst [vmem:[%s2822_s20 + $0xe8] sm:$0xff] %v1866_v35  ;;  %v1836_v37 = vadd.f32 %v3239_v21, %v1795_v29 }
 0x32a   : > { %1897 = vst [vmem:[%s2822_s20 + $0xe0] sm:$0xff] %v1865_v13  ;;  %v1835_v17 = vadd.f32 %v3239_v21, %v1790_v4 }
 0x32b   : > { %v1868_v38 = vmax.f32 %v1836_v37, 0.0 }
 0x32c   : > { %v1867_v40 = vmax.f32 %v1835_v17, 0.0 }
 0x32d   : > { %1900 = vst [vmem:[%s2822_s20 + $0xf8] sm:$0xff] %v1868_v38 }
 0x32e   : > { %1899 = vst [vmem:[%s2822_s20 + $0xf0] sm:$0xff] %v1867_v40 }
 0x32f PF: > { %s16_s27 = sadd.s32 1, %s2636_s27   ;;  %s3357_s21 = smov %s2616_s22 }
 0x330   : > { %p13_p0 = scmp.ge.s32.totalorder %s16_s27, 6   ;;  %s3358_s22 = smov %s2727_s10 }
 0x331   : > { %s3359_s23 = smov %s2628_s25  ;;  %s3360_s24 = smov %s2632_s26 }
 0x332   : > { %s3361_s25 = smov %s3364_s28  ;;  %s3362_s26 = smov %s3368_s29 }
 0x333   :  { %15 = sbr.rel (!%p13_p0) target bundleno = 4 (0x4), region = 131 }

// kernel: graphsage_forward.2
= control target key start
LH: loop header
LB: loop body
LE: loop exit
PB: predicated region body
PF: predicated region fallthrough
CT: control target
= control target key end

     0   :  { %s2711_s21 = smov 0   ;;  %s2713_s22 = smov 0   ;;  %s3455_s0 = inlined_call_operand.vmem [shape: bf16[512,512], index: 0, kind: input, shape index: {}]   ;;  %s3456_s1 = inlined_call_operand.vmem [shape: f32[512,128], index: 1, kind: input, shape index: {}, may-alias: {1,2}]   ;;  %s3457_s2 = inlined_call_operand.vmem [shape: f32[512,128], index: 2, kind: input, shape index: {}, may-alias: {1,2}]   ;;  %s3458_s3 = inlined_call_operand.vmem [shape: f32[128,128], index: 3, kind: input, shape index: {}]   ;;  %s3459_s4 = inlined_call_operand.vmem [shape: f32[128,128], index: 4, kind: input, shape index: {}]   ;;  %s3460_s5 = inlined_call_operand.vmem [shape: f32[1,128], index: 5, kind: input, shape index: {}]   ;;  %s3461_s6 = inlined_call_operand.vmem [shape: f32[512,128], index: 6, kind: output, shape index: {}]  }
   0x1   :  { %s2715_s23 = smov 0   ;;  %s2717_s24 = smov 0  }
   0x2   :  { %s2719_s25 = smov 0   ;;  %s2721_s26 = smov 0  }
   0x3   :  { %s2723_s27 = smov 0  }
   0x4 LB: > { %s25_s28 = sadd.s32 1, %s2663_s25  ;;  %s28_s29 = sadd.s32 1, %s2667_s26  ;;  %s2671_s27 = sphi %s2723_s27, %s16_s27   ;;  %s2667_s26 = sphi %s2721_s26, %s3467_s26   ;;  %s2663_s25 = sphi %s2719_s25, %s3466_s25   ;;  %s2659_s24 = sphi %s2717_s24, %s3465_s24   ;;  %s2655_s23 = sphi %s2715_s23, %s3464_s23   ;;  %s2651_s22 = sphi %s2713_s22, %s3463_s22   ;;  %s2647_s21 = sphi %s2711_s21, %s3462_s21  }
   0x5   : > { %p26_p0 = scmp.ge.s32.totalorder %s25_s28, 2  ;;  %p44_p1 = scmp.ne.s32.totalorder %s2651_s22, %s2647_s21 }
   0x6   : > { %p45_p2 = scmp.eq.s32.totalorder %s2671_s27, 0  ;;  %s37_s9 = sadd.s32 1, %s2651_s22 }
   0x7   : > { %s3469_s28 = smov (%p26_p0, %s25_s28), 0  ;;  %s3471_s29 = smov (!%p26_p0, %s28_s29), %s2667_s26 }
   0x8   : > { %p46_p3 = por %p45_p2, %p44_p1  ;;  %p30_p4 = scmp.ge.s32.totalorder %s3471_s29, 2 }
   0x9   : > { %s33_s30 = ssub.s32 %s2663_s25, %s3469_s28  ;;  %p2040_p6 = scmp.ge.s32.totalorder %s2671_s27, 4 }
   0xa   : > { %s3473_s29 = smov (%p30_p4, %s3471_s29), 0 }
   0xb   : > { %s32_s7 = ssub.s32 %s2667_s26, %s3473_s29  ;;  %220 = sbr.rel (%p2040_p6) target bundleno = 41 (0x29), region = 28 }
   0xc   : > { %s34_s8 = sor.u32 %s33_s30, %s32_s7 }
   0xd   : > { %p35_p5 = scmp.eq.s32.totalorder %s34_s8, 0 }
   0xf   : > { %s2762_s10 = scalar_select %p35_p5, %s2651_s22, %s37_s9  }
  0x12   : > { %223 = sbr.rel (!%p46_p3) target bundleno = 41 (0x29), region = 32  ;;  %s225_s11 = sand.u32 (%p46_p3), 1, %s2651_s22  }
  0x13   : > { %s2043_s12 = sshll.u32 (%p46_p3), %s2663_s25, 1  ;;  %s2041_s13 = sshll.u32 (%p46_p3), %s225_s11, 8 }
  0x14   : > { %s2059_s14 = sshll.u32 (%p46_p3), %s2667_s26, 7  ;;  %s2776_s20 = scalar_lea.vmem (%p46_p3), [#allocation3], %s2041_s13 }
  0x15   : > { %s231_s15 = sadd.s32 (%p46_p3), %s2059_s14, %s2043_s12 }
  0x16   : > { %s2045_s16 = sshll.u32 (%p46_p3), %s231_s15, 2 }
  0x17   : > { %s2771_s19 = scalar_lea.vmem (%p46_p3), %s3455_s0, %s2045_s16 }
  0x18   : > { %v323_v0 = vld [vmem:[%s2771_s19] sm:$0xff] (%p46_p3)  ;;  %v325_v1 = vld [vmem:[%s2771_s19 + $0x10] sm:$0xff] (%p46_p3) }
  0x19   : > { %v327_v2 = vld [vmem:[%s2771_s19 + $0x20] sm:$0xff]  ;;  %324 = vst [vmem:[%s2776_s20] sm:$0xff] %v323_v0  ;;  %326 = vst [vmem:[%s2776_s20 + $0x8] sm:$0xff] %v325_v1  ;;  %v329_v3 = vld [vmem:[%s2771_s19 + $0x30] sm:$0xff] }
  0x1a   : > { %328 = vst [vmem:[%s2776_s20 + $0x10] sm:$0xff] %v327_v2  ;;  %v331_v4 = vld [vmem:[%s2771_s19 + $0x40] sm:$0xff]  ;;  %v333_v5 = vld [vmem:[%s2771_s19 + $0x50] sm:$0xff]  ;;  %330 = vst [vmem:[%s2776_s20 + $0x18] sm:$0xff] %v329_v3 }
  0x1b   : > { %332 = vst [vmem:[%s2776_s20 + $0x20] sm:$0xff] %v331_v4  ;;  %334 = vst [vmem:[%s2776_s20 + $0x28] sm:$0xff] %v333_v5  ;;  %v335_v6 = vld [vmem:[%s2771_s19 + $0x60] sm:$0xff]  ;;  %v337_v7 = vld [vmem:[%s2771_s19 + $0x70] sm:$0xff] }
  0x1c   : > { %v339_v8 = vld [vmem:[%s2771_s19 + $0x80] sm:$0xff]  ;;  %336 = vst [vmem:[%s2776_s20 + $0x30] sm:$0xff] %v335_v6  ;;  %338 = vst [vmem:[%s2776_s20 + $0x38] sm:$0xff] %v337_v7  ;;  %v341_v9 = vld [vmem:[%s2771_s19 + $0x90] sm:$0xff] }
  0x1d   : > { %340 = vst [vmem:[%s2776_s20 + $0x40] sm:$0xff] %v339_v8  ;;  %v343_v10 = vld [vmem:[%s2771_s19 + $0xa0] sm:$0xff]  ;;  %v345_v11 = vld [vmem:[%s2771_s19 + $0xb0] sm:$0xff]  ;;  %342 = vst [vmem:[%s2776_s20 + $0x48] sm:$0xff] %v341_v9 }
  0x1e   : > { %344 = vst [vmem:[%s2776_s20 + $0x50] sm:$0xff] %v343_v10  ;;  %346 = vst [vmem:[%s2776_s20 + $0x58] sm:$0xff] %v345_v11  ;;  %v347_v12 = vld [vmem:[%s2771_s19 + $0xc0] sm:$0xff]  ;;  %v349_v13 = vld [vmem:[%s2771_s19 + $0xd0] sm:$0xff] }
  0x1f   : > { %v351_v14 = vld [vmem:[%s2771_s19 + $0xe0] sm:$0xff]  ;;  %348 = vst [vmem:[%s2776_s20 + $0x60] sm:$0xff] %v347_v12  ;;  %350 = vst [vmem:[%s2776_s20 + $0x68] sm:$0xff] %v349_v13  ;;  %v353_v15 = vld [vmem:[%s2771_s19 + $0xf0] sm:$0xff] }
  0x20   : > { %352 = vst [vmem:[%s2776_s20 + $0x70] sm:$0xff] %v351_v14  ;;  %v355_v16 = vld [vmem:[%s2771_s19 + $0x100] sm:$0xff]  ;;  %v357_v17 = vld [vmem:[%s2771_s19 + $0x110] sm:$0xff]  ;;  %354 = vst [vmem:[%s2776_s20 + $0x78] sm:$0xff] %v353_v15 }
  0x21   : > { %356 = vst [vmem:[%s2776_s20 + $0x80] sm:$0xff] %v355_v16  ;;  %358 = vst [vmem:[%s2776_s20 + $0x88] sm:$0xff] %v357_v17  ;;  %v359_v18 = vld [vmem:[%s2771_s19 + $0x120] sm:$0xff]  ;;  %v361_v19 = vld [vmem:[%s2771_s19 + $0x130] sm:$0xff] }
  0x22   : > { %v363_v20 = vld [vmem:[%s2771_s19 + $0x140] sm:$0xff]  ;;  %360 = vst [vmem:[%s2776_s20 + $0x90] sm:$0xff] %v359_v18  ;;  %362 = vst [vmem:[%s2776_s20 + $0x98] sm:$0xff] %v361_v19  ;;  %v365_v21 = vld [vmem:[%s2771_s19 + $0x150] sm:$0xff] }
  0x23   : > { %364 = vst [vmem:[%s2776_s20 + $0xa0] sm:$0xff] %v363_v20  ;;  %v367_v22 = vld [vmem:[%s2771_s19 + $0x160] sm:$0xff]  ;;  %v369_v23 = vld [vmem:[%s2771_s19 + $0x170] sm:$0xff]  ;;  %366 = vst [vmem:[%s2776_s20 + $0xa8] sm:$0xff] %v365_v21 }
  0x24   : > { %368 = vst [vmem:[%s2776_s20 + $0xb0] sm:$0xff] %v367_v22  ;;  %370 = vst [vmem:[%s2776_s20 + $0xb8] sm:$0xff] %v369_v23  ;;  %v371_v24 = vld [vmem:[%s2771_s19 + $0x180] sm:$0xff]  ;;  %v373_v25 = vld [vmem:[%s2771_s19 + $0x190] sm:$0xff] }
  0x25   : > { %v375_v26 = vld [vmem:[%s2771_s19 + $0x1a0] sm:$0xff]  ;;  %372 = vst [vmem:[%s2776_s20 + $0xc0] sm:$0xff] %v371_v24  ;;  %374 = vst [vmem:[%s2776_s20 + $0xc8] sm:$0xff] %v373_v25  ;;  %v377_v27 = vld [vmem:[%s2771_s19 + $0x1b0] sm:$0xff] }
  0x26   : > { %376 = vst [vmem:[%s2776_s20 + $0xd0] sm:$0xff] %v375_v26  ;;  %v379_v28 = vld [vmem:[%s2771_s19 + $0x1c0] sm:$0xff]  ;;  %v381_v29 = vld [vmem:[%s2771_s19 + $0x1d0] sm:$0xff]  ;;  %378 = vst [vmem:[%s2776_s20 + $0xd8] sm:$0xff] %v377_v27 }
  0x27   : > { %380 = vst [vmem:[%s2776_s20 + $0xe0] sm:$0xff] %v379_v28  ;;  %382 = vst [vmem:[%s2776_s20 + $0xe8] sm:$0xff] %v381_v29  ;;  %v383_v30 = vld [vmem:[%s2771_s19 + $0x1e0] sm:$0xff]  ;;  %v385_v31 = vld [vmem:[%s2771_s19 + $0x1f0] sm:$0xff] }
  0x28   : > { %384 = vst [vmem:[%s2776_s20 + $0xf0] sm:$0xff] %v383_v30  ;;  %386 = vst [vmem:[%s2776_s20 + $0xf8] sm:$0xff] %v385_v31 }
  0x29 PF: > { %p2046_p7 = scmp.ge.s32.totalorder %s2671_s27, 1  ;;  %p409_p8 = scmp.lt.s32.totalorder %s2671_s27, 5 }
  0x2b   : > { %p410_p9 = pnand %p2046_p7, %p409_p8 }
  0x2c   : > { %s416_s30 = sand.u32 (!%p410_p9), 1, %s2647_s21   ;;  %s2048_s7 = sshll.u32 (!%p410_p9), %s2655_s23, 5 }
  0x2d   : > { %413 = sbr.rel (%p410_p9) target bundleno = 816 (0x330), region = 78  ;;  %s2047_s8 = sshll.u32 (!%p410_p9), %s416_s30, 8 }
  0x2e   : > { %p458_p10 = scmp.lt.s32.totalorder (!%p410_p9), %s2048_s7, 63  ;;  %s2050_s9 = sshll.u32 (!%p410_p9), %s2659_s24, 5 }
  0x2f   : > { %p464_p11 = scmp.lt.s32.totalorder (!%p410_p9), %s2050_s9, 63  ;;  %s2859_s24 = scalar_lea.vmem (!%p410_p9), [#allocation3], %s2047_s8 }
  0x30   : > { %p2054_p12 = scmp.ne.s32.totalorder (!%p410_p9), %s2655_s23, 0 }
  0x34   : > { %s3475_s7 = smov (!%p458_p10, %s2048_s7), 63  ;;  %s3477_s9 = smov (!%p464_p11, %s2050_s9), 63 }
  0x35   : > { %s2049_s11 = sshll.u32 %s3475_s7, 3  ;;  %s2051_s15 = sshll.u32 %s3477_s9, 3  ;;  %v2673_v32 = vmov (!%p2054_p12), 0.0  }
  0x36   : > { %s2847_s14 = scalar_lea.vmem %s3456_s1, %s2049_s11  ;;  %s2852_s18 = scalar_lea.vmem %s3457_s2, %s2051_s15  ;;  %479 = vst [vmem:[#allocation2] sm:$0xff] (!%p2054_p12), %v2673_v32  ;;  %480 = vst [vmem:[#allocation2 + $0x8] sm:$0xff] (!%p2054_p12), %v2673_v32 }
  0x37   : > { %s2857_s20 = scalar_lea.vmem %s3461_s6, %s2051_s15  ;;  %478 = sbr.rel (%p2054_p12) target bundleno = 70 (0x46), region = 86  ;;  %481 = vst [vmem:[#allocation2 + $0x10] sm:$0xff] (!%p2054_p12), %v2673_v32  ;;  %482 = vst [vmem:[#allocation2 + $0x18] sm:$0xff] (!%p2054_p12), %v2673_v32 }
  0x38   : > { %483 = vst [vmem:[#allocation2 + $0x20] sm:$0xff] (!%p2054_p12), %v2673_v32  ;;  %484 = vst [vmem:[#allocation2 + $0x28] sm:$0xff] (!%p2054_p12), %v2673_v32 }
  0x39   : > { %485 = vst [vmem:[#allocation2 + $0x30] sm:$0xff] (!%p2054_p12), %v2673_v32  ;;  %486 = vst [vmem:[#allocation2 + $0x38] sm:$0xff] (!%p2054_p12), %v2673_v32 }
  0x3a   : > { %487 = vst [vmem:[#allocation2 + $0x40] sm:$0xff] (!%p2054_p12), %v2673_v32  ;;  %488 = vst [vmem:[#allocation2 + $0x48] sm:$0xff] (!%p2054_p12), %v2673_v32 }
  0x3b   : > { %489 = vst [vmem:[#allocation2 + $0x50] sm:$0xff] (!%p2054_p12), %v2673_v32  ;;  %490 = vst [vmem:[#allocation2 + $0x58] sm:$0xff] (!%p2054_p12), %v2673_v32 }
  0x3c   : > { %491 = vst [vmem:[#allocation2 + $0x60] sm:$0xff] (!%p2054_p12), %v2673_v32  ;;  %492 = vst [vmem:[#allocation2 + $0x68] sm:$0xff] (!%p2054_p12), %v2673_v32 }
  0x3d   : > { %493 = vst [vmem:[#allocation2 + $0x70] sm:$0xff] (!%p2054_p12), %v2673_v32  ;;  %494 = vst [vmem:[#allocation2 + $0x78] sm:$0xff] (!%p2054_p12), %v2673_v32 }
  0x3e   : > { %495 = vst [vmem:[#allocation2 + $0x80] sm:$0xff] %v2673_v32  ;;  %496 = vst [vmem:[#allocation2 + $0x88] sm:$0xff] %v2673_v32 }
  0x3f   : > { %497 = vst [vmem:[#allocation2 + $0x90] sm:$0xff] %v2673_v32  ;;  %498 = vst [vmem:[#allocation2 + $0x98] sm:$0xff] %v2673_v32 }
  0x40   : > { %499 = vst [vmem:[#allocation2 + $0xa0] sm:$0xff] %v2673_v32  ;;  %500 = vst [vmem:[#allocation2 + $0xa8] sm:$0xff] %v2673_v32 }
  0x41   : > { %501 = vst [vmem:[#allocation2 + $0xb0] sm:$0xff] %v2673_v32  ;;  %502 = vst [vmem:[#allocation2 + $0xb8] sm:$0xff] %v2673_v32 }
  0x42   : > { %503 = vst [vmem:[#allocation2 + $0xc0] sm:$0xff] %v2673_v32  ;;  %504 = vst [vmem:[#allocation2 + $0xc8] sm:$0xff] %v2673_v32 }
  0x43   : > { %505 = vst [vmem:[#allocation2 + $0xd0] sm:$0xff] %v2673_v32  ;;  %506 = vst [vmem:[#allocation2 + $0xd8] sm:$0xff] %v2673_v32 }
  0x44   : > { %507 = vst [vmem:[#allocation2 + $0xe0] sm:$0xff] %v2673_v32  ;;  %508 = vst [vmem:[#allocation2 + $0xe8] sm:$0xff] %v2673_v32 }
  0x45   : > { %509 = vst [vmem:[#allocation2 + $0xf0] sm:$0xff] %v2673_v32  ;;  %510 = vst [vmem:[#allocation2 + $0xf8] sm:$0xff] %v2673_v32 }
  0x46 PF: > { %v639_v33 = vld [vmem:[%s2847_s14] sm:$0xff]  ;;  %v640_v34 = vld [vmem:[%s2847_s14 + $0x8] sm:$0xff]  ;;  %v641_v35 = vld [vmem:[%s2847_s14 + $0x10] sm:$0xff]  ;;  %v2674_v36 = vmov 0.0|0.0   ;;  %p2055_p13 = scmp.ne.s32.totalorder %s2655_s23, 1 }
  0x47   : > { %2316 = vmatprep.subr.bf16.mxu0 %v2674_v36  ;;  %2428 = vmatprep.subr.bf16.mxu1 %v2674_v36  ;;  %v2317_v37 = vpack.c.bf16 %v640_v34, %v639_v33  ;;  %v642_v38 = vld [vmem:[%s2847_s14 + $0x18] sm:$0xff]  ;;  %v643_v40 = vld [vmem:[%s2847_s14 + $0x20] sm:$0xff]  ;;  %v644_v41 = vld [vmem:[%s2847_s14 + $0x28] sm:$0xff] }
  0x48   : > { %v2320_v39 = vpack.c.bf16 %v642_v38, %v641_v35  ;;  %v2323_v42 = vpack.c.bf16 %v644_v41, %v643_v40  ;;  %v645_v43 = vld [vmem:[%s2847_s14 + $0x30] sm:$0xff]  ;;  %v646_v44 = vld [vmem:[%s2847_s14 + $0x38] sm:$0xff]  ;;  %v2877_v45 = vld [vmem:[%s2859_s24] sm:$0xff] }
  0x49   : > { %2318 = vmatpush1.bf16.msra.mxu0 %v2317_v37  ;;  %2444 = vmatpush1.bf16.msra.mxu1 %v2317_v37  ;;  %v2326_v46 = vpack.c.bf16 %v646_v44, %v645_v43  ;;  %v544_v47 = vunpack.c.h.bf16 %v2877_v45  ;;  %v2881_v48 = vld [vmem:[%s2859_s24 + $0x80] sm:$0xff]  ;;  %v648_v50 = vld [vmem:[%s2847_s14 + $0x48] sm:$0xff]  ;;  %v649_v53 = vld [vmem:[%s2847_s14 + $0x50] sm:$0xff]  ;;  %v543_v24 = vunpack.c.l.bf16 %v2877_v45 }
  0x4a   : > { %2319 = vmatprep.subr.bf16.mxu0 %v2674_v36  ;;  %2429 = vmatprep.subr.bf16.mxu1 %v2674_v36  ;;  %v647_v49 = vld [vmem:[%s2847_s14 + $0x40] sm:$0xff]  ;;  %v576_v51 = vunpack.c.h.bf16 %v2881_v48  ;;  %v650_v54 = vld [vmem:[%s2847_s14 + $0x58] sm:$0xff]  ;;  %v652_v57 = vld [vmem:[%s2847_s14 + $0x68] sm:$0xff]  ;;  %v575_v25 = vunpack.c.l.bf16 %v2881_v48 }
  0x4b   : > { %735 = vmatprep.mubr.f32.mxu0 %v544_v47  ;;  %v2329_v52 = vpack.c.bf16 %v648_v50, %v647_v49  ;;  %v2332_v55 = vpack.c.bf16 %v650_v54, %v649_v53  ;;  %v651_v56 = vld [vmem:[%s2847_s14 + $0x60] sm:$0xff]  ;;  %v653_v59 = vld [vmem:[%s2847_s14 + $0x70] sm:$0xff]  ;;  %v654_v60 = vld [vmem:[%s2847_s14 + $0x78] sm:$0xff] }
  0x4c   : > { %815 = vmatprep.mubr.f32.mxu1 %v576_v51  ;;  %v2335_v58 = vpack.c.bf16 %v652_v57, %v651_v56  ;;  %v2338_v61 = vpack.c.bf16 %v654_v60, %v653_v59  ;;  %v655_v62 = vld [vmem:[%s2847_s14 + $0x80] sm:$0xff]  ;;  %v656_v63 = vld [vmem:[%s2847_s14 + $0x88] sm:$0xff]  ;;  %v657_v1 = vld [vmem:[%s2847_s14 + $0x90] sm:$0xff] }
  0x4d   : > { %2321 = vmatpush1.bf16.msra.mxu0 %v2320_v39  ;;  %2445 = vmatpush1.bf16.msra.mxu1 %v2320_v39  ;;  %v2341_v0 = vpack.c.bf16 %v656_v63, %v655_v62  ;;  %v658_v2 = vld [vmem:[%s2847_s14 + $0x98] sm:$0xff]  ;;  %v659_v4 = vld [vmem:[%s2847_s14 + $0xa0] sm:$0xff]  ;;  %v660_v5 = vld [vmem:[%s2847_s14 + $0xa8] sm:$0xff] }
  0x4e   : > { %2322 = vmatprep.subr.bf16.mxu0 %v2674_v36  ;;  %2430 = vmatprep.subr.bf16.mxu1 %v2674_v36  ;;  %v2344_v3 = vpack.c.bf16 %v658_v2, %v657_v1  ;;  %v2347_v6 = vpack.c.bf16 %v660_v5, %v659_v4  ;;  %v661_v7 = vld [vmem:[%s2847_s14 + $0xb0] sm:$0xff]  ;;  %v662_v8 = vld [vmem:[%s2847_s14 + $0xb8] sm:$0xff]  ;;  %v663_v10 = vld [vmem:[%s2847_s14 + $0xc0] sm:$0xff] }
  0x4f   : > { %v2350_v9 = vpack.c.bf16 %v662_v8, %v661_v7  ;;  %v664_v11 = vld [vmem:[%s2847_s14 + $0xc8] sm:$0xff]  ;;  %v665_v13 = vld [vmem:[%s2847_s14 + $0xd0] sm:$0xff]  ;;  %v666_v14 = vld [vmem:[%s2847_s14 + $0xd8] sm:$0xff] }
  0x50   : > { %v2353_v12 = vpack.c.bf16 %v664_v11, %v663_v10  ;;  %v2356_v15 = vpack.c.bf16 %v666_v14, %v665_v13  ;;  %v667_v16 = vld [vmem:[%s2847_s14 + $0xe0] sm:$0xff]  ;;  %v668_v17 = vld [vmem:[%s2847_s14 + $0xe8] sm:$0xff]  ;;  %v669_v19 = vld [vmem:[%s2847_s14 + $0xf0] sm:$0xff] }
  0x51   : > { %2324 = vmatpush1.bf16.msra.mxu0 %v2323_v42  ;;  %2446 = vmatpush1.bf16.msra.mxu1 %v2323_v42  ;;  %v2359_v18 = vpack.c.bf16 %v668_v17, %v667_v16  ;;  %v670_v20 = vld [vmem:[%s2847_s14 + $0xf8] sm:$0xff]  ;;  %v512_v22 = vld [vmem:[%s2859_s24 + $0x8] sm:$0xff]  ;;  %v513_v28 = vld [vmem:[%s2859_s24 + $0x10] sm:$0xff] }
  0x52   : > { %2325 = vmatprep.subr.bf16.mxu0 %v2674_v36  ;;  %2431 = vmatprep.subr.bf16.mxu1 %v2674_v36  ;;  %v2362_v21 = vpack.c.bf16 %v670_v20, %v669_v19  ;;  %v528_v23 = vld [vmem:[%s2859_s24 + $0x88] sm:$0xff]  ;;  %v546_v26 = vunpack.c.h.bf16 %v512_v22  ;;  %v529_v29 = vld [vmem:[%s2859_s24 + $0x90] sm:$0xff]  ;;  %v545_v30 = vunpack.c.l.bf16 %v512_v22  ;;  %v548_v32 = vunpack.c.h.bf16 %v513_v28  ;;  %v514_v34 = vld [vmem:[%s2859_s24 + $0x18] sm:$0xff] }
  0x53   : > { %v578_v27 = vunpack.c.h.bf16 %v528_v23  ;;  %v577_v31 = vunpack.c.l.bf16 %v528_v23  ;;  %v580_v33 = vunpack.c.h.bf16 %v529_v29  ;;  %v530_v35 = vld [vmem:[%s2859_s24 + $0x98] sm:$0xff]  ;;  %v579_v37 = vunpack.c.l.bf16 %v529_v29  ;;  %v515_v40 = vld [vmem:[%s2859_s24 + $0x20] sm:$0xff]  ;;  %v532_v47 = vld [vmem:[%s2859_s24 + $0xa8] sm:$0xff] }
  0x54   : > { %v550_v38 = vunpack.c.h.bf16 %v514_v34  ;;  %v582_v39 = vunpack.c.h.bf16 %v530_v35  ;;  %v531_v41 = vld [vmem:[%s2859_s24 + $0xa0] sm:$0xff]  ;;  %v549_v42 = vunpack.c.l.bf16 %v514_v34  ;;  %v581_v43 = vunpack.c.l.bf16 %v530_v35  ;;  %v533_v53 = vld [vmem:[%s2859_s24 + $0xb0] sm:$0xff]  ;;  %v534_v59 = vld [vmem:[%s2859_s24 + $0xb8] sm:$0xff] }
  0x55   : > { %2327 = vmatpush1.bf16.msra.mxu0 %v2326_v46  ;;  %2447 = vmatpush1.bf16.msra.mxu1 %v2326_v46  ;;  %v552_v44 = vunpack.c.h.bf16 %v515_v40  ;;  %v584_v45 = vunpack.c.h.bf16 %v531_v41  ;;  %v516_v46 = vld [vmem:[%s2859_s24 + $0x28] sm:$0xff]  ;;  %v551_v48 = vunpack.c.l.bf16 %v515_v40  ;;  %v583_v49 = vunpack.c.l.bf16 %v531_v41  ;;  %v535_v1 = vld [vmem:[%s2859_s24 + $0xc0] sm:$0xff]  ;;  %v537_v13 = vld [vmem:[%s2859_s24 + $0xd0] sm:$0xff] }
  0x56   : > { %2328 = vmatprep.subr.bf16.mxu0 %v2674_v36  ;;  %2432 = vmatprep.subr.bf16.mxu1 %v2674_v36  ;;  %v554_v50 = vunpack.c.h.bf16 %v516_v46  ;;  %v586_v51 = vunpack.c.h.bf16 %v532_v47  ;;  %v553_v54 = vunpack.c.l.bf16 %v516_v46  ;;  %v588_v57 = vunpack.c.h.bf16 %v533_v53  ;;  %v536_v7 = vld [vmem:[%s2859_s24 + $0xc8] sm:$0xff]  ;;  %v538_v19 = vld [vmem:[%s2859_s24 + $0xd8] sm:$0xff] }
  0x57   : > { %v590_v63 = vunpack.c.h.bf16 %v534_v59  ;;  %v592_v5 = vunpack.c.h.bf16 %v535_v1  ;;  %v594_v11 = vunpack.c.h.bf16 %v536_v7  ;;  %v596_v17 = vunpack.c.h.bf16 %v537_v13 }
  0x58   : > { %v598_v23 = vunpack.c.h.bf16 %v538_v19 }
  0x59   : > { %2330 = vmatpush1.bf16.msra.mxu0 %v2329_v52  ;;  %2448 = vmatpush1.bf16.msra.mxu1 %v2329_v52  ;;  %v517_v52 = vld [vmem:[%s2859_s24 + $0x30] sm:$0xff] }
  0x5a   : > { %2331 = vmatprep.subr.bf16.mxu0 %v2674_v36  ;;  %2433 = vmatprep.subr.bf16.mxu1 %v2674_v36  ;;  %v556_v56 = vunpack.c.h.bf16 %v517_v52  ;;  %v555_v60 = vunpack.c.l.bf16 %v517_v52 }
  0x5d   : > { %2333 = vmatpush1.bf16.msra.mxu0 %v2332_v55  ;;  %2449 = vmatpush1.bf16.msra.mxu1 %v2332_v55  ;;  %v585_v55 = vunpack.c.l.bf16 %v532_v47 }
  0x5e   : > { %2334 = vmatprep.subr.bf16.mxu0 %v2674_v36  ;;  %2434 = vmatprep.subr.bf16.mxu1 %v2674_v36 }
  0x61   : > { %2336 = vmatpush1.bf16.msra.mxu0 %v2335_v58  ;;  %2450 = vmatpush1.bf16.msra.mxu1 %v2335_v58  ;;  %v518_v58 = vld [vmem:[%s2859_s24 + $0x38] sm:$0xff] }
  0x62   : > { %2337 = vmatprep.subr.bf16.mxu0 %v2674_v36  ;;  %2435 = vmatprep.subr.bf16.mxu1 %v2674_v36  ;;  %v558_v62 = vunpack.c.h.bf16 %v518_v58  ;;  %v557_v2 = vunpack.c.l.bf16 %v518_v58  ;;  %v608_v58 = vld [vmem:[#allocation2 + $0x8] sm:$0xff] }
  0x65   : > { %2339 = vmatpush1.bf16.msra.mxu0 %v2338_v61  ;;  %2451 = vmatpush1.bf16.msra.mxu1 %v2338_v61  ;;  %v587_v61 = vunpack.c.l.bf16 %v533_v53 }
  0x66   : > { %2340 = vmatprep.subr.bf16.mxu0 %v2674_v36  ;;  %2436 = vmatprep.subr.bf16.mxu1 %v2674_v36 }
  0x69   : > { %2342 = vmatpush1.bf16.msra.mxu0 %v2341_v0  ;;  %2452 = vmatpush1.bf16.msra.mxu1 %v2341_v0  ;;  %v519_v0 = vld [vmem:[%s2859_s24 + $0x40] sm:$0xff] }
  0x6a   : > { %2343 = vmatprep.subr.bf16.mxu0 %v2674_v36  ;;  %2437 = vmatprep.subr.bf16.mxu1 %v2674_v36  ;;  %v560_v4 = vunpack.c.h.bf16 %v519_v0  ;;  %v559_v8 = vunpack.c.l.bf16 %v519_v0 }
  0x6d   : > { %2345 = vmatpush1.bf16.msra.mxu0 %v2344_v3  ;;  %2453 = vmatpush1.bf16.msra.mxu1 %v2344_v3  ;;  %v589_v3 = vunpack.c.l.bf16 %v534_v59  ;;  %v624_v59 = vld [vmem:[#allocation2 + $0x88] sm:$0xff] }
  0x6e   : > { %2346 = vmatprep.subr.bf16.mxu0 %v2674_v36  ;;  %2438 = vmatprep.subr.bf16.mxu1 %v2674_v36 }
  0x71   : > { %2348 = vmatpush1.bf16.msra.mxu0 %v2347_v6  ;;  %2454 = vmatpush1.bf16.msra.mxu1 %v2347_v6  ;;  %v520_v6 = vld [vmem:[%s2859_s24 + $0x48] sm:$0xff] }
  0x72   : > { %2349 = vmatprep.subr.bf16.mxu0 %v2674_v36  ;;  %2439 = vmatprep.subr.bf16.mxu1 %v2674_v36  ;;  %v562_v10 = vunpack.c.h.bf16 %v520_v6  ;;  %v561_v14 = vunpack.c.l.bf16 %v520_v6 }
  0x75   : > { %2351 = vmatpush1.bf16.msra.mxu0 %v2350_v9  ;;  %2455 = vmatpush1.bf16.msra.mxu1 %v2350_v9  ;;  %v591_v9 = vunpack.c.l.bf16 %v535_v1 }
  0x76   : > { %2352 = vmatprep.subr.bf16.mxu0 %v2674_v36  ;;  %2440 = vmatprep.subr.bf16.mxu1 %v2674_v36 }
  0x79   : > { %2354 = vmatpush1.bf16.msra.mxu0 %v2353_v12  ;;  %2456 = vmatpush1.bf16.msra.mxu1 %v2353_v12  ;;  %v521_v12 = vld [vmem:[%s2859_s24 + $0x50] sm:$0xff] }
  0x7a   : > { %2355 = vmatprep.subr.bf16.mxu0 %v2674_v36  ;;  %2441 = vmatprep.subr.bf16.mxu1 %v2674_v36  ;;  %v564_v16 = vunpack.c.h.bf16 %v521_v12  ;;  %v563_v20 = vunpack.c.l.bf16 %v521_v12 }
  0x7d   : > { %2357 = vmatpush1.bf16.msra.mxu0 %v2356_v15  ;;  %2457 = vmatpush1.bf16.msra.mxu1 %v2356_v15  ;;  %v593_v15 = vunpack.c.l.bf16 %v536_v7 }
  0x7e   : > { %2358 = vmatprep.subr.bf16.mxu0 %v2674_v36  ;;  %2442 = vmatprep.subr.bf16.mxu1 %v2674_v36 }
  0x81   : > { %2360 = vmatpush1.bf16.msra.mxu0 %v2359_v18  ;;  %2458 = vmatpush1.bf16.msra.mxu1 %v2359_v18  ;;  %v522_v18 = vld [vmem:[%s2859_s24 + $0x58] sm:$0xff] }
  0x82   : > { %2361 = vmatprep.subr.bf16.mxu0 %v2674_v36  ;;  %2443 = vmatprep.subr.bf16.mxu1 %v2674_v36  ;;  %v547_v36 = vunpack.c.l.bf16 %v513_v28  ;;  %v566_v22 = vunpack.c.h.bf16 %v522_v18 }
  0x85   : > { %2363 = vmatpush1.bf16.msra.mxu0 %v2362_v21  ;;  %2459 = vmatpush1.bf16.msra.mxu1 %v2362_v21  ;;  %v595_v21 = vunpack.c.l.bf16 %v537_v13 }
  0x88   : > { %736 = vmatmul.mubr.f32.vlgmr.msra.gmra.mrb[0].mxu0 %v543_v24  ;;  %816 = vmatmul.mubr.f32.vlgmr.msra.gmra.mrb[0].mxu1 %v575_v25  ;;  %v523_v24 = vld [vmem:[%s2859_s24 + $0x60] sm:$0xff] }
  0x89   : > { %740 = vmatprep.mubr.f32.mxu0 %v546_v26  ;;  %820 = vmatprep.mubr.f32.mxu1 %v578_v27  ;;  %v539_v25 = vld [vmem:[%s2859_s24 + $0xe0] sm:$0xff]  ;;  %v565_v26 = vunpack.c.l.bf16 %v522_v18  ;;  %v597_v27 = vunpack.c.l.bf16 %v538_v19  ;;  %v568_v28 = vunpack.c.h.bf16 %v523_v24 }
  0x8a   : > { %v600_v29 = vunpack.c.h.bf16 %v539_v25  ;;  %v611_v18 = vld [vmem:[#allocation2 + $0x20] sm:$0xff] }
  0x8b   : > { %v627_v19 = vld [vmem:[#allocation2 + $0xa0] sm:$0xff] }
  0x8c   : > { %741 = vmatmul.mubr.f32.gmra.mrb[2].mxu0 %v545_v30  ;;  %821 = vmatmul.mubr.f32.gmra.mrb[2].mxu1 %v577_v31  ;;  %v524_v30 = vld [vmem:[%s2859_s24 + $0x68] sm:$0xff] }
  0x8d   : > { %745 = vmatprep.mubr.f32.mxu0 %v548_v32  ;;  %825 = vmatprep.mubr.f32.mxu1 %v580_v33  ;;  %v540_v31 = vld [vmem:[%s2859_s24 + $0xe8] sm:$0xff]  ;;  %v567_v32 = vunpack.c.l.bf16 %v523_v24  ;;  %v599_v33 = vunpack.c.l.bf16 %v539_v25  ;;  %v570_v34 = vunpack.c.h.bf16 %v524_v30 }
  0x8e   : > { %v602_v35 = vunpack.c.h.bf16 %v540_v31 }
  0x90   : > { %746 = vmatmul.mubr.f32.gmra.mrb[4].mxu0 %v547_v36  ;;  %826 = vmatmul.mubr.f32.gmra.mrb[4].mxu1 %v579_v37  ;;  %v525_v36 = vld [vmem:[%s2859_s24 + $0x70] sm:$0xff] }
  0x91   : > { %750 = vmatprep.mubr.f32.mxu0 %v550_v38  ;;  %830 = vmatprep.mubr.f32.mxu1 %v582_v39  ;;  %v541_v37 = vld [vmem:[%s2859_s24 + $0xf0] sm:$0xff]  ;;  %v569_v38 = vunpack.c.l.bf16 %v524_v30  ;;  %v601_v39 = vunpack.c.l.bf16 %v540_v31  ;;  %v572_v40 = vunpack.c.h.bf16 %v525_v36 }
  0x92   : > { %v604_v41 = vunpack.c.h.bf16 %v541_v37 }
  0x94   : > { %751 = vmatmul.mubr.f32.gmra.mrb[6].mxu0 %v549_v42  ;;  %831 = vmatmul.mubr.f32.gmra.mrb[6].mxu1 %v581_v43  ;;  %v526_v42 = vld [vmem:[%s2859_s24 + $0x78] sm:$0xff] }
  0x95   : > { %755 = vmatprep.mubr.f32.mxu0 %v552_v44  ;;  %835 = vmatprep.mubr.f32.mxu1 %v584_v45  ;;  %v542_v43 = vld [vmem:[%s2859_s24 + $0xf8] sm:$0xff]  ;;  %v571_v44 = vunpack.c.l.bf16 %v525_v36  ;;  %v603_v45 = vunpack.c.l.bf16 %v541_v37  ;;  %v574_v46 = vunpack.c.h.bf16 %v526_v42 }
  0x96   : > { %v606_v47 = vunpack.c.h.bf16 %v542_v43 }
  0x98   : > { %756 = vmatmul.mubr.f32.gmra.mrb[8].mxu0 %v551_v48  ;;  %836 = vmatmul.mubr.f32.gmra.mrb[8].mxu1 %v583_v49  ;;  %v573_v48 = vunpack.c.l.bf16 %v526_v42  ;;  %v605_v49 = vunpack.c.l.bf16 %v542_v43  ;;  %v614_v42 = vld [vmem:[#allocation2 + $0x38] sm:$0xff] }
  0x99   : > { %760 = vmatprep.mubr.f32.mxu0 %v554_v50  ;;  %840 = vmatprep.mubr.f32.mxu1 %v586_v51  ;;  %v607_v50 = vld [vmem:[#allocation2] sm:$0xff]  ;;  %v630_v43 = vld [vmem:[#allocation2 + $0xb8] sm:$0xff] }
  0x9a   : > { %v623_v51 = vld [vmem:[#allocation2 + $0x80] sm:$0xff] }
  0x9c   : > { %761 = vmatmul.mubr.f32.gmra.mrb[10].mxu0 %v553_v54  ;;  %841 = vmatmul.mubr.f32.gmra.mrb[10].mxu1 %v585_v55 }
  0x9d   : > { %765 = vmatprep.mubr.f32.mxu0 %v556_v56  ;;  %845 = vmatprep.mubr.f32.mxu1 %v588_v57 }
  0xa0   : > { %766 = vmatmul.mubr.f32.gmra.mrb[12].mxu0 %v555_v60  ;;  %846 = vmatmul.mubr.f32.gmra.mrb[12].mxu1 %v587_v61 }
  0xa1   : > { %770 = vmatprep.mubr.f32.mxu0 %v558_v62  ;;  %850 = vmatprep.mubr.f32.mxu1 %v590_v63 }
  0xa4   : > { %771 = vmatmul.mubr.f32.gmra.mrb[14].mxu0 %v557_v2  ;;  %851 = vmatmul.mubr.f32.gmra.mrb[14].mxu1 %v589_v3  ;;  %v609_v2 = vld [vmem:[#allocation2 + $0x10] sm:$0xff] }
  0xa5   : > { %775 = vmatprep.mubr.f32.mxu0 %v560_v4  ;;  %855 = vmatprep.mubr.f32.mxu1 %v592_v5  ;;  %v625_v3 = vld [vmem:[#allocation2 + $0x90] sm:$0xff] }
  0xa8   : > { %776 = vmatmul.mubr.f32.gmra.mrb[16].mxu0 %v559_v8  ;;  %856 = vmatmul.mubr.f32.gmra.mrb[16].mxu1 %v591_v9 }
  0xa9   : > { %780 = vmatprep.mubr.f32.mxu0 %v562_v10  ;;  %860 = vmatprep.mubr.f32.mxu1 %v594_v11  ;;  %v610_v10 = vld [vmem:[#allocation2 + $0x18] sm:$0xff] }
  0xaa   : > { %v626_v11 = vld [vmem:[#allocation2 + $0x98] sm:$0xff] }
  0xac   : > { %781 = vmatmul.mubr.f32.gmra.mrb[18].mxu0 %v561_v14  ;;  %861 = vmatmul.mubr.f32.gmra.mrb[18].mxu1 %v593_v15 }
  0xad   : > { %785 = vmatprep.mubr.f32.mxu0 %v564_v16  ;;  %865 = vmatprep.mubr.f32.mxu1 %v596_v17 }
  0xb0   : > { %786 = vmatmul.mubr.f32.gmra.mrb[20].mxu0 %v563_v20  ;;  %866 = vmatmul.mubr.f32.gmra.mrb[20].mxu1 %v595_v21 }
  0xb1   : > { %790 = vmatprep.mubr.f32.mxu0 %v566_v22  ;;  %870 = vmatprep.mubr.f32.mxu1 %v598_v23 }
  0xb4   : > { %791 = vmatmul.mubr.f32.gmra.mrb[22].mxu0 %v565_v26  ;;  %871 = vmatmul.mubr.f32.gmra.mrb[22].mxu1 %v597_v27  ;;  %v612_v26 = vld [vmem:[#allocation2 + $0x28] sm:$0xff] }
  0xb5   : > { %795 = vmatprep.mubr.f32.mxu0 %v568_v28  ;;  %875 = vmatprep.mubr.f32.mxu1 %v600_v29  ;;  %v628_v27 = vld [vmem:[#allocation2 + $0xa8] sm:$0xff] }
  0xb8   : > { %796 = vmatmul.mubr.f32.gmra.mrb[24].mxu0 %v567_v32  ;;  %876 = vmatmul.mubr.f32.gmra.mrb[24].mxu1 %v599_v33 }
  0xb9   : > { %800 = vmatprep.mubr.f32.mxu0 %v570_v34  ;;  %880 = vmatprep.mubr.f32.mxu1 %v602_v35  ;;  %v613_v34 = vld [vmem:[#allocation2 + $0x30] sm:$0xff] }
  0xba   : > { %v629_v35 = vld [vmem:[#allocation2 + $0xb0] sm:$0xff] }
  0xbc   : > { %801 = vmatmul.mubr.f32.gmra.mrb[26].mxu0 %v569_v38  ;;  %881 = vmatmul.mubr.f32.gmra.mrb[26].mxu1 %v601_v39 }
  0xbd   : > { %805 = vmatprep.mubr.f32.mxu0 %v572_v40  ;;  %885 = vmatprep.mubr.f32.mxu1 %v604_v41 }
  0xc0   : > { %806 = vmatmul.mubr.f32.gmra.mrb[28].mxu0 %v571_v44  ;;  %886 = vmatmul.mubr.f32.gmra.mrb[28].mxu1 %v603_v45 }
  0xc1   : > { %810 = vmatprep.mubr.f32.mxu0 %v574_v46  ;;  %890 = vmatprep.mubr.f32.mxu1 %v606_v47 }
  0xc4   : > { %811 = vmatmul.mubr.f32.gmra.mrb[30].mxu0 %v573_v48  ;;  %891 = vmatmul.mubr.f32.gmra.mrb[30].mxu1 %v605_v49 }
 0x15b   : > { %v737_v52 = vpop.f32.mrb[0].mxu0  ;;  %v817_v53 = vpop.f32.mrb[0].mxu1 }
 0x15c   : > { %v896_v54 = vadd.f32 %v737_v52, %v607_v50  ;;  %v912_v55 = vadd.f32 %v817_v53, %v623_v51  ;;  %v739_v56 = vpop.f32.mrb[1].mxu0  ;;  %v819_v57 = vpop.f32.mrb[1].mxu1  ;;  %v615_v50 = vld [vmem:[#allocation2 + $0x40] sm:$0xff] }
 0x15d   : > { %v631_v51 = vld [vmem:[#allocation2 + $0xc0] sm:$0xff] }
 0x15e   : > { %928 = vst [vmem:[#allocation2] sm:$0xff] %v896_v54  ;;  %944 = vst [vmem:[#allocation2 + $0x80] sm:$0xff] %v912_v55 }
 0x15f   : > { %v742_v60 = vpop.f32.mrb[2].mxu0  ;;  %v822_v61 = vpop.f32.mrb[2].mxu1 }
 0x160   : > { %v897_v62 = vadd.f32 %v742_v60, %v608_v58  ;;  %v913_v63 = vadd.f32 %v822_v61, %v624_v59  ;;  %v744_v0 = vpop.f32.mrb[3].mxu0  ;;  %v824_v1 = vpop.f32.mrb[3].mxu1  ;;  %v616_v58 = vld [vmem:[#allocation2 + $0x48] sm:$0xff] }
 0x161   : > { %v632_v59 = vld [vmem:[#allocation2 + $0xc8] sm:$0xff] }
 0x162   : > { %929 = vst [vmem:[#allocation2 + $0x8] sm:$0xff] %v897_v62  ;;  %945 = vst [vmem:[#allocation2 + $0x88] sm:$0xff] %v913_v63 }
 0x163   : > { %v747_v4 = vpop.f32.mrb[4].mxu0  ;;  %v827_v5 = vpop.f32.mrb[4].mxu1 }
 0x164   : > { %v898_v6 = vadd.f32 %v747_v4, %v609_v2  ;;  %v914_v7 = vadd.f32 %v827_v5, %v625_v3  ;;  %v749_v8 = vpop.f32.mrb[5].mxu0  ;;  %v829_v9 = vpop.f32.mrb[5].mxu1  ;;  %v617_v2 = vld [vmem:[#allocation2 + $0x50] sm:$0xff] }
 0x165   : > { %v633_v3 = vld [vmem:[#allocation2 + $0xd0] sm:$0xff] }
 0x166   : > { %930 = vst [vmem:[#allocation2 + $0x10] sm:$0xff] %v898_v6  ;;  %946 = vst [vmem:[#allocation2 + $0x90] sm:$0xff] %v914_v7 }
 0x167   : > { %v752_v12 = vpop.f32.mrb[6].mxu0  ;;  %v832_v13 = vpop.f32.mrb[6].mxu1 }
 0x168   : > { %v899_v14 = vadd.f32 %v752_v12, %v610_v10  ;;  %v915_v15 = vadd.f32 %v832_v13, %v626_v11  ;;  %v754_v16 = vpop.f32.mrb[7].mxu0  ;;  %v834_v17 = vpop.f32.mrb[7].mxu1  ;;  %v618_v10 = vld [vmem:[#allocation2 + $0x58] sm:$0xff] }
 0x169   : > { %v634_v11 = vld [vmem:[#allocation2 + $0xd8] sm:$0xff] }
 0x16a   : > { %931 = vst [vmem:[#allocation2 + $0x18] sm:$0xff] %v899_v14  ;;  %947 = vst [vmem:[#allocation2 + $0x98] sm:$0xff] %v915_v15 }
 0x16b   : > { %v757_v20 = vpop.f32.mrb[8].mxu0  ;;  %v837_v21 = vpop.f32.mrb[8].mxu1 }
 0x16c   : > { %v900_v22 = vadd.f32 %v757_v20, %v611_v18  ;;  %v916_v23 = vadd.f32 %v837_v21, %v627_v19  ;;  %v759_v24 = vpop.f32.mrb[9].mxu0  ;;  %v839_v25 = vpop.f32.mrb[9].mxu1  ;;  %v619_v18 = vld [vmem:[#allocation2 + $0x60] sm:$0xff] }
 0x16d   : > { %v635_v19 = vld [vmem:[#allocation2 + $0xe0] sm:$0xff] }
 0x16e   : > { %932 = vst [vmem:[#allocation2 + $0x20] sm:$0xff] %v900_v22  ;;  %948 = vst [vmem:[#allocation2 + $0xa0] sm:$0xff] %v916_v23 }
 0x16f   : > { %v762_v28 = vpop.f32.mrb[10].mxu0  ;;  %v842_v29 = vpop.f32.mrb[10].mxu1 }
 0x170   : > { %v901_v30 = vadd.f32 %v762_v28, %v612_v26  ;;  %v917_v31 = vadd.f32 %v842_v29, %v628_v27  ;;  %v764_v32 = vpop.f32.mrb[11].mxu0  ;;  %v844_v33 = vpop.f32.mrb[11].mxu1  ;;  %v620_v26 = vld [vmem:[#allocation2 + $0x68] sm:$0xff] }
 0x171   : > { %v636_v27 = vld [vmem:[#allocation2 + $0xe8] sm:$0xff] }
 0x172   : > { %933 = vst [vmem:[#allocation2 + $0x28] sm:$0xff] %v901_v30  ;;  %949 = vst [vmem:[#allocation2 + $0xa8] sm:$0xff] %v917_v31 }
 0x173   : > { %v767_v36 = vpop.f32.mrb[12].mxu0  ;;  %v847_v37 = vpop.f32.mrb[12].mxu1 }
 0x174   : > { %v902_v38 = vadd.f32 %v767_v36, %v613_v34  ;;  %v918_v39 = vadd.f32 %v847_v37, %v629_v35  ;;  %v769_v40 = vpop.f32.mrb[13].mxu0  ;;  %v849_v41 = vpop.f32.mrb[13].mxu1  ;;  %v621_v34 = vld [vmem:[#allocation2 + $0x70] sm:$0xff] }
 0x175   : > { %v637_v35 = vld [vmem:[#allocation2 + $0xf0] sm:$0xff] }
 0x176   : > { %934 = vst [vmem:[#allocation2 + $0x30] sm:$0xff] %v902_v38  ;;  %950 = vst [vmem:[#allocation2 + $0xb0] sm:$0xff] %v918_v39 }
 0x177   : > { %v772_v44 = vpop.f32.mrb[14].mxu0  ;;  %v852_v45 = vpop.f32.mrb[14].mxu1 }
 0x178   : > { %v903_v46 = vadd.f32 %v772_v44, %v614_v42  ;;  %v919_v47 = vadd.f32 %v852_v45, %v630_v43  ;;  %v774_v48 = vpop.f32.mrb[15].mxu0  ;;  %v854_v49 = vpop.f32.mrb[15].mxu1  ;;  %v622_v42 = vld [vmem:[#allocation2 + $0x78] sm:$0xff] }
 0x179   : > { %v638_v43 = vld [vmem:[#allocation2 + $0xf8] sm:$0xff] }
 0x17a   : > { %935 = vst [vmem:[#allocation2 + $0x38] sm:$0xff] %v903_v46  ;;  %951 = vst [vmem:[#allocation2 + $0xb8] sm:$0xff] %v919_v47 }
 0x17b   : > { %v777_v52 = vpop.f32.mrb[16].mxu0  ;;  %v857_v53 = vpop.f32.mrb[16].mxu1 }
 0x17c   : > { %v904_v54 = vadd.f32 %v777_v52, %v615_v50  ;;  %v920_v55 = vadd.f32 %v857_v53, %v631_v51  ;;  %v779_v56 = vpop.f32.mrb[17].mxu0  ;;  %v859_v57 = vpop.f32.mrb[17].mxu1  ;;  %v2967_v50 = vld [vmem:[#allocation2 + $0x10] sm:$0xff] (!%p2055_p13)  ;;  %v2969_v51 = vld [vmem:[#allocation2] sm:$0xff] (!%p2055_p13)  ;;  %v2971_v52 = vld [vmem:[#allocation2 + $0x18] sm:$0xff] (!%p2055_p13)  ;;  %v2675_v53 = vmov (!%p2055_p13), 16  }
 0x17d   : > { %2552 = vset.pattern.permute.xlu1 (!%p2055_p13), %v2675_v53  ;;  %2551 = vset.pattern.permute.xlu0 (!%p2055_p13), %v2675_v53  ;;  %v999_v56 = vmax.f32 (!%p2055_p13), %v2971_v52, 1.0  ;;  %v2976_v57 = vld [vmem:[#allocation2 + $0x8] sm:$0xff] (!%p2055_p13) }
 0x17e   : > { %936 = vst [vmem:[#allocation2 + $0x40] sm:$0xff] %v904_v54  ;;  %952 = vst [vmem:[#allocation2 + $0xc0] sm:$0xff] %v920_v55  ;;  %v998_v54 = vmax.f32 (!%p2055_p13), %v2967_v50, 1.0  ;;  %v996_v55 = vmax.f32 (!%p2055_p13), %v2969_v51, 1.0  ;;  %v1341_v53 = vld [vmem:[%s3459_s4 + $0x48] sm:$0xff] (!%p2055_p13) }
 0x17f   : > { %v782_v60 = vpop.f32.mrb[18].mxu0  ;;  %v862_v61 = vpop.f32.mrb[18].mxu1 }
 0x180   : > { %v905_v62 = vadd.f32 %v782_v60, %v616_v58  ;;  %v921_v63 = vadd.f32 %v862_v61, %v632_v59  ;;  %v784_v0 = vpop.f32.mrb[19].mxu0  ;;  %v864_v1 = vpop.f32.mrb[19].mxu1  ;;  %v997_v58 = vmax.f32 (!%p2055_p13), %v2976_v57, 1.0  ;;  %v2979_v59 = vld [vmem:[#allocation2 + $0x28] sm:$0xff] (!%p2055_p13)  ;;  %2553 = vrcp.f32 (!%p2055_p13), %v998_v54  ;;  %v2981_v60 = vld [vmem:[#allocation2 + $0x20] sm:$0xff] (!%p2055_p13) }
 0x181   : > { %2555 = vrcp.f32 (!%p2055_p13), %v996_v55  ;;  %v1001_v61 = vmax.f32 (!%p2055_p13), %v2979_v59, 1.0  ;;  %v2987_v0 = vld [vmem:[#allocation2 + $0x30] sm:$0xff] (!%p2055_p13) }
 0x182   : > { %937 = vst [vmem:[#allocation2 + $0x48] sm:$0xff] %v905_v62  ;;  %953 = vst [vmem:[#allocation2 + $0xc8] sm:$0xff] %v921_v63  ;;  %2557 = vrcp.f32 (!%p2055_p13), %v999_v56  ;;  %v1000_v62 = vmax.f32 (!%p2055_p13), %v2981_v60, 1.0  ;;  %v2985_v63 = vld [vmem:[#allocation2 + $0x38] sm:$0xff] (!%p2055_p13) }
 0x183   : > { %v787_v4 = vpop.f32.mrb[20].mxu0  ;;  %v867_v5 = vpop.f32.mrb[20].mxu1  ;;  %2559 = vrcp.f32 (!%p2055_p13), %v997_v58  ;;  %v1003_v1 = vmax.f32 (!%p2055_p13), %v2985_v63, 1.0 }
 0x184   : > { %v906_v6 = vadd.f32 %v787_v4, %v617_v2  ;;  %v922_v7 = vadd.f32 %v867_v5, %v633_v3  ;;  %v789_v8 = vpop.f32.mrb[21].mxu0  ;;  %v869_v9 = vpop.f32.mrb[21].mxu1  ;;  %2561 = vrcp.f32 (!%p2055_p13), %v1001_v61  ;;  %v1002_v2 = vmax.f32 (!%p2055_p13), %v2987_v0, 1.0  ;;  %v1316_v5 = vld [vmem:[%s3458_s3] sm:$0xff] (!%p2055_p13)  ;;  %v3075_v61 = vld [vmem:[#allocation2 + $0x88] sm:$0xff] (!%p2055_p13) }
 0x185   : > { %2563 = vrcp.f32 (!%p2055_p13), %v1000_v62  ;;  %v2993_v4 = vld [vmem:[#allocation2 + $0x40] sm:$0xff] (!%p2055_p13)  ;;  %v1333_v8 = vld [vmem:[%s3459_s4 + $0x8] sm:$0xff] (!%p2055_p13) }
 0x186   : > { %938 = vst [vmem:[#allocation2 + $0x50] sm:$0xff] %v906_v6  ;;  %954 = vst [vmem:[#allocation2 + $0xd0] sm:$0xff] %v922_v7  ;;  %v1317_v6 = vld [vmem:[%s3458_s3 + $0x8] sm:$0xff] (!%p2055_p13)  ;;  %v1332_v7 = vld [vmem:[%s3459_s4] sm:$0xff] (!%p2055_p13)  ;;  %2565 = vrcp.f32 (!%p2055_p13), %v1003_v1 }
 0x187   : > { %v792_v12 = vpop.f32.mrb[22].mxu0  ;;  %v872_v13 = vpop.f32.mrb[22].mxu1  ;;  %v2396_v9 = vpack.c.bf16 (!%p2055_p13), %v1317_v6, %v1316_v5  ;;  %2567 = vrcp.f32 (!%p2055_p13), %v1002_v2  ;;  %v1326_v2 = vld [vmem:[%s3458_s3 + $0x50] sm:$0xff] (!%p2055_p13)  ;;  %v1327_v6 = vld [vmem:[%s3458_s3 + $0x58] sm:$0xff] (!%p2055_p13) }
 0x188   : > { %v907_v14 = vadd.f32 %v792_v12, %v618_v10  ;;  %v923_v15 = vadd.f32 %v872_v13, %v634_v11  ;;  %v794_v16 = vpop.f32.mrb[23].mxu0  ;;  %v874_v17 = vpop.f32.mrb[23].mxu1  ;;  %v2364_v10 = vpack.c.bf16 (!%p2055_p13), %v1333_v8, %v1332_v7  ;;  %v1318_v11 = vld [vmem:[%s3458_s3 + $0x10] sm:$0xff] (!%p2055_p13)  ;;  %v1319_v12 = vld [vmem:[%s3458_s3 + $0x18] sm:$0xff] (!%p2055_p13) }
 0x189   : > { %v2991_v3 = vld [vmem:[#allocation2 + $0x48] sm:$0xff] (!%p2055_p13)  ;;  %v1334_v13 = vld [vmem:[%s3459_s4 + $0x10] sm:$0xff] (!%p2055_p13)  ;;  %v2400_v17 = vpack.c.bf16 (!%p2055_p13), %v1319_v12, %v1318_v11  ;;  %2397 = vmatprep.subr.bf16.mxu0 (!%p2055_p13), %v2396_v9  ;;  %v1343_v8 = vld [vmem:[%s3459_s4 + $0x58] sm:$0xff] (!%p2055_p13)  ;;  %v1013_v12 = vmax.f32 (!%p2055_p13), %v3075_v61, 1.0 }
 0x18a   : > { %939 = vst [vmem:[#allocation2 + $0x58] sm:$0xff] %v907_v14  ;;  %955 = vst [vmem:[#allocation2 + $0xd8] sm:$0xff] %v923_v15  ;;  %v2554_v14 = vpop.eup (!%p2055_p13), %2553  ;;  %v1005_v15 = vmax.f32 (!%p2055_p13), %v2991_v3, 1.0  ;;  %2365 = vmatprep.subr.bf16.mxu1 (!%p2055_p13), %v2364_v10  ;;  %2399 = vmatpush3.bf16.msra.mxu0 (!%p2055_p13), %v2396_v9  ;;  %v1342_v7 = vld [vmem:[%s3459_s4 + $0x50] sm:$0xff] (!%p2055_p13) }
 0x18b   : > { %v797_v20 = vpop.f32.mrb[24].mxu0  ;;  %v877_v21 = vpop.f32.mrb[24].mxu1  ;;  %1104 = vperm.xlu1 (!%p2055_p13), %2552, %v2554_v14   ;;  %2367 = vmatpush3.bf16.msra.mxu1 (!%p2055_p13), %v2364_v10  ;;  %v3090_v10 = vld [vmem:[#allocation2 + $0x80] sm:$0xff] (!%p2055_p13)  ;;  %v2416_v14 = vpack.c.bf16 (!%p2055_p13), %v1327_v6, %v1326_v2 }
 0x18c   : > { %v908_v22 = vadd.f32 %v797_v20, %v619_v18  ;;  %v924_v23 = vadd.f32 %v877_v21, %v635_v19  ;;  %v799_v24 = vpop.f32.mrb[25].mxu0  ;;  %v879_v25 = vpop.f32.mrb[25].mxu1  ;;  %v1335_v18 = vld [vmem:[%s3459_s4 + $0x18] sm:$0xff] (!%p2055_p13)  ;;  %v1320_v19 = vld [vmem:[%s3458_s3 + $0x20] sm:$0xff] (!%p2055_p13)  ;;  %v1004_v21 = vmax.f32 (!%p2055_p13), %v2993_v4, 1.0  ;;  %2569 = vrcp.f32 (!%p2055_p13), %v1005_v15  ;;  %2401 = vmatprep.subr.bf16.mxu0 (!%p2055_p13), %v2400_v17 }
 0x18d   : > { %v2556_v20 = vpop.eup (!%p2055_p13), %2555  ;;  %v1336_v24 = vld [vmem:[%s3459_s4 + $0x20] sm:$0xff] (!%p2055_p13)  ;;  %v1337_v25 = vld [vmem:[%s3459_s4 + $0x28] sm:$0xff] (!%p2055_p13)  ;;  %v2384_v15 = vpack.c.bf16 (!%p2055_p13), %v1343_v8, %v1342_v7 }
 0x18e   : > { %940 = vst [vmem:[#allocation2 + $0x60] sm:$0xff] %v908_v22  ;;  %956 = vst [vmem:[#allocation2 + $0xe0] sm:$0xff] %v924_v23  ;;  %v2368_v22 = vpack.c.bf16 (!%p2055_p13), %v1335_v18, %v1334_v13  ;;  %v1321_v23 = vld [vmem:[%s3458_s3 + $0x28] sm:$0xff] (!%p2055_p13)  ;;  %1094 = vperm.xlu0 (!%p2055_p13), %2551, %v2556_v20   ;;  %2571 = vrcp.f32 (!%p2055_p13), %v1004_v21  ;;  %2403 = vmatpush3.bf16.msra.mxu0 (!%p2055_p13), %v2400_v17  ;;  %v3093_v13 = vld [vmem:[#allocation2 + $0x98] sm:$0xff] (!%p2055_p13)  ;;  %v1012_v18 = vmax.f32 (!%p2055_p13), %v3090_v10, 1.0 }
 0x18f   : > { %v802_v28 = vpop.f32.mrb[26].mxu0  ;;  %v882_v29 = vpop.f32.mrb[26].mxu1  ;;  %v1328_v17 = vld [vmem:[%s3458_s3 + $0x60] sm:$0xff] (!%p2055_p13)  ;;  %v1345_v21 = vld [vmem:[%s3459_s4 + $0x68] sm:$0xff] (!%p2055_p13) }
 0x190   : > { %v909_v30 = vadd.f32 %v802_v28, %v620_v26  ;;  %v925_v31 = vadd.f32 %v882_v29, %v636_v27  ;;  %v804_v32 = vpop.f32.mrb[27].mxu0  ;;  %v884_v33 = vpop.f32.mrb[27].mxu1  ;;  %v3035_v27 = vld [vmem:[#allocation2 + $0x50] sm:$0xff] (!%p2055_p13)  ;;  %2369 = vmatprep.subr.bf16.mxu1 (!%p2055_p13), %v2368_v22  ;;  %v1344_v20 = vld [vmem:[%s3459_s4 + $0x60] sm:$0xff] (!%p2055_p13) }
 0x191   : > { %v3017_v16 = vld [vmem:[#allocation2 + $0x58] sm:$0xff] (!%p2055_p13)  ;;  %v2558_v26 = vpop.eup (!%p2055_p13), %2557  ;;  %v2372_v32 = vpack.c.bf16 (!%p2055_p13), %v1337_v25, %v1336_v24  ;;  %v1322_v33 = vld [vmem:[%s3458_s3 + $0x30] sm:$0xff] (!%p2055_p13)  ;;  %2371 = vmatpush3.bf16.msra.mxu1 (!%p2055_p13), %v2368_v22  ;;  %v1015_v25 = vmax.f32 (!%p2055_p13), %v3093_v13, 1.0 }
 0x192   : > { %941 = vst [vmem:[#allocation2 + $0x68] sm:$0xff] %v909_v30  ;;  %957 = vst [vmem:[#allocation2 + $0xe8] sm:$0xff] %v925_v31  ;;  %v2560_v28 = vpop.eup (!%p2055_p13), %2559  ;;  %v1007_v29 = vmax.f32 (!%p2055_p13), %v3017_v16, 1.0  ;;  %v2404_v31 = vpack.c.bf16 (!%p2055_p13), %v1321_v23, %v1320_v19  ;;  %1109 = vperm.xlu1 (!%p2055_p13), %2552, %v2558_v26   ;;  %v1329_v19 = vld [vmem:[%s3458_s3 + $0x68] sm:$0xff] (!%p2055_p13)  ;;  %v3108_v23 = vld [vmem:[#allocation2 + $0x90] sm:$0xff] (!%p2055_p13) }
 0x193   : > { %v807_v36 = vpop.f32.mrb[28].mxu0  ;;  %v887_v37 = vpop.f32.mrb[28].mxu1  ;;  %1099 = vperm.xlu0 (!%p2055_p13), %2551, %v2560_v28   ;;  %2373 = vmatprep.subr.bf16.mxu1 (!%p2055_p13), %v2372_v32  ;;  %v3111_v26 = vld [vmem:[#allocation2 + $0xa8] sm:$0xff] (!%p2055_p13)  ;;  %v2420_v28 = vpack.c.bf16 (!%p2055_p13), %v1329_v19, %v1328_v17  ;;  %v3144_v7 = vld [vmem:[#allocation2 + $0xd8] sm:$0xff] (!%p2055_p13) }
 0x194   : > { %v910_v38 = vadd.f32 %v807_v36, %v621_v34  ;;  %v926_v39 = vadd.f32 %v887_v37, %v637_v35  ;;  %v809_v40 = vpop.f32.mrb[29].mxu0  ;;  %v889_v41 = vpop.f32.mrb[29].mxu1  ;;  %963 = sbr.rel (%p2055_p13) target bundleno = 816 (0x330), region = 90  ;;  %v1006_v34 = vmax.f32 (!%p2055_p13), %v3035_v27, 1.0  ;;  %v1323_v35 = vld [vmem:[%s3458_s3 + $0x38] sm:$0xff] (!%p2055_p13)  ;;  %v1338_v36 = vld [vmem:[%s3459_s4 + $0x30] sm:$0xff] (!%p2055_p13)  ;;  %2573 = vrcp.f32 (!%p2055_p13), %v1007_v29  ;;  %2405 = vmatprep.subr.bf16.mxu0 (!%p2055_p13), %v2404_v31 }
 0x195   : > { %v1339_v37 = vld [vmem:[%s3459_s4 + $0x38] sm:$0xff] (!%p2055_p13)  ;;  %2407 = vmatpush3.bf16.msra.mxu0 (!%p2055_p13), %v2404_v31  ;;  %2375 = vmatpush3.bf16.msra.mxu1 (!%p2055_p13), %v2372_v32  ;;  %v2388_v29 = vpack.c.bf16 (!%p2055_p13), %v1345_v21, %v1344_v20  ;;  %v1330_v31 = vld [vmem:[%s3458_s3 + $0x70] sm:$0xff] (!%p2055_p13)  ;;  %v1014_v32 = vmax.f32 (!%p2055_p13), %v3108_v23, 1.0  ;;  %v3154_v20 = vld [vmem:[#allocation2 + $0xe0] sm:$0xff] (!%p2055_p13) }
 0x196   : > { %942 = vst [vmem:[#allocation2 + $0x70] sm:$0xff] %v910_v38  ;;  %958 = vst [vmem:[#allocation2 + $0xf0] sm:$0xff] %v926_v39  ;;  %v2562_v38 = vpop.eup (!%p2055_p13), %2561  ;;  %v3053_v39 = vld [vmem:[#allocation2 + $0x60] sm:$0xff] (!%p2055_p13)  ;;  %2575 = vrcp.f32 (!%p2055_p13), %v1006_v34  ;;  %v1346_v34 = vld [vmem:[%s3459_s4 + $0x70] sm:$0xff] (!%p2055_p13) }
 0x197   : > { %v812_v44 = vpop.f32.mrb[30].mxu0  ;;  %v892_v45 = vpop.f32.mrb[30].mxu1  ;;  %1119 = vperm.xlu1 (!%p2055_p13), %2552, %v2562_v38  }
 0x198   : > { %v911_v46 = vadd.f32 %v812_v44, %v622_v42  ;;  %v927_v47 = vadd.f32 %v892_v45, %v638_v43  ;;  %v814_v48 = vpop.f32.mrb[31].mxu0  ;;  %v894_v49 = vpop.f32.mrb[31].mxu1  ;;  %v2408_v43 = vpack.c.bf16 (!%p2055_p13), %v1323_v35, %v1322_v33  ;;  %v2376_v44 = vpack.c.bf16 (!%p2055_p13), %v1339_v37, %v1338_v36  ;;  %v1324_v45 = vld [vmem:[%s3458_s3 + $0x40] sm:$0xff] (!%p2055_p13)  ;;  %v1331_v33 = vld [vmem:[%s3458_s3 + $0x78] sm:$0xff] (!%p2055_p13) }
 0x199   : > { %v3038_v30 = vld [vmem:[#allocation2 + $0x68] sm:$0xff] (!%p2055_p13)  ;;  %v2564_v40 = vpop.eup (!%p2055_p13), %2563  ;;  %v1340_v49 = vld [vmem:[%s3459_s4 + $0x40] sm:$0xff] (!%p2055_p13)  ;;  %v1347_v35 = vld [vmem:[%s3459_s4 + $0x78] sm:$0xff] (!%p2055_p13) }
 0x19a   : > { %943 = vst [vmem:[#allocation2 + $0x78] sm:$0xff] %v911_v46  ;;  %959 = vst [vmem:[#allocation2 + $0xf8] sm:$0xff] %v927_v47  ;;  %v1009_v41 = vmax.f32 (!%p2055_p13), %v3038_v30, 1.0  ;;  %v1284_v46 = vld [vmem:[%s2852_s18] sm:$0xff] (!%p2055_p13)  ;;  %v1008_v47 = vmax.f32 (!%p2055_p13), %v3053_v39, 1.0  ;;  %v1325_v48 = vld [vmem:[%s3458_s3 + $0x48] sm:$0xff] (!%p2055_p13)  ;;  %v2566_v54 = vpop.eup (!%p2055_p13), %2565  ;;  %1114 = vperm.xlu0 (!%p2055_p13), %2551, %v2564_v40   ;;  %2409 = vmatprep.subr.bf16.mxu0 (!%p2055_p13), %v2408_v43  ;;  %v2380_v1 = vpack.c.bf16 (!%p2055_p13), %v1341_v53, %v1340_v49 }
 0x19b   : > { %2268 = vmatprep.mubr.f32.mxu0 %v1284_v46  ;;  %v2568_v56 = vpop.eup %2567  ;;  %2377 = vmatprep.subr.bf16.mxu1 %v2376_v44  ;;  %v2412_v62 = vpack.c.bf16 %v1325_v48, %v1324_v45  ;;  %v3126_v37 = vld [vmem:[#allocation2 + $0xa0] sm:$0xff]  ;;  %v1017_v40 = vmax.f32 %v3111_v26, 1.0  ;;  %v3130_v45 = vld [vmem:[#allocation2 + $0xb8] sm:$0xff] }
 0x19c   : > { %2577 = vrcp.f32 %v1009_v41  ;;  %1129 = vperm.xlu1 %2552, %v2566_v54   ;;  %v2570_v9 = vpop.eup %2569  ;;  %2411 = vmatpush3.bf16.msra.mxu0 %v2408_v43  ;;  %v2424_v41 = vpack.c.bf16 %v1331_v33, %v1330_v31  ;;  %v2392_v43 = vpack.c.bf16 %v1347_v35, %v1346_v34  ;;  %v1019_v49 = vmax.f32 %v3130_v45, 1.0  ;;  %v3136_v54 = vld [vmem:[#allocation2 + $0xc8] sm:$0xff]  ;;  %v1291_v34 = vld [vmem:[%s2852_s18 + $0x38] sm:$0xff] }
 0x19d   : > { %v3072_v55 = vld [vmem:[#allocation2 + $0x70] sm:$0xff]  ;;  %2579 = vrcp.f32 %v1008_v47  ;;  %v2572_v11 = vpop.eup %2571  ;;  %2379 = vmatpush3.bf16.msra.mxu1 %v2376_v44  ;;  %2413 = vmatprep.subr.bf16.mxu0 %v2412_v62  ;;  %v1016_v44 = vmax.f32 %v3126_v37, 1.0  ;;  %v1021_v2 = vmax.f32 %v3136_v54, 1.0 }
 0x19e   : > { %v1010_v5 = vmax.f32 %v3072_v55, 1.0  ;;  %1124 = vperm.xlu0 %2551, %v2568_v56   ;;  %2381 = vmatprep.subr.bf16.mxu1 %v2380_v1  ;;  %v2574_v22 = vpop.eup %2573  ;;  %v3132_v47 = vld [vmem:[#allocation2 + $0xb0] sm:$0xff] }
 0x19f   : > { %v1018_v53 = vmax.f32 %v3132_v47, 1.0 }
 0x1a0   : > { %1139 = vperm.xlu1 %2552, %v2570_v9   ;;  %v2576_v24 = vpop.eup %2575  ;;  %2415 = vmatpush3.bf16.msra.mxu0 %v2412_v62  ;;  %v3146_v9 = vld [vmem:[#allocation2 + $0xd0] sm:$0xff] }
 0x1a1   : > { %v3056_v42 = vld [vmem:[#allocation2 + $0x78] sm:$0xff]  ;;  %2383 = vmatpush3.bf16.msra.mxu1 %v2380_v1  ;;  %2417 = vmatprep.subr.bf16.mxu0 %v2416_v14  ;;  %v1285_v1 = vld [vmem:[%s2852_s18 + $0x8] sm:$0xff]  ;;  %v1022_v17 = vmax.f32 %v3146_v9, 1.0 }
 0x1a2   : > { %v1011_v58 = vmax.f32 %v3056_v42, 1.0  ;;  %1134 = vperm.xlu0 %2551, %v2572_v11   ;;  %2385 = vmatprep.subr.bf16.mxu1 %v2384_v15 }
 0x1a4   : > { %2581 = vrcp.f32 %v1011_v58  ;;  %1149 = vperm.xlu1 %2552, %v2574_v22   ;;  %2419 = vmatpush3.bf16.msra.mxu0 %v2416_v14  ;;  %v3138_v58 = vld [vmem:[#allocation2 + $0xc0] sm:$0xff]  ;;  %v1023_v14 = vmax.f32 %v3144_v7, 1.0  ;;  %v1289_v22 = vld [vmem:[%s2852_s18 + $0x28] sm:$0xff] }
 0x1a5   : > { %2583 = vrcp.f32 %v1010_v5  ;;  %2387 = vmatpush3.bf16.msra.mxu1 %v2384_v15  ;;  %2421 = vmatprep.subr.bf16.mxu0 %v2420_v28  ;;  %v1286_v5 = vld [vmem:[%s2852_s18 + $0x10] sm:$0xff]  ;;  %v1020_v6 = vmax.f32 %v3138_v58, 1.0  ;;  %v1288_v15 = vld [vmem:[%s2852_s18 + $0x20] sm:$0xff] }
 0x1a6   : > { %2585 = vrcp.f32 %v1013_v12  ;;  %v2578_v36 = vpop.eup %2577  ;;  %1144 = vperm.xlu0 %2551, %v2576_v24   ;;  %2389 = vmatprep.subr.bf16.mxu1 %v2388_v29  ;;  %v1287_v12 = vld [vmem:[%s2852_s18 + $0x18] sm:$0xff] }
 0x1a7   : > { %2587 = vrcp.f32 %v1012_v18  ;;  %v2580_v38 = vpop.eup %2579  ;;  %v3152_v18 = vld [vmem:[#allocation2 + $0xe8] sm:$0xff] }
 0x1a8   : > { %2589 = vrcp.f32 %v1015_v25  ;;  %1159 = vperm.xlu1 %2552, %v2578_v36   ;;  %2423 = vmatpush3.bf16.msra.mxu0 %v2420_v28  ;;  %v1025_v24 = vmax.f32 %v3152_v18, 1.0  ;;  %v1290_v25 = vld [vmem:[%s2852_s18 + $0x30] sm:$0xff]  ;;  %v1024_v28 = vmax.f32 %v3154_v20, 1.0  ;;  %v1292_v36 = vld [vmem:[%s2852_s18 + $0x40] sm:$0xff] }
 0x1a9   : > { %2591 = vrcp.f32 %v1014_v32  ;;  %2391 = vmatpush3.bf16.msra.mxu1 %v2388_v29  ;;  %2425 = vmatprep.subr.bf16.mxu0 %v2424_v41  ;;  %v3160_v29 = vld [vmem:[#allocation2 + $0xf8] sm:$0xff]  ;;  %v3162_v32 = vld [vmem:[#allocation2 + $0xf0] sm:$0xff] }
 0x1aa   : > { %1154 = vperm.xlu0 %2551, %v2580_v38   ;;  %2593 = vrcp.f32 %v1017_v40  ;;  %2393 = vmatprep.subr.bf16.mxu1 %v2392_v43  ;;  %v1027_v35 = vmax.f32 %v3160_v29, 1.0  ;;  %v1026_v38 = vmax.f32 %v3162_v32, 1.0 }
 0x1ab   : > { %2595 = vrcp.f32 %v1016_v44  ;;  %v1294_v44 = vld [vmem:[%s2852_s18 + $0x50] sm:$0xff] }
 0x1ac   : > { %2427 = vmatpush3.bf16.msra.mxu0 %v2424_v41  ;;  %2597 = vrcp.f32 %v1019_v49  ;;  %v1295_v49 = vld [vmem:[%s2852_s18 + $0x58] sm:$0xff] }
 0x1ad   : > { %2395 = vmatpush3.bf16.msra.mxu1 %v2392_v43  ;;  %2599 = vrcp.f32 %v1018_v53  ;;  %v1293_v43 = vld [vmem:[%s2852_s18 + $0x48] sm:$0xff]  ;;  %v1296_v53 = vld [vmem:[%s2852_s18 + $0x60] sm:$0xff] }
 0x1ae   : > { %v2582_v46 = vpop.eup %2581  ;;  %2601 = vrcp.f32 %v1021_v2  ;;  %v1298_v2 = vld [vmem:[%s2852_s18 + $0x70] sm:$0xff] }
 0x1af   : > { %v2584_v48 = vpop.eup %2583  ;;  %1169 = vperm.xlu1 %2552, %v2582_v46   ;;  %2269 = vmatmul.mubr.f32.vlgmr.msra.gmra.mrb[0].mxu0 %v1285_v1  ;;  %2603 = vrcp.f32 %v1020_v6  ;;  %v1297_v1 = vld [vmem:[%s2852_s18 + $0x68] sm:$0xff] }
 0x1b0   : > { %v2586_v56 = vpop.eup %2585  ;;  %1164 = vperm.xlu0 %2551, %v2584_v48   ;;  %2271 = vmatprep.mubr.f32.mxu0 %v1286_v5  ;;  %2605 = vrcp.f32 %v1023_v14  ;;  %v1302_v14 = vld [vmem:[%s2852_s18 + $0x90] sm:$0xff] }
 0x1b1   : > { %v2588_v62 = vpop.eup %2587  ;;  %2607 = vrcp.f32 %v1022_v17  ;;  %v1304_v17 = vld [vmem:[%s2852_s18 + $0xa0] sm:$0xff] }
 0x1b2   : > { %v2590_v8 = vpop.eup %2589  ;;  %2609 = vrcp.f32 %v1025_v24  ;;  %v1308_v24 = vld [vmem:[%s2852_s18 + $0xc0] sm:$0xff] }
 0x1b3   : > { %1179 = vperm.xlu1 %2552, %v2586_v56   ;;  %v2592_v11 = vpop.eup %2591  ;;  %2272 = vmatmul.mubr.f32.gmra.mrb[2].mxu0 %v1287_v12  ;;  %2611 = vrcp.f32 %v1024_v28  ;;  %v1301_v12 = vld [vmem:[%s2852_s18 + $0x88] sm:$0xff]  ;;  %v1310_v28 = vld [vmem:[%s2852_s18 + $0xd0] sm:$0xff] }
 0x1b4   : > { %1174 = vperm.xlu0 %2551, %v2588_v62   ;;  %v2594_v19 = vpop.eup %2593  ;;  %2274 = vmatprep.mubr.f32.mxu0 %v1288_v15  ;;  %2613 = vrcp.f32 %v1027_v35  ;;  %v1303_v15 = vld [vmem:[%s2852_s18 + $0x98] sm:$0xff]  ;;  %v1314_v35 = vld [vmem:[%s2852_s18 + $0xf0] sm:$0xff] }
 0x1b5   : > { %v2596_v21 = vpop.eup %2595  ;;  %2615 = vrcp.f32 %v1026_v38 }
 0x1b6   : > { %v2598_v31 = vpop.eup %2597 }
 0x1b7   : > { %1189 = vperm.xlu1 %2552, %v2590_v8   ;;  %2275 = vmatmul.mubr.f32.gmra.mrb[4].mxu0 %v1289_v22  ;;  %v2600_v33 = vpop.eup %2599  ;;  %v1299_v8 = vld [vmem:[%s2852_s18 + $0x78] sm:$0xff] }
 0x1b8   : > { %1184 = vperm.xlu0 %2551, %v2592_v11   ;;  %2277 = vmatprep.mubr.f32.mxu0 %v1290_v25  ;;  %v2602_v40 = vpop.eup %2601  ;;  %v1300_v11 = vld [vmem:[%s2852_s18 + $0x80] sm:$0xff]  ;;  %v1307_v22 = vld [vmem:[%s2852_s18 + $0xb8] sm:$0xff]  ;;  %v1309_v25 = vld [vmem:[%s2852_s18 + $0xc8] sm:$0xff] }
 0x1b9   : > { %v2604_v41 = vpop.eup %2603 }
 0x1ba   : > { %v2606_v46 = vpop.eup %2605 }
 0x1bb   : > { %1199 = vperm.xlu1 %2552, %v2594_v19   ;;  %2278 = vmatmul.mubr.f32.gmra.mrb[6].mxu0 %v1291_v34  ;;  %v2608_v48 = vpop.eup %2607  ;;  %v1305_v19 = vld [vmem:[%s2852_s18 + $0xa8] sm:$0xff] }
 0x1bc   : > { %1194 = vperm.xlu0 %2551, %v2596_v21   ;;  %2280 = vmatprep.mubr.f32.mxu0 %v1292_v36  ;;  %v2610_v56 = vpop.eup %2609  ;;  %v1306_v21 = vld [vmem:[%s2852_s18 + $0xb0] sm:$0xff]  ;;  %v1313_v34 = vld [vmem:[%s2852_s18 + $0xe8] sm:$0xff]  ;;  %v1315_v36 = vld [vmem:[%s2852_s18 + $0xf8] sm:$0xff] }
 0x1bd   : > { %v2612_v62 = vpop.eup %2611 }
 0x1be   : > { %v2614_v5 = vpop.eup %2613 }
 0x1bf   : > { %1209 = vperm.xlu1 %2552, %v2598_v31   ;;  %2281 = vmatmul.mubr.f32.gmra.mrb[8].mxu0 %v1293_v43  ;;  %v2616_v6 = vpop.eup %2615  ;;  %v1311_v31 = vld [vmem:[%s2852_s18 + $0xd8] sm:$0xff] }
 0x1c0   : > { %1204 = vperm.xlu0 %2551, %v2600_v33   ;;  %2283 = vmatprep.mubr.f32.mxu0 %v1294_v44  ;;  %v1312_v33 = vld [vmem:[%s2852_s18 + $0xe0] sm:$0xff] }
 0x1c3   : > { %1219 = vperm.xlu1 %2552, %v2602_v40   ;;  %2284 = vmatmul.mubr.f32.gmra.mrb[10].mxu0 %v1295_v49 }
 0x1c4   : > { %1214 = vperm.xlu0 %2551, %v2604_v41   ;;  %2286 = vmatprep.mubr.f32.mxu0 %v1296_v53 }
 0x1c7   : > { %1229 = vperm.xlu1 %2552, %v2606_v46   ;;  %2287 = vmatmul.mubr.f32.gmra.mrb[12].mxu0 %v1297_v1 }
 0x1c8   : > { %1224 = vperm.xlu0 %2551, %v2608_v48   ;;  %2289 = vmatprep.mubr.f32.mxu0 %v1298_v2 }
 0x1cb   : > { %1239 = vperm.xlu1 %2552, %v2610_v56   ;;  %2290 = vmatmul.mubr.f32.gmra.mrb[14].mxu0 %v1299_v8 }
 0x1cc   : > { %1234 = vperm.xlu0 %2551, %v2612_v62   ;;  %2292 = vmatprep.mubr.f32.mxu0 %v1300_v11 }
 0x1cf   : > { %1249 = vperm.xlu1 %2552, %v2614_v5   ;;  %2293 = vmatmul.mubr.f32.gmra.mrb[16].mxu0 %v1301_v12 }
 0x1d0   : > { %1244 = vperm.xlu0 %2551, %v2616_v6   ;;  %2295 = vmatprep.mubr.f32.mxu0 %v1302_v14 }
 0x1d3   : > { %2296 = vmatmul.mubr.f32.gmra.mrb[18].mxu0 %v1303_v15 }
 0x1d4   : > { %2298 = vmatprep.mubr.f32.mxu0 %v1304_v17 }
 0x1d7   : > { %2299 = vmatmul.mubr.f32.gmra.mrb[20].mxu0 %v1305_v19 }
 0x1d8   : > { %2301 = vmatprep.mubr.f32.mxu0 %v1306_v21 }
 0x1db   : > { %2302 = vmatmul.mubr.f32.gmra.mrb[22].mxu0 %v1307_v22 }
 0x1dc   : > { %2304 = vmatprep.mubr.f32.mxu0 %v1308_v24 }
 0x1df   : > { %2305 = vmatmul.mubr.f32.gmra.mrb[24].mxu0 %v1309_v25 }
 0x1e0   : > { %2307 = vmatprep.mubr.f32.mxu0 %v1310_v28 }
 0x1e3   : > { %2308 = vmatmul.mubr.f32.gmra.mrb[26].mxu0 %v1311_v31 }
 0x1e4   : > { %2310 = vmatprep.mubr.f32.mxu0 %v1312_v33 }
 0x1e7   : > { %2311 = vmatmul.mubr.f32.gmra.mrb[28].mxu0 %v1313_v34 }
 0x1e8   : > { %2313 = vmatprep.mubr.f32.mxu0 %v1314_v35 }
 0x1eb   : > { %2314 = vmatmul.mubr.f32.gmra.mrb[30].mxu0 %v1315_v36 }
 0x20a   : > { %v1105_v38 = vpop.permute.xlu1 %1104 }
 0x20b   : > { %v1254_v44 = vmul.f32 %v1105_v38, %v2967_v50 }
 0x20d   : > { %v1095_v40 = vpop.permute.xlu0 %1094 }
 0x20e   : > { %v1252_v41 = vmul.f32 %v1095_v40, %v2969_v51 }
 0x210   : > { %2188 = vmatprep.mubr.f32.mxu1 %v1252_v41 }
 0x211   : > { %v1110_v43 = vpop.permute.xlu1 %1109 }
 0x212   : > { %v1100_v46 = vpop.permute.xlu0 %1099  ;;  %v1255_v56 = vmul.f32 %v1110_v43, %v2971_v52 }
 0x213   : > { %v1253_v48 = vmul.f32 %v1100_v46, %v2976_v57 }
 0x215   : > { %2189 = vmatmul.mubr.f32.vlgmr.msra.gmra.mrb[0].mxu1 %v1253_v48 }
 0x216   : > { %v1120_v49 = vpop.permute.xlu1 %1119  ;;  %2191 = vmatprep.mubr.f32.mxu1 %v1254_v44 }
 0x217   : > { %v1257_v51 = vmul.f32 %v1120_v49, %v2979_v59 }
 0x219   : > { %v1115_v53 = vpop.permute.xlu0 %1114  ;;  %2192 = vmatmul.mubr.f32.gmra.mrb[2].mxu1 %v1255_v56 }
 0x21a   : > { %v1256_v62 = vmul.f32 %v1115_v53, %v2981_v60 }
 0x21b   : > { %v1130_v1 = vpop.permute.xlu1 %1129 }
 0x21c   : > { %2194 = vmatprep.mubr.f32.mxu1 %v1256_v62  ;;  %v1259_v6 = vmul.f32 %v1130_v1, %v2985_v63 }
 0x21d   : > { %v1125_v2 = vpop.permute.xlu0 %1124  ;;  %2195 = vmatmul.mubr.f32.gmra.mrb[4].mxu1 %v1257_v51 }
 0x21e   : > { %v1258_v5 = vmul.f32 %v1125_v2, %v2987_v0 }
 0x21f   : > { %v1140_v50 = vpop.permute.xlu1 %1139 }
 0x220   : > { %2197 = vmatprep.mubr.f32.mxu1 %v1258_v5  ;;  %v1261_v11 = vmul.f32 %v1140_v50, %v2991_v3 }
 0x221   : > { %v1135_v57 = vpop.permute.xlu0 %1134  ;;  %2198 = vmatmul.mubr.f32.gmra.mrb[6].mxu1 %v1259_v6 }
 0x222   : > { %v1260_v8 = vmul.f32 %v1135_v57, %v2993_v4 }
 0x223   : > { %v1150_v52 = vpop.permute.xlu1 %1149 }
 0x224   : > { %2200 = vmatprep.mubr.f32.mxu1 %v1260_v8  ;;  %v1263_v14 = vmul.f32 %v1150_v52, %v3017_v16 }
 0x225   : > { %v1145_v60 = vpop.permute.xlu0 %1144  ;;  %2201 = vmatmul.mubr.f32.gmra.mrb[8].mxu1 %v1261_v11 }
 0x226   : > { %v1262_v12 = vmul.f32 %v1145_v60, %v3035_v27 }
 0x227   : > { %v1160_v59 = vpop.permute.xlu1 %1159 }
 0x228   : > { %2203 = vmatprep.mubr.f32.mxu1 %v1262_v12  ;;  %v1265_v17 = vmul.f32 %v1160_v59, %v3038_v30 }
 0x229   : > { %v1155_v0 = vpop.permute.xlu0 %1154  ;;  %2204 = vmatmul.mubr.f32.gmra.mrb[10].mxu1 %v1263_v14 }
 0x22a   : > { %v1264_v15 = vmul.f32 %v1155_v0, %v3053_v39 }
 0x22c   : > { %2206 = vmatprep.mubr.f32.mxu1 %v1264_v15 }
 0x22d   : > { %2207 = vmatmul.mubr.f32.gmra.mrb[12].mxu1 %v1265_v17 }
 0x22e   : > { %v1170_v63 = vpop.permute.xlu1 %1169 }
 0x22f   : > { %v1165_v4 = vpop.permute.xlu0 %1164  ;;  %v1267_v21 = vmul.f32 %v1170_v63, %v3056_v42 }
 0x230   : > { %v1266_v19 = vmul.f32 %v1165_v4, %v3072_v55 }
 0x232   : > { %v1180_v3 = vpop.permute.xlu1 %1179  ;;  %2209 = vmatprep.mubr.f32.mxu1 %v1266_v19 }
 0x233   : > { %v1175_v27 = vpop.permute.xlu0 %1174  ;;  %2210 = vmatmul.mubr.f32.gmra.mrb[14].mxu1 %v1267_v21  ;;  %v1269_v24 = vmul.f32 %v1180_v3, %v3075_v61 }
 0x234   : > { %v1268_v22 = vmul.f32 %v1175_v27, %v3090_v10  ;;  %v1869_v27 = vlaneseq }
 0x236   : > { %v1190_v16 = vpop.permute.xlu1 %1189  ;;  %2212 = vmatprep.mubr.f32.mxu1 %v1268_v22  ;;  %v3276_v22 = vld [vmem:[%s3460_s5] ss:$0 sm:$0xff] }
 0x237   : > { %v1185_v39 = vpop.permute.xlu0 %1184  ;;  %2213 = vmatmul.mubr.f32.gmra.mrb[16].mxu1 %v1269_v24  ;;  %v1271_v28 = vmul.f32 %v1190_v16, %v3093_v13  ;;  %v3278_v16 = vand.u32 127, %v1869_v27 }
 0x238   : > { %v1270_v25 = vmul.f32 %v1185_v39, %v3108_v23 }
 0x239   : > { %vm1871_vm0 = vcmp.eq.s32.totalorder %v3278_v16, 32 }
 0x23a   : > { %v1200_v30 = vpop.permute.xlu1 %1199  ;;  %2215 = vmatprep.mubr.f32.mxu1 %v1270_v25 }
 0x23b   : > { %v1195_v55 = vpop.permute.xlu0 %1194  ;;  %2216 = vmatmul.mubr.f32.gmra.mrb[18].mxu1 %v1271_v28  ;;  %v1273_v33 = vmul.f32 %v1200_v30, %v3111_v26 }
 0x23c   : > { %v1272_v31 = vmul.f32 %v1195_v55, %v3126_v37 }
 0x23e   : > { %v1210_v42 = vpop.permute.xlu1 %1209  ;;  %2218 = vmatprep.mubr.f32.mxu1 %v1272_v31 }
 0x23f   : > { %v1205_v10 = vpop.permute.xlu0 %1204  ;;  %2219 = vmatmul.mubr.f32.gmra.mrb[20].mxu1 %v1273_v33  ;;  %v1275_v35 = vmul.f32 %v1210_v42, %v3130_v45 }
 0x240   : > { %v1274_v34 = vmul.f32 %v1205_v10, %v3132_v47 }
 0x242   : > { %v1220_v61 = vpop.permute.xlu1 %1219  ;;  %2221 = vmatprep.mubr.f32.mxu1 %v1274_v34 }
 0x243   : > { %v1215_v23 = vpop.permute.xlu0 %1214  ;;  %2222 = vmatmul.mubr.f32.gmra.mrb[22].mxu1 %v1275_v35  ;;  %v1277_v38 = vmul.f32 %v1220_v61, %v3136_v54 }
 0x244   : > { %v1276_v36 = vmul.f32 %v1215_v23, %v3138_v58 }
 0x246   : > { %v1230_v13 = vpop.permute.xlu1 %1229  ;;  %2224 = vmatprep.mubr.f32.mxu1 %v1276_v36 }
 0x247   : > { %v1225_v37 = vpop.permute.xlu0 %1224  ;;  %2225 = vmatmul.mubr.f32.gmra.mrb[24].mxu1 %v1277_v38  ;;  %v1279_v41 = vmul.f32 %v1230_v13, %v3144_v7 }
 0x248   : > { %v1278_v40 = vmul.f32 %v1225_v37, %v3146_v9 }
 0x24a   : > { %v1240_v26 = vpop.permute.xlu1 %1239  ;;  %2227 = vmatprep.mubr.f32.mxu1 %v1278_v40 }
 0x24b   : > { %v1235_v47 = vpop.permute.xlu0 %1234  ;;  %2228 = vmatmul.mubr.f32.gmra.mrb[26].mxu1 %v1279_v41  ;;  %v1281_v58 = vmul.f32 %v1240_v26, %v3152_v18 }
 0x24c   : > { %v1280_v43 = vmul.f32 %v1235_v47, %v3154_v20 }
 0x24e   : > { %2230 = vmatprep.mubr.f32.mxu1 %v1280_v43  ;;  %v1250_v46 = vpop.permute.xlu1 %1249 }
 0x24f   : > { %v1245_v45 = vpop.permute.xlu0 %1244  ;;  %2231 = vmatmul.mubr.f32.gmra.mrb[28].mxu1 %v1281_v58  ;;  %v1283_v54 = vmul.f32 %v1250_v46, %v3160_v29 }
 0x250   : > { %v1282_v44 = vmul.f32 %v1245_v45, %v3162_v32 }
 0x252   : > { %2233 = vmatprep.mubr.f32.mxu1 %v1282_v44 }
 0x253   : > { %2234 = vmatmul.mubr.f32.gmra.mrb[30].mxu1 %v1283_v54 }
 0x282   : > { %v2270_v9 = vpop.f32.mrb[0].mxu0 }
 0x283   : > { %v1639_v48 = vpop.f32.mrb[1].mxu0 }
 0x286   : > { %v2273_v49 = vpop.f32.mrb[2].mxu0 }
 0x287   : > { %v1649_v53 = vpop.f32.mrb[3].mxu0 }
 0x28a   : > { %v2276_v7 = vpop.f32.mrb[4].mxu0 }
 0x28b   : > { %v1659_v56 = vpop.f32.mrb[5].mxu0 }
 0x28e   : > { %v2279_v20 = vpop.f32.mrb[6].mxu0 }
 0x28f   : > { %v3223_v62 = vpop.f32.mrb[7].mxu0 }
 0x292   : > { %v3225_v1 = vpop.f32.mrb[8].mxu0 }
 0x293   : > { %v3227_v18 = vpop.f32.mrb[9].mxu0 }
 0x296   : > { %v3229_v32 = vpop.f32.mrb[10].mxu0 }
 0x297   : > { %v3231_v2 = vpop.f32.mrb[11].mxu0 }
 0x29a   : > { %v3233_v51 = vpop.f32.mrb[12].mxu0 }
 0x29b   : > { %v3235_v29 = vpop.f32.mrb[13].mxu0 }
 0x29e   : > { %v3237_v5 = vpop.f32.mrb[14].mxu0 }
 0x29f   : > { %v3239_v50 = vpop.f32.mrb[15].mxu0 }
 0x2a2   : > { %v3241_v57 = vpop.f32.mrb[16].mxu0 }
 0x2a3   : > { %v3243_v6 = vpop.f32.mrb[17].mxu0 }
 0x2a6   : > { %v3245_v8 = vpop.f32.mrb[18].mxu0 }
 0x2a7   : > { %v3247_v52 = vpop.f32.mrb[19].mxu0 }
 0x2aa   : > { %v3249_v60 = vpop.f32.mrb[20].mxu0 }
 0x2ab   : > { %v3251_v11 = vpop.f32.mrb[21].mxu0 }
 0x2ae   : > { %v3253_v12 = vpop.f32.mrb[22].mxu0 }
 0x2af   : > { %v3255_v59 = vpop.f32.mrb[23].mxu0 }
 0x2b2   : > { %v3257_v0 = vpop.f32.mrb[24].mxu0 }
 0x2b3   : > { %v3259_v14 = vpop.f32.mrb[25].mxu0 }
 0x2b6   : > { %v3261_v15 = vpop.f32.mrb[26].mxu0 }
 0x2b7   : > { %v3263_v63 = vpop.f32.mrb[27].mxu0 }
 0x2ba   : > { %v3265_v4 = vpop.f32.mrb[28].mxu0 }
 0x2bb   : > { %v3267_v17 = vpop.f32.mrb[29].mxu0 }
 0x2be   : > { %v3269_v19 = vpop.f32.mrb[30].mxu0 }
 0x2bf   : > { %v3271_v3 = vpop.f32.mrb[31].mxu0 }
 0x2e8   : > { %v2190_v21 = vpop.f32.mrb[0].mxu1 }
 0x2e9   : > { %v1645_v39 = vadd.f32 %v2270_v9, %v2190_v21  ;;  %v1414_v24 = vpop.f32.mrb[1].mxu1 }
 0x2ea   : > { %v1640_v25 = vadd.f32 %v1639_v48, %v1414_v24 }
 0x2eb   : > { %v1806_v30 = vadd.f32 %v3276_v22, %v1645_v39 }
 0x2ec   : > { %v1805_v55 = vadd.f32 %v3276_v22, %v1640_v25  ;;  %v2193_v28 = vpop.f32.mrb[2].mxu1 }
 0x2ed   : > { %v1838_v31 = vmax.f32 %v1806_v30, 0.0  ;;  %v1655_v42 = vadd.f32 %v2273_v49, %v2193_v28  ;;  %v1424_v10 = vpop.f32.mrb[3].mxu1 }
 0x2ee   : > { %v1837_v33 = vmax.f32 %v1805_v55, 0.0  ;;  %v1650_v34 = vadd.f32 %v1649_v53, %v1424_v10 }
 0x2ef   : > { %v1873_v61 = vsel %vm1871_vm0, 1.0, %v1838_v31  ;;  %v1808_v23 = vadd.f32 %v3276_v22, %v1655_v42 }
 0x2f0   : > { %1905 = vst [vmem:[%s2857_s20 + $0x8] sm:$0xff] %v1873_v61  ;;  %v1872_v35 = vsel %vm1871_vm0, 1.0, %v1837_v33  ;;  %v1807_v36 = vadd.f32 %v3276_v22, %v1650_v34  ;;  %v2196_v13 = vpop.f32.mrb[4].mxu1 }
 0x2f1   : > { %1904 = vst [vmem:[%s2857_s20] sm:$0xff] %v1872_v35  ;;  %v1840_v37 = vmax.f32 %v1808_v23, 0.0  ;;  %v1665_v38 = vadd.f32 %v2276_v7, %v2196_v13  ;;  %v1434_v40 = vpop.f32.mrb[5].mxu1 }
 0x2f2   : > { %v1839_v26 = vmax.f32 %v1807_v36, 0.0  ;;  %v1660_v47 = vadd.f32 %v1659_v56, %v1434_v40 }
 0x2f3   : > { %v1875_v41 = vsel %vm1871_vm0, 1.0, %v1840_v37  ;;  %v1810_v43 = vadd.f32 %v3276_v22, %v1665_v38 }
 0x2f4   : > { %1907 = vst [vmem:[%s2857_s20 + $0x18] sm:$0xff] %v1875_v41  ;;  %v1874_v45 = vsel %vm1871_vm0, 1.0, %v1839_v26  ;;  %v1809_v58 = vadd.f32 %v3276_v22, %v1660_v47  ;;  %v2199_v44 = vpop.f32.mrb[6].mxu1 }
 0x2f5   : > { %1906 = vst [vmem:[%s2857_s20 + $0x10] sm:$0xff] %v1874_v45  ;;  %v1842_v46 = vmax.f32 %v1810_v43, 0.0  ;;  %v1675_v54 = vadd.f32 %v2279_v20, %v2199_v44  ;;  %v1444_v9 = vpop.f32.mrb[7].mxu1 }
 0x2f6   : > { %v1841_v48 = vmax.f32 %v1809_v58, 0.0  ;;  %v1670_v49 = vadd.f32 %v3223_v62, %v1444_v9 }
 0x2f7   : > { %v1877_v53 = vsel %vm1871_vm0, 1.0, %v1842_v46  ;;  %v1812_v7 = vadd.f32 %v3276_v22, %v1675_v54 }
 0x2f8   : > { %1909 = vst [vmem:[%s2857_s20 + $0x28] sm:$0xff] %v1877_v53  ;;  %v1876_v56 = vsel %vm1871_vm0, 1.0, %v1841_v48  ;;  %v1811_v27 = vadd.f32 %v3276_v22, %v1670_v49  ;;  %v2202_v21 = vpop.f32.mrb[8].mxu1 }
 0x2f9   : > { %1908 = vst [vmem:[%s2857_s20 + $0x20] sm:$0xff] %v1876_v56  ;;  %v1844_v20 = vmax.f32 %v1812_v7, 0.0  ;;  %v1685_v39 = vadd.f32 %v3225_v1, %v2202_v21  ;;  %v1454_v24 = vpop.f32.mrb[9].mxu1 }
 0x2fa   : > { %v1843_v25 = vmax.f32 %v1811_v27, 0.0  ;;  %v1680_v62 = vadd.f32 %v3227_v18, %v1454_v24 }
 0x2fb   : > { %v1879_v30 = vsel %vm1871_vm0, 1.0, %v1844_v20  ;;  %v1814_v55 = vadd.f32 %v3276_v22, %v1685_v39 }
 0x2fc   : > { %1911 = vst [vmem:[%s2857_s20 + $0x38] sm:$0xff] %v1879_v30  ;;  %v1878_v28 = vsel %vm1871_vm0, 1.0, %v1843_v25  ;;  %v1813_v31 = vadd.f32 %v3276_v22, %v1680_v62  ;;  %v2205_v42 = vpop.f32.mrb[10].mxu1 }
 0x2fd   : > { %1910 = vst [vmem:[%s2857_s20 + $0x30] sm:$0xff] %v1878_v28  ;;  %v1846_v1 = vmax.f32 %v1814_v55, 0.0  ;;  %v1695_v10 = vadd.f32 %v3229_v32, %v2205_v42  ;;  %v1464_v33 = vpop.f32.mrb[11].mxu1 }
 0x2fe   : > { %v1845_v34 = vmax.f32 %v1813_v31, 0.0  ;;  %v1690_v18 = vadd.f32 %v3231_v2, %v1464_v33 }
 0x2ff   : > { %v1881_v61 = vsel %vm1871_vm0, 1.0, %v1846_v1  ;;  %v1816_v23 = vadd.f32 %v3276_v22, %v1695_v10 }
 0x300   : > { %1913 = vst [vmem:[%s2857_s20 + $0x48] sm:$0xff] %v1881_v61  ;;  %v1880_v35 = vsel %vm1871_vm0, 1.0, %v1845_v34  ;;  %v1815_v36 = vadd.f32 %v3276_v22, %v1690_v18  ;;  %v2208_v13 = vpop.f32.mrb[12].mxu1 }
 0x301   : > { %1912 = vst [vmem:[%s2857_s20 + $0x40] sm:$0xff] %v1880_v35  ;;  %v1848_v32 = vmax.f32 %v1816_v23, 0.0  ;;  %v1705_v37 = vadd.f32 %v3233_v51, %v2208_v13  ;;  %v1474_v38 = vpop.f32.mrb[13].mxu1 }
 0x302   : > { %v1847_v40 = vmax.f32 %v1815_v36, 0.0  ;;  %v1700_v2 = vadd.f32 %v3235_v29, %v1474_v38 }
 0x303   : > { %v1883_v26 = vsel %vm1871_vm0, 1.0, %v1848_v32  ;;  %v1818_v47 = vadd.f32 %v3276_v22, %v1705_v37 }
 0x304   : > { %1915 = vst [vmem:[%s2857_s20 + $0x58] sm:$0xff] %v1883_v26  ;;  %v1882_v41 = vsel %vm1871_vm0, 1.0, %v1847_v40  ;;  %v1817_v43 = vadd.f32 %v3276_v22, %v1700_v2 }
 0x305   : > { %1914 = vst [vmem:[%s2857_s20 + $0x50] sm:$0xff] %v1882_v41  ;;  %v1850_v51 = vmax.f32 %v1818_v47, 0.0 }
 0x306   : > { %v2211_v45 = vpop.f32.mrb[14].mxu1  ;;  %v1849_v46 = vmax.f32 %v1817_v43, 0.0 }
 0x307   : > { %v1715_v58 = vadd.f32 %v3237_v5, %v2211_v45  ;;  %v1484_v44 = vpop.f32.mrb[15].mxu1  ;;  %v1885_v54 = vsel %vm1871_vm0, 1.0, %v1850_v51 }
 0x308   : > { %v1710_v29 = vadd.f32 %v3239_v50, %v1484_v44  ;;  %1917 = vst [vmem:[%s2857_s20 + $0x68] sm:$0xff] %v1885_v54  ;;  %v1884_v48 = vsel %vm1871_vm0, 1.0, %v1849_v46 }
 0x309   : > { %v1820_v9 = vadd.f32 %v3276_v22, %v1715_v58  ;;  %1916 = vst [vmem:[%s2857_s20 + $0x60] sm:$0xff] %v1884_v48 }
 0x30a   : > { %v1819_v49 = vadd.f32 %v3276_v22, %v1710_v29  ;;  %v2214_v53 = vpop.f32.mrb[16].mxu1 }
 0x30b   : > { %v1852_v5 = vmax.f32 %v1820_v9, 0.0  ;;  %v1725_v7 = vadd.f32 %v3241_v57, %v2214_v53  ;;  %v1494_v56 = vpop.f32.mrb[17].mxu1 }
 0x30c   : > { %v1851_v27 = vmax.f32 %v1819_v49, 0.0  ;;  %v1720_v50 = vadd.f32 %v3243_v6, %v1494_v56 }
 0x30d   : > { %v1887_v21 = vsel %vm1871_vm0, 1.0, %v1852_v5  ;;  %v1822_v20 = vadd.f32 %v3276_v22, %v1725_v7 }
 0x30e   : > { %1919 = vst [vmem:[%s2857_s20 + $0x78] sm:$0xff] %v1887_v21  ;;  %v1886_v39 = vsel %vm1871_vm0, 1.0, %v1851_v27  ;;  %v1821_v24 = vadd.f32 %v3276_v22, %v1720_v50  ;;  %v2217_v25 = vpop.f32.mrb[18].mxu1 }
 0x30f   : > { %1918 = vst [vmem:[%s2857_s20 + $0x70] sm:$0xff] %v1886_v39  ;;  %v1854_v57 = vmax.f32 %v1822_v20, 0.0  ;;  %v1735_v62 = vadd.f32 %v3245_v8, %v2217_v25  ;;  %v1504_v30 = vpop.f32.mrb[19].mxu1 }
 0x310   : > { %v1853_v55 = vmax.f32 %v1821_v24, 0.0  ;;  %v1730_v6 = vadd.f32 %v3247_v52, %v1504_v30 }
 0x311   : > { %v1889_v28 = vsel %vm1871_vm0, 1.0, %v1854_v57  ;;  %v1824_v31 = vadd.f32 %v3276_v22, %v1735_v62 }
 0x312   : > { %1921 = vst [vmem:[%s2857_s20 + $0x88] sm:$0xff] %v1889_v28  ;;  %v1888_v42 = vsel %vm1871_vm0, 1.0, %v1853_v55  ;;  %v1823_v1 = vadd.f32 %v3276_v22, %v1730_v6  ;;  %v2220_v10 = vpop.f32.mrb[20].mxu1 }
 0x313   : > { %1920 = vst [vmem:[%s2857_s20 + $0x80] sm:$0xff] %v1888_v42  ;;  %v1856_v8 = vmax.f32 %v1824_v31, 0.0  ;;  %v1745_v33 = vadd.f32 %v3249_v60, %v2220_v10  ;;  %v1514_v34 = vpop.f32.mrb[21].mxu1 }
 0x314   : > { %v1855_v18 = vmax.f32 %v1823_v1, 0.0  ;;  %v1740_v52 = vadd.f32 %v3251_v11, %v1514_v34 }
 0x315   : > { %v1891_v61 = vsel %vm1871_vm0, 1.0, %v1856_v8  ;;  %v1826_v23 = vadd.f32 %v3276_v22, %v1745_v33 }
 0x316   : > { %1923 = vst [vmem:[%s2857_s20 + $0x98] sm:$0xff] %v1891_v61  ;;  %v1890_v35 = vsel %vm1871_vm0, 1.0, %v1855_v18  ;;  %v1825_v36 = vadd.f32 %v3276_v22, %v1740_v52  ;;  %v2223_v13 = vpop.f32.mrb[22].mxu1 }
 0x317   : > { %1922 = vst [vmem:[%s2857_s20 + $0x90] sm:$0xff] %v1890_v35  ;;  %v1858_v60 = vmax.f32 %v1826_v23, 0.0  ;;  %v1755_v32 = vadd.f32 %v3253_v12, %v2223_v13  ;;  %v1524_v37 = vpop.f32.mrb[23].mxu1 }
 0x318   : > { %v1857_v38 = vmax.f32 %v1825_v36, 0.0  ;;  %v1750_v11 = vadd.f32 %v3255_v59, %v1524_v37 }
 0x319   : > { %v1893_v40 = vsel %vm1871_vm0, 1.0, %v1858_v60  ;;  %v1828_v2 = vadd.f32 %v3276_v22, %v1755_v32 }
 0x31a   : > { %1925 = vst [vmem:[%s2857_s20 + $0xa8] sm:$0xff] %v1893_v40  ;;  %v1892_v26 = vsel %vm1871_vm0, 1.0, %v1857_v38  ;;  %v1827_v47 = vadd.f32 %v3276_v22, %v1750_v11  ;;  %v2226_v41 = vpop.f32.mrb[24].mxu1 }
 0x31b   : > { %1924 = vst [vmem:[%s2857_s20 + $0xa0] sm:$0xff] %v1892_v26  ;;  %v1860_v12 = vmax.f32 %v1828_v2, 0.0  ;;  %v1765_v43 = vadd.f32 %v3257_v0, %v2226_v41  ;;  %v1534_v45 = vpop.f32.mrb[25].mxu1 }
 0x31c   : > { %v1859_v51 = vmax.f32 %v1827_v47, 0.0  ;;  %v1760_v59 = vadd.f32 %v3259_v14, %v1534_v45 }
 0x31d   : > { %v1895_v58 = vsel %vm1871_vm0, 1.0, %v1860_v12  ;;  %v1830_v44 = vadd.f32 %v3276_v22, %v1765_v43 }
 0x31e   : > { %1927 = vst [vmem:[%s2857_s20 + $0xb8] sm:$0xff] %v1895_v58  ;;  %v1894_v46 = vsel %vm1871_vm0, 1.0, %v1859_v51  ;;  %v1829_v29 = vadd.f32 %v3276_v22, %v1760_v59  ;;  %v2229_v54 = vpop.f32.mrb[26].mxu1 }
 0x31f   : > { %1926 = vst [vmem:[%s2857_s20 + $0xb0] sm:$0xff] %v1894_v46  ;;  %v1862_v0 = vmax.f32 %v1830_v44, 0.0  ;;  %v1775_v9 = vadd.f32 %v3261_v15, %v2229_v54  ;;  %v1544_v48 = vpop.f32.mrb[27].mxu1 }
 0x320   : > { %v1861_v49 = vmax.f32 %v1829_v29, 0.0  ;;  %v1770_v14 = vadd.f32 %v3263_v63, %v1544_v48 }
 0x321   : > { %v1897_v53 = vsel %vm1871_vm0, 1.0, %v1862_v0  ;;  %v1832_v5 = vadd.f32 %v3276_v22, %v1775_v9 }
 0x322   : > { %1929 = vst [vmem:[%s2857_s20 + $0xc8] sm:$0xff] %v1897_v53  ;;  %v1896_v7 = vsel %vm1871_vm0, 1.0, %v1861_v49  ;;  %v1831_v56 = vadd.f32 %v3276_v22, %v1770_v14  ;;  %v2232_v27 = vpop.f32.mrb[28].mxu1 }
 0x323   : > { %1928 = vst [vmem:[%s2857_s20 + $0xc0] sm:$0xff] %v1896_v7  ;;  %v1864_v15 = vmax.f32 %v1832_v5, 0.0  ;;  %v1785_v50 = vadd.f32 %v3265_v4, %v2232_v27  ;;  %v1554_v21 = vpop.f32.mrb[29].mxu1 }
 0x324   : > { %v1863_v20 = vmax.f32 %v1831_v56, 0.0  ;;  %v1780_v63 = vadd.f32 %v3267_v17, %v1554_v21 }
 0x325   : > { %v1899_v39 = vsel %vm1871_vm0, 1.0, %v1864_v15  ;;  %v1834_v24 = vadd.f32 %v3276_v22, %v1785_v50 }
 0x326   : > { %1931 = vst [vmem:[%s2857_s20 + $0xd8] sm:$0xff] %v1899_v39  ;;  %v1898_v25 = vsel %vm1871_vm0, 1.0, %v1863_v20  ;;  %v1833_v57 = vadd.f32 %v3276_v22, %v1780_v63  ;;  %v2235_v62 = vpop.f32.mrb[30].mxu1 }
 0x327   : > { %1930 = vst [vmem:[%s2857_s20 + $0xd0] sm:$0xff] %v1898_v25  ;;  %v1866_v4 = vmax.f32 %v1834_v24, 0.0  ;;  %v1795_v30 = vadd.f32 %v3269_v19, %v2235_v62  ;;  %v1564_v17 = vpop.f32.mrb[31].mxu1 }
 0x328   : > { %v1865_v55 = vmax.f32 %v1833_v57, 0.0  ;;  %v1790_v6 = vadd.f32 %v3271_v3, %v1564_v17 }
 0x329   : > { %v1901_v28 = vsel %vm1871_vm0, 1.0, %v1866_v4  ;;  %v1836_v31 = vadd.f32 %v3276_v22, %v1795_v30 }
 0x32a   : > { %1933 = vst [vmem:[%s2857_s20 + $0xe8] sm:$0xff] %v1901_v28  ;;  %v1900_v42 = vsel %vm1871_vm0, 1.0, %v1865_v55  ;;  %v1835_v1 = vadd.f32 %v3276_v22, %v1790_v6 }
 0x32b   : > { %1932 = vst [vmem:[%s2857_s20 + $0xe0] sm:$0xff] %v1900_v42  ;;  %v1868_v10 = vmax.f32 %v1836_v31, 0.0 }
 0x32c   : > { %v1867_v8 = vmax.f32 %v1835_v1, 0.0 }
 0x32d   : > { %v1903_v19 = vsel %vm1871_vm0, 1.0, %v1868_v10 }
 0x32e   : > { %1935 = vst [vmem:[%s2857_s20 + $0xf8] sm:$0xff] %v1903_v19  ;;  %v1902_v3 = vsel %vm1871_vm0, 1.0, %v1867_v8 }
 0x32f   : > { %1934 = vst [vmem:[%s2857_s20 + $0xf0] sm:$0xff] %v1902_v3 }
 0x330 PF: > { %s16_s27 = sadd.s32 1, %s2671_s27   ;;  %s3462_s21 = smov %s2651_s22 }
 0x331   : > { %p13_p0 = scmp.ge.s32.totalorder %s16_s27, 6   ;;  %s3463_s22 = smov %s2762_s10 }
 0x332   : > { %s3464_s23 = smov %s2663_s25  ;;  %s3465_s24 = smov %s2667_s26 }
 0x333   : > { %s3466_s25 = smov %s3469_s28  ;;  %s3467_s26 = smov %s3473_s29 }
 0x334   :  { %15 = sbr.rel (!%p13_p0) target bundleno = 4 (0x4), region = 131 }

</bundles_post_ra>
